<compile_context>
chip_gen: v7x
topology: tpu7x:2x2x1
jax: 0.10.0
libtpu: 0.0.40
codegen_flags: <defaults>
</compile_context>

<pallas_src>
import functools

import jax
import jax.numpy as jnp
from jax.experimental import pallas as pl
from jax.experimental.pallas import tpu as pltpu


def _round_up(x, m):
    return ((x + m - 1) // m) * m


@functools.lru_cache(maxsize=None)
def _vmem_limit_bytes():
    """Per-generation scoped VMEM limit (v7x has only 64 MiB physical)."""
    cap = 64 * 1024 * 1024
    try:
        cap = int(pltpu.get_tpu_info().vmem_capacity_bytes)
    except Exception:
        pass
    return int(min(max(cap - 16 * 1024 * 1024, 32 * 1024 * 1024),
                   96 * 1024 * 1024))


# -----------------------------------------------------------------------------
# Pallas kernel: in-kernel im2col ("tap") convolution
#   operands per input j: main strip block, halo strip block (index i+1),
#   tap-weights (kh*kw, Cin_j, Cout) in bf16; then bias (1, Cout); output block.
# -----------------------------------------------------------------------------
def _conv_taps_kernel(*refs, n_inputs, taps, tm, cout, apply_relu, slope):
    b_ref = refs[3 * n_inputs]
    o_ref = refs[3 * n_inputs + 1]
    bufs = refs[3 * n_inputs + 2:]

    acc = jnp.zeros((tm, cout), jnp.float32)
    for j in range(n_inputs):
        a_ref = refs[3 * j]       # (1, TM, Cin): rows [i*TM, (i+1)*TM)
        h_ref = refs[3 * j + 1]   # (1, TM, Cin): rows [(i+1)*TM, (i+2)*TM)
        w_ref = refs[3 * j + 2]   # (kh*kw, Cin, Cout), bf16
        xbuf = bufs[j]            # (2*TM, Cin) f32 VMEM scratch

        xbuf[pl.ds(0, tm), :] = a_ref[0]
        xbuf[pl.ds(tm, tm), :] = h_ref[0]

        for t, off in enumerate(taps):          # static unroll over kh*kw taps
            a_t = xbuf[pl.ds(off, tm), :].astype(jnp.bfloat16)
            acc = acc + jnp.dot(a_t, w_ref[t],
                                preferred_element_type=jnp.float32)

    acc = acc + b_ref[...]                      # (1, Cout) broadcast, f32
    if apply_relu:
        acc = jnp.where(acc > 0, acc, slope * acc)
    o_ref[0] = acc.astype(o_ref.dtype)


def conv2d_pallas(inputs, b, *, kh, kw, apply_relu=True, slope=0.1):
    """Fused multi-operand 'same' conv:  sum_j conv2d(x_j, w_j) + b  (+LeakyReLU).

    inputs: list of (x_j, w_j); x_j (N,H,W,Cin_j) f32, w_j (Cout,Cin_j,kh,kw).
    All x_j share the same spatial shape. Returns (N,H,W,Cout) f32.
    """
    x0 = inputs[0][0]
    N, H, W, _ = x0.shape
    Cout = inputs[0][1].shape[0]
    ph, pw = (kh - 1) // 2, (kw - 1) // 2

    Wp = W + kw - 1                       # padded row width (valid + kw-1 junk cols)
    m_valid = H * Wp                      # output rows per image (junk cols sliced later)
    halo = (kh - 1) * Wp + (kw - 1)       # max tap offset into the flattened strip

    # Halo-aware tile: largest of (<=512, >=halo, >=8); grid is always exact.
    tm = min(512, _round_up(m_valid, 8))
    tm = max(tm, _round_up(halo, 8), 8)
    m_pad = _round_up(m_valid, tm)
    l_need = m_pad + tm                   # last step's halo block must be in-bounds
    hp_total = max(-(-l_need // Wp), H + kh - 1)
    bot = hp_total - H - ph               # bottom zero-pad rows (>= ph)

    grid = (N, m_pad // tm)
    taps = tuple(dy * Wp + dx for dy in range(kh) for dx in range(kw))

    operands, in_specs, scratch = [], [], []
    for (x, w) in inputs:
        cin = x.shape[-1]
        xp = jnp.pad(x.astype(jnp.float32),
                     ((0, 0), (ph, bot), (pw, pw), (0, 0)))
        xf = xp.reshape(N, hp_total * Wp, cin)          # flattened padded strip
        wt = jnp.transpose(w, (2, 3, 1, 0)).reshape(kh * kw, cin, Cout)
        operands += [xf, xf, wt.astype(jnp.bfloat16)]
        in_specs += [
            pl.BlockSpec((1, tm, cin), lambda n, i: (n, i, 0)),
            pl.BlockSpec((1, tm, cin), lambda n, i: (n, i + 1, 0)),   # halo block
            pl.BlockSpec((kh * kw, cin, Cout), lambda n, i: (0, 0, 0)),
        ]
        scratch.append(pltpu.VMEM((2 * tm, cin), jnp.float32))
    operands.append(b.reshape(1, Cout).astype(jnp.float32))
    in_specs.append(pl.BlockSpec((1, Cout), lambda n, i: (0, 0)))

    kernel = functools.partial(
        _conv_taps_kernel, n_inputs=len(inputs), taps=taps, tm=tm, cout=Cout,
        apply_relu=apply_relu, slope=slope)

    out = pl.pallas_call(
        kernel,
        out_shape=jax.ShapeDtypeStruct((N, m_pad, Cout), jnp.float32),
        grid=grid,
        in_specs=in_specs,
        out_specs=pl.BlockSpec((1, tm, Cout), lambda n, i: (n, i, 0)),
        scratch_shapes=scratch,
        compiler_params=pltpu.CompilerParams(
            dimension_semantics=("parallel", "parallel"),
            vmem_limit_bytes=_vmem_limit_bytes(),
        ),
    )(*operands)

    # Drop the padded rows / junk columns -> (N, H, W, Cout)
    return out[:, :m_valid, :].reshape(N, H, Wp, Cout)[:, :, :W, :]


# -----------------------------------------------------------------------------
# Glue ops (layout / interpolation) kept in plain JAX
# -----------------------------------------------------------------------------
def avg_pool2(x):
    # AvgPool2d(kernel=2, stride=2), NHWC
    return (x[:, ::2, ::2, :] + x[:, ::2, 1::2, :]
            + x[:, 1::2, ::2, :] + x[:, 1::2, 1::2, :]) * 0.25


def upsample_bilinear_2x(x):
    # nn.UpsamplingBilinear2d(scale_factor=2) == bilinear, align_corners=True
    N, H, W, C = x.shape
    Ho, Wo = 2 * H, 2 * W

    def src_coords(n_in, n_out):
        if n_in == 1:
            z = jnp.zeros((n_out,), jnp.int32)
            return z, z, jnp.zeros((n_out,), jnp.float32)
        scale = (n_in - 1) / (n_out - 1)
        s = jnp.arange(n_out, dtype=jnp.float32) * scale
        i0 = jnp.minimum(jnp.floor(s).astype(jnp.int32), n_in - 1)
        i1 = jnp.minimum(i0 + 1, n_in - 1)
        return i0, i1, s - i0.astype(jnp.float32)

    y0, y1, wy = src_coords(H, Ho)
    x0, x1, wx = src_coords(W, Wo)

    rows = (x[:, y0, :, :] * (1.0 - wy)[None, :, None, None]
            + x[:, y1, :, :] * wy[None, :, None, None])
    out = (rows[:, :, x0, :] * (1.0 - wx)[None, None, :, None]
           + rows[:, :, x1, :] * wx[None, None, :, None])
    return out


# -----------------------------------------------------------------------------
# Parameter init (deterministic, matches PyTorch module shapes)
# -----------------------------------------------------------------------------
def _init_conv(key, cin, cout, k):
    kw_key, kb_key = jax.random.split(key)
    fan_in = cin * k * k
    w = jax.random.normal(kw_key, (cout, cin, k, k), jnp.float32) * (1.0 / jnp.sqrt(fan_in))
    b = jax.random.normal(kb_key, (cout,), jnp.float32) * 0.01
    return {"w": w, "b": b}


def init_unet_params(key, in_channels, out_channels):
    keys = jax.random.split(key, 32)
    it = iter(keys)
    p = {}
    p["conv1_a"] = _init_conv(next(it), in_channels, 32, 7)
    p["conv1_b"] = _init_conv(next(it), 32, 32, 7)
    for name, cin, cout, k in [("conv2", 32, 64, 5), ("conv3", 64, 128, 3),
                               ("conv4", 128, 128, 3), ("conv5", 128, 128, 3),
                               ("conv6", 128, 256, 3)]:
        p[name + "_a"] = _init_conv(next(it), cin, cout, k)
        p[name + "_b"] = _init_conv(next(it), cout, cout, k)
    for name, cin, cout in [("deconv6", 256, 128), ("deconv5", 128, 128),
                            ("deconv4", 128, 128), ("deconv3", 128, 64),
                            ("deconv2", 64, 32)]:
        p[name + "_1"] = _init_conv(next(it), cin, cout, 3)
        p[name + "_2"] = _init_conv(next(it), 2 * cout, cout, 3)
    p["deconv1"] = _init_conv(next(it), 32, out_channels, 3)
    return p


# -----------------------------------------------------------------------------
# UNet forward (NHWC internally)
# -----------------------------------------------------------------------------
def _conv(x, p, k, relu=True):
    return conv2d_pallas([(x, p["w"])], p["b"], kh=k, kw=k, apply_relu=relu)


def _double_conv(x, pa, pb, k):
    return _conv(_conv(x, pa, k), pb, k)


def _down_block(x, pa, pb, k):
    return _double_conv(avg_pool2(x), pa, pb, k)


def _up_block(x, skip, p1, p2):
    c1 = _conv(upsample_bilinear_2x(x), p1, 3)
    c = c1.shape[-1]
    w2 = p2["w"]     # (Cout, 2*Cout, 3, 3): split K instead of concatenating
    return conv2d_pallas([(c1, w2[:, :c]), (skip, w2[:, c:])], p2["b"],
                         kh=3, kw=3, apply_relu=True)


def unet_forward(params, x_nchw):
    x = jnp.transpose(x_nchw, (0, 2, 3, 1)).astype(jnp.float32)   # NCHW -> NHWC

    conv1 = _double_conv(x, params["conv1_a"], params["conv1_b"], 7)
    conv2 = _down_block(conv1, params["conv2_a"], params["conv2_b"], 5)
    conv3 = _down_block(conv2, params["conv3_a"], params["conv3_b"], 3)
    conv4 = _down_block(conv3, params["conv4_a"], params["conv4_b"], 3)
    conv5 = _down_block(conv4, params["conv5_a"], params["conv5_b"], 3)
    conv6 = _down_block(conv5, params["conv6_a"], params["conv6_b"], 3)

    d6 = _up_block(conv6, conv5, params["deconv6_1"], params["deconv6_2"])
    d5 = _up_block(d6, conv4, params["deconv5_1"], params["deconv5_2"])
    d4 = _up_block(d5, conv3, params["deconv4_1"], params["deconv4_2"])
    d3 = _up_block(d4, conv2, params["deconv3_1"], params["deconv3_2"])
    d2 = _up_block(d3, conv1, params["deconv2_1"], params["deconv2_2"])

    d1 = _conv(d2, params["deconv1"], 3, relu=False)

    return jnp.transpose(d1, (0, 3, 1, 2))     # NHWC -> NCHW


# -----------------------------------------------------------------------------
# Main: quick kernel self-check against lax.conv, then full UNet forward
# -----------------------------------------------------------------------------
if __name__ == "__main__":
    key = jax.random.PRNGKey(0)
    ck, pkey, xkey = jax.random.split(key, 3)

    # --- self-check of the tap-conv kernel (bf16-quantized apples-to-apples) ---
    k1, k2, k3 = jax.random.split(ck, 3)
    xc = jax.random.normal(k1, (2, 12, 8, 16), jnp.float32)
    wc = jax.random.normal(k2, (24, 16, 5, 5), jnp.float32) * 0.05
    bc = jax.random.normal(k3, (24,), jnp.float32) * 0.01
    xq = xc.astype(jnp.bfloat16).astype(jnp.float32)
    wq = wc.astype(jnp.bfloat16).astype(jnp.float32)

    @jax.jit
    def _conv_check(x, w, bias):
        return conv2d_pallas([(x, w)], bias, kh=5, kw=5, apply_relu=True)

    got = jax.block_until_ready(_conv_check(xq, wq, bc))
    ref = jax.lax.conv_general_dilated(
        xq, jnp.transpose(wq, (2, 3, 1, 0)), (1, 1), "SAME",
        dimension_numbers=("NHWC", "HWIO", "NHWC")) + bc
    ref = jnp.where(ref > 0, ref, 0.1 * ref)
    assert jnp.allclose(got, ref, atol=2e-3, rtol=2e-3), float(jnp.max(jnp.abs(got - ref)))

    # --- full UNet forward ---
    # Spatial must be divisible by 2^5 = 32 for the five AvgPool2d(2) stages.
    N, IN_CH, OUT_CH, H, W = 2, 4, 5, 32, 32
    params = init_unet_params(pkey, IN_CH, OUT_CH)
    x = jax.random.normal(xkey, (N, IN_CH, H, W), jnp.float32)    # NCHW input

    fwd = jax.jit(unet_forward)
    out = jax.block_until_ready(fwd(params, x))

    assert out.shape == (N, OUT_CH, H, W), out.shape
    assert jnp.all(jnp.isfinite(out))
    print("KERNEL_OK")
</pallas_src>

<mosaic_0001>
module attributes {stable_mosaic.version = 11 : i64} {
  func.func @_conv_taps_kernel(%arg0: i32, %arg1: i32, %arg2: memref<1x144x16xf32, #tpu.memory_space<vmem>>, %arg3: memref<1x144x16xf32, #tpu.memory_space<vmem>>, %arg4: memref<25x16x24xbf16, #tpu.memory_space<vmem>>, %arg5: memref<1x24xf32, #tpu.memory_space<vmem>>, %arg6: memref<1x144x24xf32, #tpu.memory_space<vmem>>, %arg7: memref<288x16xf32, #tpu.memory_space<vmem>>) attributes {dimension_semantics = [#tpu.dimension_semantics<parallel>, #tpu.dimension_semantics<parallel>], iteration_bounds = array<i64: 2, 1>, scalar_prefetch = 0 : i64, scratch_operands = 1 : i64, tpu.core_type = #tpu.core_type<tc>, window_params = [{transform_indices = @transform_0, window_bounds = array<i64: 1, 144, 16>}, {transform_indices = @transform_1, window_bounds = array<i64: 1, 144, 16>}, {pipeline_mode = #tpu.pipeline_mode<synchronous>, transform_indices = @transform_2, window_bounds = array<i64: 25, 16, 24>}, {pipeline_mode = #tpu.pipeline_mode<synchronous>, transform_indices = @transform_3, window_bounds = array<i64: 1, 24>}, {transform_indices = @transform_4, window_bounds = array<i64: 1, 144, 24>}]} {
    %cst = arith.constant 0.000000e+00 : f32
    %0 = vector.broadcast %cst : f32 to vector<144x24xf32>
    %c0 = arith.constant 0 : index
    %c0_0 = arith.constant 0 : index
    %c0_1 = arith.constant 0 : index
    %1 = vector.load %arg2[%c0, %c0_0, %c0_1] : memref<1x144x16xf32, #tpu.memory_space<vmem>>, vector<1x144x16xf32>
    %2 = vector.shape_cast %1 : vector<1x144x16xf32> to vector<144x16xf32>
    %c0_2 = arith.constant 0 : index
    %c0_3 = arith.constant 0 : index
    %3 = vector.load %arg7[%c0_2, %c0_3] : memref<288x16xf32, #tpu.memory_space<vmem>>, vector<144x16xf32>
    tpu.vector_store %arg7[%c0_2, %c0_3], %2 {strides = array<i32>} : memref<288x16xf32, #tpu.memory_space<vmem>>, vector<144x16xf32>,
    %c0_4 = arith.constant 0 : index
    %c0_5 = arith.constant 0 : index
    %c0_6 = arith.constant 0 : index
    %4 = vector.load %arg3[%c0_4, %c0_5, %c0_6] : memref<1x144x16xf32, #tpu.memory_space<vmem>>, vector<1x144x16xf32>
    %5 = vector.shape_cast %4 : vector<1x144x16xf32> to vector<144x16xf32>
    %c144 = arith.constant 144 : index
    %c0_7 = arith.constant 0 : index
    %6 = vector.load %arg7[%c144, %c0_7] : memref<288x16xf32, #tpu.memory_space<vmem>>, vector<144x16xf32>
    tpu.vector_store %arg7[%c144, %c0_7], %5 {strides = array<i32>} : memref<288x16xf32, #tpu.memory_space<vmem>>, vector<144x16xf32>,
    %c0_8 = arith.constant 0 : index
    %c0_9 = arith.constant 0 : index
    %7 = vector.load %arg7[%c0_8, %c0_9] : memref<288x16xf32, #tpu.memory_space<vmem>>, vector<144x16xf32>
    %8 = arith.truncf %7 : vector<144x16xf32> to vector<144x16xbf16>
    %c0_10 = arith.constant 0 : index
    %c0_11 = arith.constant 0 : index
    %c0_12 = arith.constant 0 : index
    %9 = vector.load %arg4[%c0_10, %c0_11, %c0_12] : memref<25x16x24xbf16, #tpu.memory_space<vmem>>, vector<1x16x24xbf16>
    %10 = vector.shape_cast %9 : vector<1x16x24xbf16> to vector<16x24xbf16>
    %cst_13 = arith.constant dense<0.000000e+00> : vector<144x24xf32>
    %11 = tpu.matmul %8, %10, %cst_13 {dimension_numbers = #tpu.dot_dimension_numbers<[1], [0], [0], [1], [0, 0, 1, 1], [], []>} : vector<144x16xbf16>, vector<16x24xbf16>, vector<144x24xf32> -> vector<144x24xf32>
    %12 = arith.addf %0, %11 : vector<144x24xf32>
    %c1 = arith.constant 1 : index
    %c0_14 = arith.constant 0 : index
    %13 = vector.load %arg7[%c1, %c0_14] : memref<288x16xf32, #tpu.memory_space<vmem>>, vector<144x16xf32>
    %14 = arith.truncf %13 : vector<144x16xf32> to vector<144x16xbf16>
    %c1_15 = arith.constant 1 : index
    %c0_16 = arith.constant 0 : index
    %c0_17 = arith.constant 0 : index
    %15 = vector.load %arg4[%c1_15, %c0_16, %c0_17] : memref<25x16x24xbf16, #tpu.memory_space<vmem>>, vector<1x16x24xbf16>
    %16 = vector.shape_cast %15 : vector<1x16x24xbf16> to vector<16x24xbf16>
    %cst_18 = arith.constant dense<0.000000e+00> : vector<144x24xf32>
    %17 = tpu.matmul %14, %16, %cst_18 {dimension_numbers = #tpu.dot_dimension_numbers<[1], [0], [0], [1], [0, 0, 1, 1], [], []>} : vector<144x16xbf16>, vector<16x24xbf16>, vector<144x24xf32> -> vector<144x24xf32>
    %18 = arith.addf %12, %17 : vector<144x24xf32>
    %c2 = arith.constant 2 : index
    %c0_19 = arith.constant 0 : index
    %19 = vector.load %arg7[%c2, %c0_19] : memref<288x16xf32, #tpu.memory_space<vmem>>, vector<144x16xf32>
    %20 = arith.truncf %19 : vector<144x16xf32> to vector<144x16xbf16>
    %c2_20 = arith.constant 2 : index
    %c0_21 = arith.constant 0 : index
    %c0_22 = arith.constant 0 : index
    %21 = vector.load %arg4[%c2_20, %c0_21, %c0_22] : memref<25x16x24xbf16, #tpu.memory_space<vmem>>, vector<1x16x24xbf16>
    %22 = vector.shape_cast %21 : vector<1x16x24xbf16> to vector<16x24xbf16>
    %cst_23 = arith.constant dense<0.000000e+00> : vector<144x24xf32>
    %23 = tpu.matmul %20, %22, %cst_23 {dimension_numbers = #tpu.dot_dimension_numbers<[1], [0], [0], [1], [0, 0, 1, 1], [], []>} : vector<144x16xbf16>, vector<16x24xbf16>, vector<144x24xf32> -> vector<144x24xf32>
    %24 = arith.addf %18, %23 : vector<144x24xf32>
    %c3 = arith.constant 3 : index
    %c0_24 = arith.constant 0 : index
    %25 = vector.load %arg7[%c3, %c0_24] : memref<288x16xf32, #tpu.memory_space<vmem>>, vector<144x16xf32>
    %26 = arith.truncf %25 : vector<144x16xf32> to vector<144x16xbf16>
    %c3_25 = arith.constant 3 : index
    %c0_26 = arith.constant 0 : index
    %c0_27 = arith.constant 0 : index
    %27 = vector.load %arg4[%c3_25, %c0_26, %c0_27] : memref<25x16x24xbf16, #tpu.memory_space<vmem>>, vector<1x16x24xbf16>
    %28 = vector.shape_cast %27 : vector<1x16x24xbf16> to vector<16x24xbf16>
    %cst_28 = arith.constant dense<0.000000e+00> : vector<144x24xf32>
    %29 = tpu.matmul %26, %28, %cst_28 {dimension_numbers = #tpu.dot_dimension_numbers<[1], [0], [0], [1], [0, 0, 1, 1], [], []>} : vector<144x16xbf16>, vector<16x24xbf16>, vector<144x24xf32> -> vector<144x24xf32>
    %30 = arith.addf %24, %29 : vector<144x24xf32>
    %c4 = arith.constant 4 : index
    %c0_29 = arith.constant 0 : index
    %31 = vector.load %arg7[%c4, %c0_29] : memref<288x16xf32, #tpu.memory_space<vmem>>, vector<144x16xf32>
    %32 = arith.truncf %31 : vector<144x16xf32> to vector<144x16xbf16>
    %c4_30 = arith.constant 4 : index
    %c0_31 = arith.constant 0 : index
    %c0_32 = arith.constant 0 : index
    %33 = vector.load %arg4[%c4_30, %c0_31, %c0_32] : memref<25x16x24xbf16, #tpu.memory_space<vmem>>, vector<1x16x24xbf16>
    %34 = vector.shape_cast %33 : vector<1x16x24xbf16> to vector<16x24xbf16>
    %cst_33 = arith.constant dense<0.000000e+00> : vector<144x24xf32>
    %35 = tpu.matmul %32, %34, %cst_33 {dimension_numbers = #tpu.dot_dimension_numbers<[1], [0], [0], [1], [0, 0, 1, 1], [], []>} : vector<144x16xbf16>, vector<16x24xbf16>, vector<144x24xf32> -> vector<144x24xf32>
    %36 = arith.addf %30, %35 : vector<144x24xf32>
    %c12 = arith.constant 12 : index
    %c0_34 = arith.constant 0 : index
    %37 = vector.load %arg7[%c12, %c0_34] : memref<288x16xf32, #tpu.memory_space<vmem>>, vector<144x16xf32>
    %38 = arith.truncf %37 : vector<144x16xf32> to vector<144x16xbf16>
    %c5 = arith.constant 5 : index
    %c0_35 = arith.constant 0 : index
    %c0_36 = arith.constant 0 : index
    %39 = vector.load %arg4[%c5, %c0_35, %c0_36] : memref<25x16x24xbf16, #tpu.memory_space<vmem>>, vector<1x16x24xbf16>
    %40 = vector.shape_cast %39 : vector<1x16x24xbf16> to vector<16x24xbf16>
    %cst_37 = arith.constant dense<0.000000e+00> : vector<144x24xf32>
    %41 = tpu.matmul %38, %40, %cst_37 {dimension_numbers = #tpu.dot_dimension_numbers<[1], [0], [0], [1], [0, 0, 1, 1], [], []>} : vector<144x16xbf16>, vector<16x24xbf16>, vector<144x24xf32> -> vector<144x24xf32>
    %42 = arith.addf %36, %41 : vector<144x24xf32>
    %c13 = arith.constant 13 : index
    %c0_38 = arith.constant 0 : index
    %43 = vector.load %arg7[%c13, %c0_38] : memref<288x16xf32, #tpu.memory_space<vmem>>, vector<144x16xf32>
    %44 = arith.truncf %43 : vector<144x16xf32> to vector<144x16xbf16>
    %c6 = arith.constant 6 : index
    %c0_39 = arith.constant 0 : index
    %c0_40 = arith.constant 0 : index
    %45 = vector.load %arg4[%c6, %c0_39, %c0_40] : memref<25x16x24xbf16, #tpu.memory_space<vmem>>, vector<1x16x24xbf16>
    %46 = vector.shape_cast %45 : vector<1x16x24xbf16> to vector<16x24xbf16>
    %cst_41 = arith.constant dense<0.000000e+00> : vector<144x24xf32>
    %47 = tpu.matmul %44, %46, %cst_41 {dimension_numbers = #tpu.dot_dimension_numbers<[1], [0], [0], [1], [0, 0, 1, 1], [], []>} : vector<144x16xbf16>, vector<16x24xbf16>, vector<144x24xf32> -> vector<144x24xf32>
    %48 = arith.addf %42, %47 : vector<144x24xf32>
    %c14 = arith.constant 14 : index
    %c0_42 = arith.constant 0 : index
    %49 = vector.load %arg7[%c14, %c0_42] : memref<288x16xf32, #tpu.memory_space<vmem>>, vector<144x16xf32>
    %50 = arith.truncf %49 : vector<144x16xf32> to vector<144x16xbf16>
    %c7 = arith.constant 7 : index
    %c0_43 = arith.constant 0 : index
    %c0_44 = arith.constant 0 : index
    %51 = vector.load %arg4[%c7, %c0_43, %c0_44] : memref<25x16x24xbf16, #tpu.memory_space<vmem>>, vector<1x16x24xbf16>
    %52 = vector.shape_cast %51 : vector<1x16x24xbf16> to vector<16x24xbf16>
    %cst_45 = arith.constant dense<0.000000e+00> : vector<144x24xf32>
    %53 = tpu.matmul %50, %52, %cst_45 {dimension_numbers = #tpu.dot_dimension_numbers<[1], [0], [0], [1], [0, 0, 1, 1], [], []>} : vector<144x16xbf16>, vector<16x24xbf16>, vector<144x24xf32> -> vector<144x24xf32>
    %54 = arith.addf %48, %53 : vector<144x24xf32>
    %c15 = arith.constant 15 : index
    %c0_46 = arith.constant 0 : index
    %55 = vector.load %arg7[%c15, %c0_46] : memref<288x16xf32, #tpu.memory_space<vmem>>, vector<144x16xf32>
    %56 = arith.truncf %55 : vector<144x16xf32> to vector<144x16xbf16>
    %c8 = arith.constant 8 : index
    %c0_47 = arith.constant 0 : index
    %c0_48 = arith.constant 0 : index
    %57 = vector.load %arg4[%c8, %c0_47, %c0_48] : memref<25x16x24xbf16, #tpu.memory_space<vmem>>, vector<1x16x24xbf16>
    %58 = vector.shape_cast %57 : vector<1x16x24xbf16> to vector<16x24xbf16>
    %cst_49 = arith.constant dense<0.000000e+00> : vector<144x24xf32>
    %59 = tpu.matmul %56, %58, %cst_49 {dimension_numbers = #tpu.dot_dimension_numbers<[1], [0], [0], [1], [0, 0, 1, 1], [], []>} : vector<144x16xbf16>, vector<16x24xbf16>, vector<144x24xf32> -> vector<144x24xf32>
    %60 = arith.addf %54, %59 : vector<144x24xf32>
    %c16 = arith.constant 16 : index
    %c0_50 = arith.constant 0 : index
    %61 = vector.load %arg7[%c16, %c0_50] : memref<288x16xf32, #tpu.memory_space<vmem>>, vector<144x16xf32>
    %62 = arith.truncf %61 : vector<144x16xf32> to vector<144x16xbf16>
    %c9 = arith.constant 9 : index
    %c0_51 = arith.constant 0 : index
    %c0_52 = arith.constant 0 : index
    %63 = vector.load %arg4[%c9, %c0_51, %c0_52] : memref<25x16x24xbf16, #tpu.memory_space<vmem>>, vector<1x16x24xbf16>
    %64 = vector.shape_cast %63 : vector<1x16x24xbf16> to vector<16x24xbf16>
    %cst_53 = arith.constant dense<0.000000e+00> : vector<144x24xf32>
    %65 = tpu.matmul %62, %64, %cst_53 {dimension_numbers = #tpu.dot_dimension_numbers<[1], [0], [0], [1], [0, 0, 1, 1], [], []>} : vector<144x16xbf16>, vector<16x24xbf16>, vector<144x24xf32> -> vector<144x24xf32>
    %66 = arith.addf %60, %65 : vector<144x24xf32>
    %c24 = arith.constant 24 : index
    %c0_54 = arith.constant 0 : index
    %67 = vector.load %arg7[%c24, %c0_54] : memref<288x16xf32, #tpu.memory_space<vmem>>, vector<144x16xf32>
    %68 = arith.truncf %67 : vector<144x16xf32> to vector<144x16xbf16>
    %c10 = arith.constant 10 : index
    %c0_55 = arith.constant 0 : index
    %c0_56 = arith.constant 0 : index
    %69 = vector.load %arg4[%c10, %c0_55, %c0_56] : memref<25x16x24xbf16, #tpu.memory_space<vmem>>, vector<1x16x24xbf16>
    %70 = vector.shape_cast %69 : vector<1x16x24xbf16> to vector<16x24xbf16>
    %cst_57 = arith.constant dense<0.000000e+00> : vector<144x24xf32>
    %71 = tpu.matmul %68, %70, %cst_57 {dimension_numbers = #tpu.dot_dimension_numbers<[1], [0], [0], [1], [0, 0, 1, 1], [], []>} : vector<144x16xbf16>, vector<16x24xbf16>, vector<144x24xf32> -> vector<144x24xf32>
    %72 = arith.addf %66, %71 : vector<144x24xf32>
    %c25 = arith.constant 25 : index
    %c0_58 = arith.constant 0 : index
    %73 = vector.load %arg7[%c25, %c0_58] : memref<288x16xf32, #tpu.memory_space<vmem>>, vector<144x16xf32>
    %74 = arith.truncf %73 : vector<144x16xf32> to vector<144x16xbf16>
    %c11 = arith.constant 11 : index
    %c0_59 = arith.constant 0 : index
    %c0_60 = arith.constant 0 : index
    %75 = vector.load %arg4[%c11, %c0_59, %c0_60] : memref<25x16x24xbf16, #tpu.memory_space<vmem>>, vector<1x16x24xbf16>
    %76 = vector.shape_cast %75 : vector<1x16x24xbf16> to vector<16x24xbf16>
    %cst_61 = arith.constant dense<0.000000e+00> : vector<144x24xf32>
    %77 = tpu.matmul %74, %76, %cst_61 {dimension_numbers = #tpu.dot_dimension_numbers<[1], [0], [0], [1], [0, 0, 1, 1], [], []>} : vector<144x16xbf16>, vector<16x24xbf16>, vector<144x24xf32> -> vector<144x24xf32>
    %78 = arith.addf %72, %77 : vector<144x24xf32>
    %c26 = arith.constant 26 : index
    %c0_62 = arith.constant 0 : index
    %79 = vector.load %arg7[%c26, %c0_62] : memref<288x16xf32, #tpu.memory_space<vmem>>, vector<144x16xf32>
    %80 = arith.truncf %79 : vector<144x16xf32> to vector<144x16xbf16>
    %c12_63 = arith.constant 12 : index
    %c0_64 = arith.constant 0 : index
    %c0_65 = arith.constant 0 : index
    %81 = vector.load %arg4[%c12_63, %c0_64, %c0_65] : memref<25x16x24xbf16, #tpu.memory_space<vmem>>, vector<1x16x24xbf16>
    %82 = vector.shape_cast %81 : vector<1x16x24xbf16> to vector<16x24xbf16>
    %cst_66 = arith.constant dense<0.000000e+00> : vector<144x24xf32>
    %83 = tpu.matmul %80, %82, %cst_66 {dimension_numbers = #tpu.dot_dimension_numbers<[1], [0], [0], [1], [0, 0, 1, 1], [], []>} : vector<144x16xbf16>, vector<16x24xbf16>, vector<144x24xf32> -> vector<144x24xf32>
    %84 = arith.addf %78, %83 : vector<144x24xf32>
    %c27 = arith.constant 27 : index
    %c0_67 = arith.constant 0 : index
    %85 = vector.load %arg7[%c27, %c0_67] : memref<288x16xf32, #tpu.memory_space<vmem>>, vector<144x16xf32>
    %86 = arith.truncf %85 : vector<144x16xf32> to vector<144x16xbf16>
    %c13_68 = arith.constant 13 : index
    %c0_69 = arith.constant 0 : index
    %c0_70 = arith.constant 0 : index
    %87 = vector.load %arg4[%c13_68, %c0_69, %c0_70] : memref<25x16x24xbf16, #tpu.memory_space<vmem>>, vector<1x16x24xbf16>
    %88 = vector.shape_cast %87 : vector<1x16x24xbf16> to vector<16x24xbf16>
    %cst_71 = arith.constant dense<0.000000e+00> : vector<144x24xf32>
    %89 = tpu.matmul %86, %88, %cst_71 {dimension_numbers = #tpu.dot_dimension_numbers<[1], [0], [0], [1], [0, 0, 1, 1], [], []>} : vector<144x16xbf16>, vector<16x24xbf16>, vector<144x24xf32> -> vector<144x24xf32>
    %90 = arith.addf %84, %89 : vector<144x24xf32>
    %c28 = arith.constant 28 : index
    %c0_72 = arith.constant 0 : index
    %91 = vector.load %arg7[%c28, %c0_72] : memref<288x16xf32, #tpu.memory_space<vmem>>, vector<144x16xf32>
    %92 = arith.truncf %91 : vector<144x16xf32> to vector<144x16xbf16>
    %c14_73 = arith.constant 14 : index
    %c0_74 = arith.constant 0 : index
    %c0_75 = arith.constant 0 : index
    %93 = vector.load %arg4[%c14_73, %c0_74, %c0_75] : memref<25x16x24xbf16, #tpu.memory_space<vmem>>, vector<1x16x24xbf16>
    %94 = vector.shape_cast %93 : vector<1x16x24xbf16> to vector<16x24xbf16>
    %cst_76 = arith.constant dense<0.000000e+00> : vector<144x24xf32>
    %95 = tpu.matmul %92, %94, %cst_76 {dimension_numbers = #tpu.dot_dimension_numbers<[1], [0], [0], [1], [0, 0, 1, 1], [], []>} : vector<144x16xbf16>, vector<16x24xbf16>, vector<144x24xf32> -> vector<144x24xf32>
    %96 = arith.addf %90, %95 : vector<144x24xf32>
    %c36 = arith.constant 36 : index
    %c0_77 = arith.constant 0 : index
    %97 = vector.load %arg7[%c36, %c0_77] : memref<288x16xf32, #tpu.memory_space<vmem>>, vector<144x16xf32>
    %98 = arith.truncf %97 : vector<144x16xf32> to vector<144x16xbf16>
    %c15_78 = arith.constant 15 : index
    %c0_79 = arith.constant 0 : index
    %c0_80 = arith.constant 0 : index
    %99 = vector.load %arg4[%c15_78, %c0_79, %c0_80] : memref<25x16x24xbf16, #tpu.memory_space<vmem>>, vector<1x16x24xbf16>
    %100 = vector.shape_cast %99 : vector<1x16x24xbf16> to vector<16x24xbf16>
    %cst_81 = arith.constant dense<0.000000e+00> : vector<144x24xf32>
    %101 = tpu.matmul %98, %100, %cst_81 {dimension_numbers = #tpu.dot_dimension_numbers<[1], [0], [0], [1], [0, 0, 1, 1], [], []>} : vector<144x16xbf16>, vector<16x24xbf16>, vector<144x24xf32> -> vector<144x24xf32>
    %102 = arith.addf %96, %101 : vector<144x24xf32>
    %c37 = arith.constant 37 : index
    %c0_82 = arith.constant 0 : index
    %103 = vector.load %arg7[%c37, %c0_82] : memref<288x16xf32, #tpu.memory_space<vmem>>, vector<144x16xf32>
    %104 = arith.truncf %103 : vector<144x16xf32> to vector<144x16xbf16>
    %c16_83 = arith.constant 16 : index
    %c0_84 = arith.constant 0 : index
    %c0_85 = arith.constant 0 : index
    %105 = vector.load %arg4[%c16_83, %c0_84, %c0_85] : memref<25x16x24xbf16, #tpu.memory_space<vmem>>, vector<1x16x24xbf16>
    %106 = vector.shape_cast %105 : vector<1x16x24xbf16> to vector<16x24xbf16>
    %cst_86 = arith.constant dense<0.000000e+00> : vector<144x24xf32>
    %107 = tpu.matmul %104, %106, %cst_86 {dimension_numbers = #tpu.dot_dimension_numbers<[1], [0], [0], [1], [0, 0, 1, 1], [], []>} : vector<144x16xbf16>, vector<16x24xbf16>, vector<144x24xf32> -> vector<144x24xf32>
    %108 = arith.addf %102, %107 : vector<144x24xf32>
    %c38 = arith.constant 38 : index
    %c0_87 = arith.constant 0 : index
    %109 = vector.load %arg7[%c38, %c0_87] : memref<288x16xf32, #tpu.memory_space<vmem>>, vector<144x16xf32>
    %110 = arith.truncf %109 : vector<144x16xf32> to vector<144x16xbf16>
    %c17 = arith.constant 17 : index
    %c0_88 = arith.constant 0 : index
    %c0_89 = arith.constant 0 : index
    %111 = vector.load %arg4[%c17, %c0_88, %c0_89] : memref<25x16x24xbf16, #tpu.memory_space<vmem>>, vector<1x16x24xbf16>
    %112 = vector.shape_cast %111 : vector<1x16x24xbf16> to vector<16x24xbf16>
    %cst_90 = arith.constant dense<0.000000e+00> : vector<144x24xf32>
    %113 = tpu.matmul %110, %112, %cst_90 {dimension_numbers = #tpu.dot_dimension_numbers<[1], [0], [0], [1], [0, 0, 1, 1], [], []>} : vector<144x16xbf16>, vector<16x24xbf16>, vector<144x24xf32> -> vector<144x24xf32>
    %114 = arith.addf %108, %113 : vector<144x24xf32>
    %c39 = arith.constant 39 : index
    %c0_91 = arith.constant 0 : index
    %115 = vector.load %arg7[%c39, %c0_91] : memref<288x16xf32, #tpu.memory_space<vmem>>, vector<144x16xf32>
    %116 = arith.truncf %115 : vector<144x16xf32> to vector<144x16xbf16>
    %c18 = arith.constant 18 : index
    %c0_92 = arith.constant 0 : index
    %c0_93 = arith.constant 0 : index
    %117 = vector.load %arg4[%c18, %c0_92, %c0_93] : memref<25x16x24xbf16, #tpu.memory_space<vmem>>, vector<1x16x24xbf16>
    %118 = vector.shape_cast %117 : vector<1x16x24xbf16> to vector<16x24xbf16>
    %cst_94 = arith.constant dense<0.000000e+00> : vector<144x24xf32>
    %119 = tpu.matmul %116, %118, %cst_94 {dimension_numbers = #tpu.dot_dimension_numbers<[1], [0], [0], [1], [0, 0, 1, 1], [], []>} : vector<144x16xbf16>, vector<16x24xbf16>, vector<144x24xf32> -> vector<144x24xf32>
    %120 = arith.addf %114, %119 : vector<144x24xf32>
    %c40 = arith.constant 40 : index
    %c0_95 = arith.constant 0 : index
    %121 = vector.load %arg7[%c40, %c0_95] : memref<288x16xf32, #tpu.memory_space<vmem>>, vector<144x16xf32>
    %122 = arith.truncf %121 : vector<144x16xf32> to vector<144x16xbf16>
    %c19 = arith.constant 19 : index
    %c0_96 = arith.constant 0 : index
    %c0_97 = arith.constant 0 : index
    %123 = vector.load %arg4[%c19, %c0_96, %c0_97] : memref<25x16x24xbf16, #tpu.memory_space<vmem>>, vector<1x16x24xbf16>
    %124 = vector.shape_cast %123 : vector<1x16x24xbf16> to vector<16x24xbf16>
    %cst_98 = arith.constant dense<0.000000e+00> : vector<144x24xf32>
    %125 = tpu.matmul %122, %124, %cst_98 {dimension_numbers = #tpu.dot_dimension_numbers<[1], [0], [0], [1], [0, 0, 1, 1], [], []>} : vector<144x16xbf16>, vector<16x24xbf16>, vector<144x24xf32> -> vector<144x24xf32>
    %126 = arith.addf %120, %125 : vector<144x24xf32>
    %c48 = arith.constant 48 : index
    %c0_99 = arith.constant 0 : index
    %127 = vector.load %arg7[%c48, %c0_99] : memref<288x16xf32, #tpu.memory_space<vmem>>, vector<144x16xf32>
    %128 = arith.truncf %127 : vector<144x16xf32> to vector<144x16xbf16>
    %c20 = arith.constant 20 : index
    %c0_100 = arith.constant 0 : index
    %c0_101 = arith.constant 0 : index
    %129 = vector.load %arg4[%c20, %c0_100, %c0_101] : memref<25x16x24xbf16, #tpu.memory_space<vmem>>, vector<1x16x24xbf16>
    %130 = vector.shape_cast %129 : vector<1x16x24xbf16> to vector<16x24xbf16>
    %cst_102 = arith.constant dense<0.000000e+00> : vector<144x24xf32>
    %131 = tpu.matmul %128, %130, %cst_102 {dimension_numbers = #tpu.dot_dimension_numbers<[1], [0], [0], [1], [0, 0, 1, 1], [], []>} : vector<144x16xbf16>, vector<16x24xbf16>, vector<144x24xf32> -> vector<144x24xf32>
    %132 = arith.addf %126, %131 : vector<144x24xf32>
    %c49 = arith.constant 49 : index
    %c0_103 = arith.constant 0 : index
    %133 = vector.load %arg7[%c49, %c0_103] : memref<288x16xf32, #tpu.memory_space<vmem>>, vector<144x16xf32>
    %134 = arith.truncf %133 : vector<144x16xf32> to vector<144x16xbf16>
    %c21 = arith.constant 21 : index
    %c0_104 = arith.constant 0 : index
    %c0_105 = arith.constant 0 : index
    %135 = vector.load %arg4[%c21, %c0_104, %c0_105] : memref<25x16x24xbf16, #tpu.memory_space<vmem>>, vector<1x16x24xbf16>
    %136 = vector.shape_cast %135 : vector<1x16x24xbf16> to vector<16x24xbf16>
    %cst_106 = arith.constant dense<0.000000e+00> : vector<144x24xf32>
    %137 = tpu.matmul %134, %136, %cst_106 {dimension_numbers = #tpu.dot_dimension_numbers<[1], [0], [0], [1], [0, 0, 1, 1], [], []>} : vector<144x16xbf16>, vector<16x24xbf16>, vector<144x24xf32> -> vector<144x24xf32>
    %138 = arith.addf %132, %137 : vector<144x24xf32>
    %c50 = arith.constant 50 : index
    %c0_107 = arith.constant 0 : index
    %139 = vector.load %arg7[%c50, %c0_107] : memref<288x16xf32, #tpu.memory_space<vmem>>, vector<144x16xf32>
    %140 = arith.truncf %139 : vector<144x16xf32> to vector<144x16xbf16>
    %c22 = arith.constant 22 : index
    %c0_108 = arith.constant 0 : index
    %c0_109 = arith.constant 0 : index
    %141 = vector.load %arg4[%c22, %c0_108, %c0_109] : memref<25x16x24xbf16, #tpu.memory_space<vmem>>, vector<1x16x24xbf16>
    %142 = vector.shape_cast %141 : vector<1x16x24xbf16> to vector<16x24xbf16>
    %cst_110 = arith.constant dense<0.000000e+00> : vector<144x24xf32>
    %143 = tpu.matmul %140, %142, %cst_110 {dimension_numbers = #tpu.dot_dimension_numbers<[1], [0], [0], [1], [0, 0, 1, 1], [], []>} : vector<144x16xbf16>, vector<16x24xbf16>, vector<144x24xf32> -> vector<144x24xf32>
    %144 = arith.addf %138, %143 : vector<144x24xf32>
    %c51 = arith.constant 51 : index
    %c0_111 = arith.constant 0 : index
    %145 = vector.load %arg7[%c51, %c0_111] : memref<288x16xf32, #tpu.memory_space<vmem>>, vector<144x16xf32>
    %146 = arith.truncf %145 : vector<144x16xf32> to vector<144x16xbf16>
    %c23 = arith.constant 23 : index
    %c0_112 = arith.constant 0 : index
    %c0_113 = arith.constant 0 : index
    %147 = vector.load %arg4[%c23, %c0_112, %c0_113] : memref<25x16x24xbf16, #tpu.memory_space<vmem>>, vector<1x16x24xbf16>
    %148 = vector.shape_cast %147 : vector<1x16x24xbf16> to vector<16x24xbf16>
    %cst_114 = arith.constant dense<0.000000e+00> : vector<144x24xf32>
    %149 = tpu.matmul %146, %148, %cst_114 {dimension_numbers = #tpu.dot_dimension_numbers<[1], [0], [0], [1], [0, 0, 1, 1], [], []>} : vector<144x16xbf16>, vector<16x24xbf16>, vector<144x24xf32> -> vector<144x24xf32>
    %150 = arith.addf %144, %149 : vector<144x24xf32>
    %c52 = arith.constant 52 : index
    %c0_115 = arith.constant 0 : index
    %151 = vector.load %arg7[%c52, %c0_115] : memref<288x16xf32, #tpu.memory_space<vmem>>, vector<144x16xf32>
    %152 = arith.truncf %151 : vector<144x16xf32> to vector<144x16xbf16>
    %c24_116 = arith.constant 24 : index
    %c0_117 = arith.constant 0 : index
    %c0_118 = arith.constant 0 : index
    %153 = vector.load %arg4[%c24_116, %c0_117, %c0_118] : memref<25x16x24xbf16, #tpu.memory_space<vmem>>, vector<1x16x24xbf16>
    %154 = vector.shape_cast %153 : vector<1x16x24xbf16> to vector<16x24xbf16>
    %cst_119 = arith.constant dense<0.000000e+00> : vector<144x24xf32>
    %155 = tpu.matmul %152, %154, %cst_119 {dimension_numbers = #tpu.dot_dimension_numbers<[1], [0], [0], [1], [0, 0, 1, 1], [], []>} : vector<144x16xbf16>, vector<16x24xbf16>, vector<144x24xf32> -> vector<144x24xf32>
    %156 = arith.addf %150, %155 : vector<144x24xf32>
    %c0_120 = arith.constant 0 : index
    %c0_121 = arith.constant 0 : index
    %157 = vector.load %arg5[%c0_120, %c0_121] : memref<1x24xf32, #tpu.memory_space<vmem>>, vector<1x24xf32>
    %158 = vector.broadcast %157 : vector<1x24xf32> to vector<144x24xf32>
    %159 = arith.addf %156, %158 : vector<144x24xf32>
    %cst_122 = arith.constant 0.000000e+00 : f32
    %160 = vector.broadcast %cst_122 : f32 to vector<144x24xf32>
    %161 = arith.cmpf ogt, %159, %160 : vector<144x24xf32>
    %cst_123 = arith.constant 1.000000e-01 : f32
    %162 = vector.broadcast %cst_123 : f32 to vector<144x24xf32>
    %163 = arith.mulf %162, %159 : vector<144x24xf32>
    %164 = arith.select %161, %159, %163 : vector<144x24xi1>, vector<144x24xf32>
    %c0_124 = arith.constant 0 : index
    %c0_125 = arith.constant 0 : index
    %c0_126 = arith.constant 0 : index
    %165 = vector.load %arg6[%c0_124, %c0_125, %c0_126] : memref<1x144x24xf32, #tpu.memory_space<vmem>>, vector<1x144x24xf32>
    %166 = vector.shape_cast %165 : vector<1x144x24xf32> to vector<144x24xf32>
    %167 = vector.shape_cast %164 : vector<144x24xf32> to vector<1x144x24xf32>
    tpu.vector_store %arg6[%c0_124, %c0_125, %c0_126], %167 {strides = array<i32>} : memref<1x144x24xf32, #tpu.memory_space<vmem>>, vector<1x144x24xf32>,
    return
  }
  func.func @transform_0(%arg0: i32, %arg1: i32) -> (i32, i32, i32) {
    %c0_i32 = arith.constant 0 : i32
    %c0_i32_0 = arith.constant 0 : i32
    return %arg0, %arg1, %c0_i32 : i32, i32, i32
  }
  func.func @transform_1(%arg0: i32, %arg1: i32) -> (i32, i32, i32) {
    %c1_i32 = arith.constant 1 : i32
    %0 = arith.addi %arg1, %c1_i32 : i32
    %c0_i32 = arith.constant 0 : i32
    %c0_i32_0 = arith.constant 0 : i32
    return %arg0, %0, %c0_i32 : i32, i32, i32
  }
  func.func @transform_2(%arg0: i32, %arg1: i32) -> (i32, i32, i32) {
    %c0_i32 = arith.constant 0 : i32
    %c0_i32_0 = arith.constant 0 : i32
    %c0_i32_1 = arith.constant 0 : i32
    %c0_i32_2 = arith.constant 0 : i32
    return %c0_i32, %c0_i32_0, %c0_i32_1 : i32, i32, i32
  }
  func.func @transform_3(%arg0: i32, %arg1: i32) -> (i32, i32) {
    %c0_i32 = arith.constant 0 : i32
    %c0_i32_0 = arith.constant 0 : i32
    %c0_i32_1 = arith.constant 0 : i32
    return %c0_i32, %c0_i32_0 : i32, i32
  }
  func.func @transform_4(%arg0: i32, %arg1: i32) -> (i32, i32, i32) {
    %c0_i32 = arith.constant 0 : i32
    %c0_i32_0 = arith.constant 0 : i32
    return %arg0, %arg1, %c0_i32 : i32, i32, i32
  }
}

</mosaic_0001>

<bundles_post_ra>
// kernel: _conv_check.1
= control target key start
LH: loop header
LB: loop body
LE: loop exit
PB: predicated region body
PF: predicated region fallthrough
CT: control target
= control target key end

     0   :  { %s6789_s15 = smov 0   ;;  %s6791_s16 = smov 0   ;;  %s8504_s0 = inlined_call_operand.vmem [shape: f32[2,288,16], index: 0, kind: input, shape index: {}, may-alias: {0,1}]   ;;  %s8505_s1 = inlined_call_operand.vmem [shape: f32[2,288,16], index: 1, kind: input, shape index: {}, may-alias: {0,1}]   ;;  %s8506_s2 = inlined_call_operand.vmem [shape: bf16[25,16,24], index: 2, kind: input, shape index: {}]   ;;  %s8507_s3 = inlined_call_operand.vmem [shape: f32[1,24], index: 3, kind: input, shape index: {}]   ;;  %s8508_s4 = inlined_call_operand.vmem [shape: f32[2,144,24], index: 4, kind: output, shape index: {}]  }
   0x1   :  { %s6793_s17 = smov 0  }
   0x2 LB: > { %s26_s18 = sadd.s32 1, %s6756_s16  ;;  %p5174_p0 = scmp.ge.s32.totalorder %s6760_s17, 1  ;;  %s6760_s17 = sphi %s6793_s17, %s14_s17   ;;  %s6756_s16 = sphi %s6791_s16, %s8510_s16   ;;  %s6752_s15 = sphi %s6789_s15, %s8509_s15  }
   0x3   : > { %p28_p1 = scmp.ge.s32.totalorder %s26_s18, 2  ;;  %p204_p2 = scmp.lt.s32.totalorder %s6760_s17, 3 }
   0x5   : > { %s8512_s18 = smov (%p28_p1, %s26_s18), 0  ;;  %p205_p3 = pnand %p5174_p0, %p204_p2 }
   0x6   : > { %v6713_v0 = vld [vmem:[%s8506_s2 + $0x8] sm:$0xff] (!%p205_p3)   ;;  %v6762_v1 = vmov (!%p205_p3), 0.0   ;;  %p249_p4 = scmp.lt.s32.totalorder (!%p205_p3), %s6752_s15, 1  ;;  %vm6763_vm0 = vmmov (!%p205_p3), 0   ;;  %vm299_vm1 = vcmask (!%p205_p3), 130048   ;;  %v6714_v20 = vld [vmem:[%s8506_s2 + $0x10] sm:$0xff] (!%p205_p3)  }
   0x7   : > { %208 = sbr.rel (%p205_p3) target bundleno = 1148 (0x47c), region = 36  ;;  %5731 = vmatprep.subr.bf16.mxu0 (!%p205_p3), %v6762_v1  ;;  %6681 = vmatprep.subr.bf16.mxu1 (!%p205_p3), %v6762_v1  ;;  %v6715_v21 = vld [vmem:[%s8506_s2] sm:$0xff] (!%p205_p3)   ;;  %v6716_v53 = vld [vmem:[%s8506_s2 + $0x18] sm:$0xff] (!%p205_p3)   ;;  %vm5046_vm3 = vcmask (!%p205_p3), 195584  }
   0x8   : > { %5732 = vmatpush3.bf16.msra.mxu0 (!%p205_p3), %v6713_v0  ;;  %6682 = vmatpush3.bf16.msra.mxu1 (!%p205_p3), %v6713_v0  ;;  %v6717_v58 = vld [vmem:[%s8506_s2 + $0x20] sm:$0xff] (!%p205_p3)  }
   0x9   : > { %5733 = vmatprep.mubr.msk.bf16.mxu0 (!%p205_p3), %vm6763_vm0, %v6762_v1  ;;  %5753 = vmatprep.mubr.msk.bf16.mxu1 (!%p205_p3), %vm6763_vm0, %v6762_v1 }
   0xa   : > { %5807 = vmatprep.subr.bf16.mxu0 (!%p205_p3), %v6762_v1  ;;  %5769 = vmatprep.subr.bf16.mxu1 (!%p205_p3), %v6762_v1 }
   0xe   : > { %s8514_s15 = smov (!%p249_p4, %s6752_s15), 1 }
   0xf   : > { %s6683_s21 = smul.u32 288, %s8514_s15 }
  0x10   : > { %s6685_s10 = smul.u32 144, %s8514_s15 }
  0x11   : > { %s6824_s24 = scalar_lea.vmem %s8504_s0, %s6683_s21  ;;  %s5480_s25 = sadd.s32 144, %s6683_s21 }
  0x12   : > { %v281_v2 = vld [vmem:[%s6824_s24] sm:$0xff]  ;;  %v282_v3 = vld [vmem:[%s6824_s24 + $0x8] sm:$0xff]  ;;  %v283_v4 = vld [vmem:[%s6824_s24 + $0x10] sm:$0xff]  ;;  %s6844_s28 = scalar_lea.vmem %s8505_s1, %s5480_s25  ;;  %s8426_s13 = scalar_lea.vmem %s8508_s4, %s6685_s10 }
  0x13   : > { %300 = vst.msk [vmem:[#allocation2] sm:$0xff] %vm299_vm1, %v281_v2  ;;  %301 = vst.msk [vmem:[#allocation2 + $0x8] sm:$0xff] %vm299_vm1, %v282_v3  ;;  %v291_v5 = vld [vmem:[%s6824_s24 + $0x50] sm:$0xff]  ;;  %v292_v6 = vld [vmem:[%s6824_s24 + $0x58] sm:$0xff] }
  0x14   : > { %302 = vst.msk [vmem:[#allocation2 + $0x10] sm:$0xff] %vm299_vm1, %v283_v4  ;;  %v293_v7 = vld [vmem:[%s6824_s24 + $0x60] sm:$0xff]  ;;  %310 = vst.msk [vmem:[#allocation2 + $0x50] sm:$0xff] %vm299_vm1, %v291_v5  ;;  %v284_v8 = vld [vmem:[%s6824_s24 + $0x18] sm:$0xff] }
  0x15   : > { %311 = vst.msk [vmem:[#allocation2 + $0x58] sm:$0xff] %vm299_vm1, %v292_v6  ;;  %312 = vst.msk [vmem:[#allocation2 + $0x60] sm:$0xff] %vm299_vm1, %v293_v7  ;;  %v285_v9 = vld [vmem:[%s6824_s24 + $0x20] sm:$0xff]  ;;  %v294_v10 = vld [vmem:[%s6824_s24 + $0x68] sm:$0xff] }
  0x16   : > { %303 = vst.msk [vmem:[#allocation2 + $0x18] sm:$0xff] %vm299_vm1, %v284_v8  ;;  %304 = vst.msk [vmem:[#allocation2 + $0x20] sm:$0xff] %vm299_vm1, %v285_v9  ;;  %v295_v11 = vld [vmem:[%s6824_s24 + $0x70] sm:$0xff]  ;;  %v286_v12 = vld [vmem:[%s6824_s24 + $0x28] sm:$0xff] }
  0x17   : > { %313 = vst.msk [vmem:[#allocation2 + $0x68] sm:$0xff] %vm299_vm1, %v294_v10  ;;  %v287_v13 = vld [vmem:[%s6824_s24 + $0x30] sm:$0xff]  ;;  %314 = vst.msk [vmem:[#allocation2 + $0x70] sm:$0xff] %vm299_vm1, %v295_v11  ;;  %v296_v14 = vld [vmem:[%s6824_s24 + $0x78] sm:$0xff] }
  0x18   : > { %305 = vst.msk [vmem:[#allocation2 + $0x28] sm:$0xff] %vm299_vm1, %v286_v12  ;;  %306 = vst.msk [vmem:[#allocation2 + $0x30] sm:$0xff] %vm299_vm1, %v287_v13  ;;  %v297_v15 = vld [vmem:[%s6824_s24 + $0x80] sm:$0xff]  ;;  %v288_v16 = vld [vmem:[%s6824_s24 + $0x38] sm:$0xff] }
  0x19   : > { %315 = vst.msk [vmem:[#allocation2 + $0x78] sm:$0xff] %vm299_vm1, %v296_v14  ;;  %316 = vst.msk [vmem:[#allocation2 + $0x80] sm:$0xff] %vm299_vm1, %v297_v15  ;;  %v289_v17 = vld [vmem:[%s6824_s24 + $0x40] sm:$0xff]  ;;  %v298_v18 = vld [vmem:[%s6824_s24 + $0x88] sm:$0xff] }
  0x1a   : > { %307 = vst.msk [vmem:[#allocation2 + $0x38] sm:$0xff] %vm299_vm1, %v288_v16  ;;  %v318_v19 = vld [vmem:[%s6844_s28] sm:$0xff]  ;;  %308 = vst.msk [vmem:[#allocation2 + $0x40] sm:$0xff] %vm299_vm1, %v289_v17  ;;  %v290_v33 = vld [vmem:[%s6824_s24 + $0x48] sm:$0xff] }
  0x1b   : > { %317 = vst.msk [vmem:[#allocation2 + $0x88] sm:$0xff] %vm299_vm1, %v298_v18  ;;  %336 = vst.msk [vmem:[#allocation2 + $0x90] sm:$0xff] %vm299_vm1, %v318_v19  ;;  %v383_v22 = vld [vmem:[#allocation2 + $0x1] sm:$0xff]  ;;  %v384_v23 = vld [vmem:[#allocation2 + $0x9] sm:$0xff] }
  0x1c   : > { %v401_v24 = vpack.c.bf16 %v384_v23, %v383_v22  ;;  %v393_v25 = vld [vmem:[#allocation2 + $0x51] sm:$0xff]  ;;  %v394_v26 = vld [vmem:[#allocation2 + $0x59] sm:$0xff]  ;;  %309 = vst.msk [vmem:[#allocation2 + $0x48] sm:$0xff] %vm299_vm1, %v290_v33  ;;  %v355_v50 = vld [vmem:[#allocation2 + $0x8] sm:$0xff] }
  0x1d   : > { %v406_v27 = vpack.c.bf16 %v394_v26, %v393_v25  ;;  %v385_v28 = vld [vmem:[#allocation2 + $0x11] sm:$0xff]  ;;  %v386_v29 = vld [vmem:[#allocation2 + $0x19] sm:$0xff]  ;;  %v689_v54 = vld [vmem:[#allocation2 + $0x2] sm:$0xff] }
  0x1e   : > { %5734 = vmatmul.mubr.msk.bf16.vlgmr.msra.gmra.mrb[0].mxu0 %vm299_vm1, %v401_v24  ;;  %v395_v30 = vld [vmem:[#allocation2 + $0x61] sm:$0xff]  ;;  %v396_v31 = vld [vmem:[#allocation2 + $0x69] sm:$0xff]  ;;  %v402_v32 = vpack.c.bf16 %v386_v29, %v385_v28  ;;  %v357_v57 = vld [vmem:[#allocation2 + $0x18] sm:$0xff] }
  0x1f   : > { %5754 = vmatmul.mubr.msk.bf16.vlgmr.msra.gmra.mrb[0].mxu1 %vm299_vm1, %v406_v27  ;;  %5808 = vmatpush3.bf16.msra.mxu0 %v6714_v20  ;;  %v407_v34 = vpack.c.bf16 %v396_v31, %v395_v30  ;;  %v387_v35 = vld [vmem:[#allocation2 + $0x21] sm:$0xff]  ;;  %v388_v36 = vld [vmem:[#allocation2 + $0x29] sm:$0xff]  ;;  %v691_v61 = vld [vmem:[#allocation2 + $0x12] sm:$0xff] }
  0x20   : > { %5770 = vmatpush3.bf16.msra.mxu1 %v6715_v21  ;;  %5737 = vmatprep.mubr.msk.bf16.mxu0 %vm6763_vm0, %v6762_v1  ;;  %v397_v37 = vld [vmem:[#allocation2 + $0x71] sm:$0xff]  ;;  %v398_v38 = vld [vmem:[#allocation2 + $0x79] sm:$0xff]  ;;  %v403_v39 = vpack.c.bf16 %v388_v36, %v387_v35  ;;  %v359_v0 = vld [vmem:[#allocation2 + $0x28] sm:$0xff] }
  0x21   : > { %5757 = vmatprep.mubr.msk.bf16.mxu1 %vm6763_vm0, %v6762_v1  ;;  %5845 = vmatprep.subr.bf16.mxu1 %v6762_v1  ;;  %v408_v40 = vpack.c.bf16 %v398_v38, %v397_v37  ;;  %v389_v41 = vld [vmem:[#allocation2 + $0x31] sm:$0xff]  ;;  %v390_v42 = vld [vmem:[#allocation2 + $0x39] sm:$0xff]  ;;  %v693_v4 = vld [vmem:[#allocation2 + $0x22] sm:$0xff] }
  0x22   : > { %5883 = vmatprep.subr.bf16.mxu0 %v6762_v1  ;;  %v399_v43 = vld [vmem:[#allocation2 + $0x81] sm:$0xff]  ;;  %v400_v44 = vld [vmem:[#allocation2 + $0x89] sm:$0xff]  ;;  %v404_v45 = vpack.c.bf16 %v390_v42, %v389_v41  ;;  %v361_v7 = vld [vmem:[#allocation2 + $0x38] sm:$0xff] }
  0x23   : > { %v409_v46 = vpack.c.bf16 %v400_v44, %v399_v43  ;;  %v391_v47 = vld [vmem:[#allocation2 + $0x41] sm:$0xff]  ;;  %v392_v48 = vld [vmem:[#allocation2 + $0x49] sm:$0xff]  ;;  %v695_v10 = vld [vmem:[#allocation2 + $0x32] sm:$0xff] }
  0x24   : > { %v354_v49 = vld [vmem:[#allocation2] sm:$0xff]  ;;  %v405_v51 = vpack.c.bf16 %v392_v48, %v391_v47  ;;  %v690_v55 = vld [vmem:[#allocation2 + $0xa] sm:$0xff]  ;;  %v365_v19 = vld [vmem:[#allocation2 + $0x58] sm:$0xff] }
  0x25   : > { %v372_v52 = vpack.c.bf16 %v355_v50, %v354_v49  ;;  %v356_v56 = vld [vmem:[#allocation2 + $0x10] sm:$0xff]  ;;  %v707_v59 = vpack.c.bf16 %v690_v55, %v689_v54  ;;  %v692_v62 = vld [vmem:[#allocation2 + $0x1a] sm:$0xff]  ;;  %v363_v13 = vld [vmem:[#allocation2 + $0x48] sm:$0xff] }
  0x26   : > { %5738 = vmatmul.mubr.msk.bf16.gmra.mrb[4].mxu0 %vm299_vm1, %v402_v32  ;;  %v373_v60 = vpack.c.bf16 %v357_v57, %v356_v56  ;;  %v358_v63 = vld [vmem:[#allocation2 + $0x20] sm:$0xff]  ;;  %v708_v2 = vpack.c.bf16 %v692_v62, %v691_v61  ;;  %v694_v5 = vld [vmem:[#allocation2 + $0x2a] sm:$0xff]  ;;  %v699_v22 = vld [vmem:[#allocation2 + $0x52] sm:$0xff] }
  0x27   : > { %5758 = vmatmul.mubr.msk.bf16.gmra.mrb[4].mxu1 %vm299_vm1, %v407_v34  ;;  %5741 = vmatprep.mubr.msk.bf16.mxu0 %vm6763_vm0, %v6762_v1  ;;  %v374_v3 = vpack.c.bf16 %v359_v0, %v358_v63  ;;  %v360_v6 = vld [vmem:[#allocation2 + $0x30] sm:$0xff]  ;;  %v709_v8 = vpack.c.bf16 %v694_v5, %v693_v4  ;;  %v696_v11 = vld [vmem:[#allocation2 + $0x3a] sm:$0xff]  ;;  %v697_v16 = vld [vmem:[#allocation2 + $0x42] sm:$0xff] }
  0x28   : > { %5761 = vmatprep.mubr.msk.bf16.mxu1 %vm6763_vm0, %v6762_v1  ;;  %v375_v9 = vpack.c.bf16 %v361_v7, %v360_v6  ;;  %v362_v12 = vld [vmem:[#allocation2 + $0x40] sm:$0xff]  ;;  %v710_v14 = vpack.c.bf16 %v696_v11, %v695_v10  ;;  %v698_v17 = vld [vmem:[#allocation2 + $0x4a] sm:$0xff]  ;;  %v369_v31 = vld [vmem:[#allocation2 + $0x78] sm:$0xff] }
  0x29   : > { %v376_v15 = vpack.c.bf16 %v363_v13, %v362_v12  ;;  %v364_v18 = vld [vmem:[#allocation2 + $0x50] sm:$0xff]  ;;  %v711_v20 = vpack.c.bf16 %v698_v17, %v697_v16  ;;  %v700_v23 = vld [vmem:[#allocation2 + $0x5a] sm:$0xff]  ;;  %v367_v25 = vld [vmem:[#allocation2 + $0x68] sm:$0xff] }
  0x2a   : > { %v377_v21 = vpack.c.bf16 %v365_v19, %v364_v18  ;;  %v366_v24 = vld [vmem:[#allocation2 + $0x60] sm:$0xff]  ;;  %v712_v26 = vpack.c.bf16 %v700_v23, %v699_v22  ;;  %v702_v29 = vld [vmem:[#allocation2 + $0x6a] sm:$0xff]  ;;  %v703_v34 = vld [vmem:[#allocation2 + $0x72] sm:$0xff] }
  0x2b   : > { %v378_v27 = vpack.c.bf16 %v367_v25, %v366_v24  ;;  %v701_v28 = vld [vmem:[#allocation2 + $0x62] sm:$0xff]  ;;  %v368_v30 = vld [vmem:[#allocation2 + $0x70] sm:$0xff]  ;;  %v704_v35 = vld [vmem:[#allocation2 + $0x7a] sm:$0xff] }
  0x2c   : > { %v713_v32 = vpack.c.bf16 %v702_v29, %v701_v28  ;;  %v379_v33 = vpack.c.bf16 %v369_v31, %v368_v30  ;;  %v370_v36 = vld [vmem:[#allocation2 + $0x80] sm:$0xff]  ;;  %v371_v37 = vld [vmem:[#allocation2 + $0x88] sm:$0xff]  ;;  %v714_v38 = vpack.c.bf16 %v704_v35, %v703_v34  ;;  %v877_v50 = vld [vmem:[#allocation2 + $0x13] sm:$0xff] }
  0x2d   : > { %v706_v41 = vld [vmem:[#allocation2 + $0x8a] sm:$0xff]  ;;  %v6983_v55 = vld [vmem:[#allocation2 + $0x14] sm:$0xff]  ;;  %v6985_v56 = vld [vmem:[#allocation2 + $0x1c] sm:$0xff] }
  0x2e   : > { %5742 = vmatmul.mubr.msk.bf16.gmra.mrb[8].mxu0 %vm299_vm1, %v403_v39  ;;  %v380_v39 = vpack.c.bf16 %v371_v37, %v370_v36  ;;  %v875_v42 = vld [vmem:[#allocation2 + $0x3] sm:$0xff]  ;;  %v876_v43 = vld [vmem:[#allocation2 + $0xb] sm:$0xff]  ;;  %v881_v63 = vld [vmem:[#allocation2 + $0x33] sm:$0xff] }
  0x2f   : > { %5762 = vmatmul.mubr.msk.bf16.gmra.mrb[8].mxu1 %vm299_vm1, %v408_v40  ;;  %5745 = vmatprep.mubr.msk.bf16.mxu0 %vm6763_vm0, %v6762_v1  ;;  %v705_v40 = vld [vmem:[#allocation2 + $0x82] sm:$0xff]  ;;  %v6972_v49 = vld [vmem:[#allocation2 + $0xc] sm:$0xff]  ;;  %v7010_v4 = vld [vmem:[#allocation2 + $0x34] sm:$0xff] }
  0x30   : > { %5765 = vmatprep.mubr.msk.bf16.mxu1 %vm6763_vm0, %v6762_v1  ;;  %v715_v44 = vpack.c.bf16 %v706_v41, %v705_v40  ;;  %v319_v47 = vld [vmem:[%s6844_s28 + $0x8] sm:$0xff]  ;;  %v6719_v54 = vld [vmem:[%s8506_s2 + $0x30] sm:$0xff]   ;;  %v882_v0 = vld [vmem:[#allocation2 + $0x3b] sm:$0xff]  ;;  %v1265_v37 = vpack.c.bf16 %v6983_v55, %v6972_v49 }
  0x31   : > { %337 = vst.msk [vmem:[#allocation2 + $0x98] sm:$0xff] %vm299_vm1, %v319_v47  ;;  %v1061_v48 = vld [vmem:[#allocation2 + $0x4] sm:$0xff]  ;;  %v7000_v62 = vld [vmem:[#allocation2 + $0x2c] sm:$0xff]  ;;  %v7012_v5 = vld [vmem:[#allocation2 + $0x3c] sm:$0xff] }
  0x32   : > { %v879_v57 = vld [vmem:[#allocation2 + $0x23] sm:$0xff]  ;;  %v884_v7 = vld [vmem:[#allocation2 + $0x4b] sm:$0xff]  ;;  %v885_v12 = vld [vmem:[#allocation2 + $0x53] sm:$0xff]  ;;  %v1267_v47 = vpack.c.bf16 %v7010_v4, %v7000_v62 }
  0x33   : > { %v6998_v61 = vld [vmem:[#allocation2 + $0x24] sm:$0xff]  ;;  %v7024_v11 = vld [vmem:[#allocation2 + $0x4c] sm:$0xff]  ;;  %v886_v13 = vld [vmem:[#allocation2 + $0x5b] sm:$0xff] }
  0x34   : > { %v883_v6 = vld [vmem:[#allocation2 + $0x43] sm:$0xff]  ;;  %v7034_v16 = vld [vmem:[#allocation2 + $0x54] sm:$0xff]  ;;  %v888_v19 = vld [vmem:[#allocation2 + $0x6b] sm:$0xff] }
  0x35   : > { %v7022_v10 = vld [vmem:[#allocation2 + $0x44] sm:$0xff]  ;;  %v7036_v17 = vld [vmem:[#allocation2 + $0x5c] sm:$0xff]  ;;  %v7048_v23 = vld [vmem:[#allocation2 + $0x6c] sm:$0xff] }
  0x36   : > { %5746 = vmatmul.mubr.msk.bf16.gmra.mrb[12].mxu0 %vm299_vm1, %v404_v45  ;;  %v893_v45 = vpack.c.bf16 %v876_v43, %v875_v42  ;;  %v887_v18 = vld [vmem:[#allocation2 + $0x63] sm:$0xff]  ;;  %v889_v24 = vld [vmem:[#allocation2 + $0x73] sm:$0xff]  ;;  %v890_v25 = vld [vmem:[#allocation2 + $0x7b] sm:$0xff]  ;;  %v1266_v42 = vpack.c.bf16 %v6998_v61, %v6985_v56 }
  0x37   : > { %5766 = vmatmul.mubr.msk.bf16.gmra.mrb[12].mxu1 %vm299_vm1, %v409_v46  ;;  %5749 = vmatprep.mubr.msk.bf16.mxu0 %vm6763_vm0, %v6762_v1  ;;  %v6718_v46 = vld [vmem:[%s8506_s2 + $0x28] sm:$0xff]   ;;  %v7058_v28 = vld [vmem:[#allocation2 + $0x74] sm:$0xff]  ;;  %v7060_v29 = vld [vmem:[#allocation2 + $0x7c] sm:$0xff] }
  0x38   : > { %5771 = vmatprep.mubr.msk.bf16.mxu1 %vm6763_vm0, %v6762_v1  ;;  %v7046_v22 = vld [vmem:[#allocation2 + $0x64] sm:$0xff]  ;;  %v7072_v35 = vld [vmem:[#allocation2 + $0x8c] sm:$0xff]  ;;  %v1434_v40 = vld [vmem:[#allocation2 + $0x15] sm:$0xff] }
  0x39   : > { %v891_v30 = vld [vmem:[#allocation2 + $0x83] sm:$0xff]  ;;  %v892_v31 = vld [vmem:[#allocation2 + $0x8b] sm:$0xff] }
  0x3a   : > { %v7070_v34 = vld [vmem:[#allocation2 + $0x84] sm:$0xff] }
  0x3b   : > { %v1087_v36 = vpack.c.bf16 %v7072_v35, %v7070_v34  ;;  %v6721_v43 = vld [vmem:[%s8506_s2 + $0x40] sm:$0xff]  }
  0x3e   : > { %5750 = vmatmul.mubr.msk.bf16.gmra.mrb[16].mxu0 %vm299_vm1, %v405_v51  ;;  %v878_v51 = vld [vmem:[#allocation2 + $0x1b] sm:$0xff] }
  0x3f   : > { %5772 = vmatmul.mubr.msk.bf16.vlgmr.msra.gmra.mrb[16].mxu1 %vm299_vm1, %v372_v52  ;;  %5809 = vmatprep.mubr.msk.bf16.mxu0 %vm6763_vm0, %v6762_v1  ;;  %v1079_v52 = vpack.c.bf16 %v6972_v49, %v1061_v48  ;;  %v1437_v48 = vld [vmem:[#allocation2 + $0x2d] sm:$0xff]  ;;  %v1438_v49 = vld [vmem:[#allocation2 + $0x35] sm:$0xff] }
  0x40   : > { %5846 = vmatpush3.bf16.msra.mxu1 %v6716_v53  ;;  %5775 = vmatprep.mubr.msk.bf16.mxu1 %vm6763_vm0, %v6762_v1  ;;  %v894_v53 = vpack.c.bf16 %v878_v51, %v877_v50  ;;  %v1453_v50 = vpack.c.bf16 %v1438_v49, %v1437_v48  ;;  %v1268_v51 = vpack.c.bf16 %v7022_v10, %v7012_v5 }
  0x41   : > { %5921 = vmatprep.subr.bf16.mxu1 %v6762_v1 }
  0x46   : > { %5810 = vmatmul.mubr.msk.bf16.vlgmr.msra.gmra.mrb[20].mxu0 %vm299_vm1, %v707_v59  ;;  %v1080_v59 = vpack.c.bf16 %v6985_v56, %v6983_v55  ;;  %v1269_v55 = vpack.c.bf16 %v7034_v16, %v7024_v11  ;;  %v1441_v56 = vld [vmem:[#allocation2 + $0x4d] sm:$0xff] }
  0x47   : > { %5776 = vmatmul.mubr.msk.bf16.gmra.mrb[20].mxu1 %vm299_vm1, %v373_v60  ;;  %5884 = vmatpush3.bf16.msra.mxu0 %v6717_v58  ;;  %v880_v58 = vld [vmem:[#allocation2 + $0x2b] sm:$0xff] }
  0x48   : > { %5779 = vmatprep.mubr.msk.bf16.mxu1 %vm6763_vm0, %v6762_v1  ;;  %5813 = vmatprep.mubr.msk.bf16.mxu0 %vm6763_vm0, %v6762_v1  ;;  %v895_v60 = vpack.c.bf16 %v880_v58, %v879_v57  ;;  %v1442_v57 = vld [vmem:[#allocation2 + $0x55] sm:$0xff] }
  0x49   : > { %5959 = vmatprep.subr.bf16.mxu0 %v6762_v1 }
  0x4e   : > { %5814 = vmatmul.mubr.msk.bf16.gmra.mrb[24].mxu0 %vm299_vm1, %v708_v2  ;;  %v1081_v2 = vpack.c.bf16 %v7000_v62, %v6998_v61  ;;  %v1455_v61 = vpack.c.bf16 %v1442_v57, %v1441_v56  ;;  %v6722_v56 = vld [vmem:[%s8506_s2 + $0x48] sm:$0xff]  }
  0x4f   : > { %5780 = vmatmul.mubr.msk.bf16.gmra.mrb[24].mxu1 %vm299_vm1, %v374_v3  ;;  %5817 = vmatprep.mubr.msk.bf16.mxu0 %vm6763_vm0, %v6762_v1  ;;  %v896_v3 = vpack.c.bf16 %v882_v0, %v881_v63  ;;  %v1270_v0 = vpack.c.bf16 %v7046_v22, %v7036_v17 }
  0x50   : > { %5783 = vmatprep.mubr.msk.bf16.mxu1 %vm6763_vm0, %v6762_v1 }
  0x56   : > { %5818 = vmatmul.mubr.msk.bf16.gmra.mrb[28].mxu0 %vm299_vm1, %v709_v8  ;;  %v1082_v8 = vpack.c.bf16 %v7012_v5, %v7010_v4  ;;  %v1443_v5 = vld [vmem:[#allocation2 + $0x5d] sm:$0xff] }
  0x57   : > { %5784 = vmatmul.mubr.msk.bf16.gmra.mrb[28].mxu1 %vm299_vm1, %v375_v9  ;;  %5821 = vmatprep.mubr.msk.bf16.mxu0 %vm6763_vm0, %v6762_v1  ;;  %v897_v9 = vpack.c.bf16 %v884_v7, %v883_v6  ;;  %v1444_v6 = vld [vmem:[#allocation2 + $0x65] sm:$0xff] }
  0x58   : > { %5787 = vmatprep.mubr.msk.bf16.mxu1 %vm6763_vm0, %v6762_v1 }
  0x5e   : > { %5822 = vmatmul.mubr.msk.bf16.gmra.mrb[32].mxu0 %vm299_vm1, %v710_v14  ;;  %v1083_v14 = vpack.c.bf16 %v7024_v11, %v7022_v10  ;;  %v1456_v10 = vpack.c.bf16 %v1444_v6, %v1443_v5 }
  0x5f   : > { %5788 = vmatmul.mubr.msk.bf16.gmra.mrb[32].mxu1 %vm299_vm1, %v376_v15  ;;  %5825 = vmatprep.mubr.msk.bf16.mxu0 %vm6763_vm0, %v6762_v1  ;;  %v898_v15 = vpack.c.bf16 %v886_v13, %v885_v12  ;;  %v1271_v13 = vpack.c.bf16 %v7058_v28, %v7048_v23 }
  0x60   : > { %5791 = vmatprep.mubr.msk.bf16.mxu1 %vm6763_vm0, %v6762_v1 }
  0x66   : > { %5826 = vmatmul.mubr.msk.bf16.gmra.mrb[36].mxu0 %vm299_vm1, %v711_v20  ;;  %v1084_v20 = vpack.c.bf16 %v7036_v17, %v7034_v16  ;;  %v1445_v17 = vld [vmem:[#allocation2 + $0x6d] sm:$0xff] }
  0x67   : > { %5792 = vmatmul.mubr.msk.bf16.gmra.mrb[36].mxu1 %vm299_vm1, %v377_v21  ;;  %5829 = vmatprep.mubr.msk.bf16.mxu0 %vm6763_vm0, %v6762_v1  ;;  %v899_v21 = vpack.c.bf16 %v888_v19, %v887_v18  ;;  %v1446_v18 = vld [vmem:[#allocation2 + $0x75] sm:$0xff] }
  0x68   : > { %5795 = vmatprep.mubr.msk.bf16.mxu1 %vm6763_vm0, %v6762_v1 }
  0x6e   : > { %5830 = vmatmul.mubr.msk.bf16.gmra.mrb[40].mxu0 %vm299_vm1, %v712_v26  ;;  %v1085_v26 = vpack.c.bf16 %v7048_v23, %v7046_v22  ;;  %v1457_v22 = vpack.c.bf16 %v1446_v18, %v1445_v17 }
  0x6f   : > { %5796 = vmatmul.mubr.msk.bf16.gmra.mrb[40].mxu1 %vm299_vm1, %v378_v27  ;;  %5833 = vmatprep.mubr.msk.bf16.mxu0 %vm6763_vm0, %v6762_v1  ;;  %v900_v27 = vpack.c.bf16 %v890_v25, %v889_v24  ;;  %v1272_v25 = vpack.c.bf16 %v7070_v34, %v7060_v29 }
  0x70   : > { %5799 = vmatprep.mubr.msk.bf16.mxu1 %vm6763_vm0, %v6762_v1 }
  0x76   : > { %5834 = vmatmul.mubr.msk.bf16.gmra.mrb[44].mxu0 %vm299_vm1, %v713_v32  ;;  %v1086_v32 = vpack.c.bf16 %v7060_v29, %v7058_v28 }
  0x77   : > { %5800 = vmatmul.mubr.msk.bf16.gmra.mrb[44].mxu1 %vm299_vm1, %v379_v33  ;;  %5837 = vmatprep.mubr.msk.bf16.mxu0 %vm6763_vm0, %v6762_v1  ;;  %v901_v33 = vpack.c.bf16 %v892_v31, %v891_v30  ;;  %v1447_v30 = vld [vmem:[#allocation2 + $0x7d] sm:$0xff]  ;;  %v1448_v31 = vld [vmem:[#allocation2 + $0x85] sm:$0xff] }
  0x78   : > { %5803 = vmatprep.mubr.msk.bf16.mxu1 %vm6763_vm0, %v6762_v1 }
  0x7e   : > { %5838 = vmatmul.mubr.msk.bf16.gmra.mrb[48].mxu0 %vm299_vm1, %v714_v38  ;;  %v6720_v38 = vld [vmem:[%s8506_s2 + $0x38] sm:$0xff]  }
  0x7f   : > { %5804 = vmatmul.mubr.msk.bf16.gmra.mrb[48].mxu1 %vm299_vm1, %v380_v39  ;;  %5841 = vmatprep.mubr.msk.bf16.mxu0 %vm6763_vm0, %v6762_v1  ;;  %v1433_v39 = vld [vmem:[#allocation2 + $0xd] sm:$0xff] }
  0x80   : > { %5847 = vmatprep.mubr.msk.bf16.mxu1 %vm6763_vm0, %v6762_v1  ;;  %v1451_v41 = vpack.c.bf16 %v1434_v40, %v1433_v39 }
  0x86   : > { %5842 = vmatmul.mubr.msk.bf16.gmra.mrb[52].mxu0 %vm299_vm1, %v715_v44  ;;  %v1435_v44 = vld [vmem:[#allocation2 + $0x1d] sm:$0xff] }
  0x87   : > { %5848 = vmatmul.mubr.msk.bf16.vlgmr.msra.gmra.mrb[52].mxu1 %vm299_vm1, %v893_v45  ;;  %5885 = vmatprep.mubr.msk.bf16.mxu0 %vm6763_vm0, %v6762_v1  ;;  %v1436_v45 = vld [vmem:[#allocation2 + $0x25] sm:$0xff] }
  0x88   : > { %5922 = vmatpush3.bf16.msra.mxu1 %v6718_v46  ;;  %5851 = vmatprep.mubr.msk.bf16.mxu1 %vm6763_vm0, %v6762_v1  ;;  %v1452_v46 = vpack.c.bf16 %v1436_v45, %v1435_v44  ;;  %v1450_v44 = vld [vmem:[#allocation2 + $0x95] sm:$0xff] }
  0x89   : > { %5997 = vmatprep.subr.bf16.mxu1 %v6762_v1  ;;  %v1619_v45 = vld [vmem:[#allocation2 + $0xe] sm:$0xff] }
  0x8e   : > { %5886 = vmatmul.mubr.msk.bf16.vlgmr.msra.gmra.mrb[56].mxu0 %vm299_vm1, %v1079_v52  ;;  %v1439_v52 = vld [vmem:[#allocation2 + $0x3d] sm:$0xff] }
  0x8f   : > { %5852 = vmatmul.mubr.msk.bf16.gmra.mrb[56].mxu1 %vm299_vm1, %v894_v53  ;;  %5960 = vmatpush3.bf16.msra.mxu0 %v6719_v54  ;;  %v1440_v53 = vld [vmem:[#allocation2 + $0x45] sm:$0xff] }
  0x90   : > { %5855 = vmatprep.mubr.msk.bf16.mxu1 %vm6763_vm0, %v6762_v1  ;;  %5889 = vmatprep.mubr.msk.bf16.mxu0 %vm6763_vm0, %v6762_v1  ;;  %v1454_v54 = vpack.c.bf16 %v1440_v53, %v1439_v52 }
  0x91   : > { %6035 = vmatprep.subr.bf16.mxu0 %v6762_v1 }
  0x96   : > { %5890 = vmatmul.mubr.msk.bf16.gmra.mrb[60].mxu0 %vm299_vm1, %v1080_v59 }
  0x97   : > { %5856 = vmatmul.mubr.msk.bf16.gmra.mrb[60].mxu1 %vm299_vm1, %v895_v60  ;;  %5893 = vmatprep.mubr.msk.bf16.mxu0 %vm6763_vm0, %v6762_v1 }
  0x98   : > { %5859 = vmatprep.mubr.msk.bf16.mxu1 %vm6763_vm0, %v6762_v1 }
  0x9e   : > { %5894 = vmatmul.mubr.msk.bf16.gmra.mrb[64].mxu0 %vm299_vm1, %v1081_v2 }
  0x9f   : > { %5860 = vmatmul.mubr.msk.bf16.gmra.mrb[64].mxu1 %vm299_vm1, %v896_v3  ;;  %5897 = vmatprep.mubr.msk.bf16.mxu0 %vm6763_vm0, %v6762_v1 }
  0xa0   : > { %5863 = vmatprep.mubr.msk.bf16.mxu1 %vm6763_vm0, %v6762_v1 }
  0xa6   : > { %5898 = vmatmul.mubr.msk.bf16.gmra.mrb[68].mxu0 %vm299_vm1, %v1082_v8 }
  0xa7   : > { %5864 = vmatmul.mubr.msk.bf16.gmra.mrb[68].mxu1 %vm299_vm1, %v897_v9  ;;  %5901 = vmatprep.mubr.msk.bf16.mxu0 %vm6763_vm0, %v6762_v1 }
  0xa8   : > { %5867 = vmatprep.mubr.msk.bf16.mxu1 %vm6763_vm0, %v6762_v1 }
  0xae   : > { %5902 = vmatmul.mubr.msk.bf16.gmra.mrb[72].mxu0 %vm299_vm1, %v1083_v14 }
  0xaf   : > { %5868 = vmatmul.mubr.msk.bf16.gmra.mrb[72].mxu1 %vm299_vm1, %v898_v15  ;;  %5905 = vmatprep.mubr.msk.bf16.mxu0 %vm6763_vm0, %v6762_v1 }
  0xb0   : > { %5871 = vmatprep.mubr.msk.bf16.mxu1 %vm6763_vm0, %v6762_v1 }
  0xb6   : > { %5906 = vmatmul.mubr.msk.bf16.gmra.mrb[76].mxu0 %vm299_vm1, %v1084_v20 }
  0xb7   : > { %5872 = vmatmul.mubr.msk.bf16.gmra.mrb[76].mxu1 %vm299_vm1, %v899_v21  ;;  %5909 = vmatprep.mubr.msk.bf16.mxu0 %vm6763_vm0, %v6762_v1 }
  0xb8   : > { %5875 = vmatprep.mubr.msk.bf16.mxu1 %vm6763_vm0, %v6762_v1 }
  0xbe   : > { %5910 = vmatmul.mubr.msk.bf16.gmra.mrb[80].mxu0 %vm299_vm1, %v1085_v26 }
  0xbf   : > { %5876 = vmatmul.mubr.msk.bf16.gmra.mrb[80].mxu1 %vm299_vm1, %v900_v27  ;;  %5913 = vmatprep.mubr.msk.bf16.mxu0 %vm6763_vm0, %v6762_v1 }
  0xc0   : > { %5879 = vmatprep.mubr.msk.bf16.mxu1 %vm6763_vm0, %v6762_v1 }
  0xc6   : > { %5914 = vmatmul.mubr.msk.bf16.gmra.mrb[84].mxu0 %vm299_vm1, %v1086_v32  ;;  %v1264_v32 = vld [vmem:[#allocation2 + $0x94] sm:$0xff] }
  0xc7   : > { %5880 = vmatmul.mubr.msk.bf16.gmra.mrb[84].mxu1 %vm299_vm1, %v901_v33  ;;  %5917 = vmatprep.mubr.msk.bf16.mxu0 %vm6763_vm0, %v6762_v1  ;;  %v1273_v39 = vpack.c.bf16 %v1264_v32, %v7072_v35 }
  0xc8   : > { %5923 = vmatprep.mubr.msk.bf16.mxu1 %vm6763_vm0, %v6762_v1 }
  0xce   : > { %5918 = vmatmul.mubr.msk.bf16.gmra.mrb[88].mxu0 %vm299_vm1, %v1087_v36  ;;  %v1458_v36 = vpack.c.bf16 %v1448_v31, %v1447_v30 }
  0xcf   : > { %5924 = vmatmul.mubr.msk.bf16.vlgmr.msra.gmra.mrb[88].mxu1 %vm299_vm1, %v1265_v37  ;;  %5961 = vmatprep.mubr.msk.bf16.mxu0 %vm6763_vm0, %v6762_v1 }
  0xd0   : > { %5998 = vmatpush3.bf16.msra.mxu1 %v6720_v38  ;;  %5927 = vmatprep.mubr.msk.bf16.mxu1 %vm6763_vm0, %v6762_v1 }
  0xd1   : > { %6073 = vmatprep.subr.bf16.mxu1 %v6762_v1 }
  0xd6   : > { %5962 = vmatmul.mubr.msk.bf16.vlgmr.msra.gmra.mrb[92].mxu0 %vm299_vm1, %v1451_v41 }
  0xd7   : > { %5928 = vmatmul.mubr.msk.bf16.gmra.mrb[92].mxu1 %vm299_vm1, %v1266_v42  ;;  %6036 = vmatpush3.bf16.msra.mxu0 %v6721_v43  ;;  %v1449_v43 = vld [vmem:[#allocation2 + $0x8d] sm:$0xff] }
  0xd8   : > { %5931 = vmatprep.mubr.msk.bf16.mxu1 %vm6763_vm0, %v6762_v1  ;;  %5965 = vmatprep.mubr.msk.bf16.mxu0 %vm6763_vm0, %v6762_v1  ;;  %v1459_v49 = vpack.c.bf16 %v1450_v44, %v1449_v43 }
  0xd9   : > { %6111 = vmatprep.subr.bf16.mxu0 %v6762_v1 }
  0xde   : > { %5966 = vmatmul.mubr.msk.bf16.gmra.mrb[96].mxu0 %vm299_vm1, %v1452_v46  ;;  %v1620_v46 = vld [vmem:[#allocation2 + $0x16] sm:$0xff] }
  0xdf   : > { %5932 = vmatmul.mubr.msk.bf16.gmra.mrb[96].mxu1 %vm299_vm1, %v1267_v47  ;;  %5969 = vmatprep.mubr.msk.bf16.mxu0 %vm6763_vm0, %v6762_v1  ;;  %v1637_v53 = vpack.c.bf16 %v1620_v46, %v1619_v45 }
  0xe0   : > { %5935 = vmatprep.mubr.msk.bf16.mxu1 %vm6763_vm0, %v6762_v1 }
  0xe6   : > { %5970 = vmatmul.mubr.msk.bf16.gmra.mrb[100].mxu0 %vm299_vm1, %v1453_v50 }
  0xe7   : > { %5936 = vmatmul.mubr.msk.bf16.gmra.mrb[100].mxu1 %vm299_vm1, %v1268_v51  ;;  %5973 = vmatprep.mubr.msk.bf16.mxu0 %vm6763_vm0, %v6762_v1 }
  0xe8   : > { %5939 = vmatprep.mubr.msk.bf16.mxu1 %vm6763_vm0, %v6762_v1 }
  0xee   : > { %5974 = vmatmul.mubr.msk.bf16.gmra.mrb[104].mxu0 %vm299_vm1, %v1454_v54 }
  0xef   : > { %5940 = vmatmul.mubr.msk.bf16.gmra.mrb[104].mxu1 %vm299_vm1, %v1269_v55  ;;  %5977 = vmatprep.mubr.msk.bf16.mxu0 %vm6763_vm0, %v6762_v1 }
  0xf0   : > { %5943 = vmatprep.mubr.msk.bf16.mxu1 %vm6763_vm0, %v6762_v1 }
  0xf1   : > { %v7126_v58 = vpop.f32.mrb[0].mxu0 }
  0xf2   : > { %v5735_v59 = vpop.f32.mrb[1].mxu0  ;;  %v7128_v60 = vpop.f32.mrb[0].mxu1 }
  0xf3   : > { %v7130_v62 = vpop.f32.mrb[2].mxu0  ;;  %v5755_v63 = vpop.f32.mrb[1].mxu1 }
  0xf4   : > { %v5736_v2 = vpop.f32.mrb[3].mxu0  ;;  %v7134_v3 = vpop.f32.mrb[2].mxu1  ;;  %v1621_v63 = vld [vmem:[#allocation2 + $0x1e] sm:$0xff] }
  0xf5   : > { %v5756_v4 = vpop.f32.mrb[3].mxu1 }
  0xf6   : > { %5978 = vmatmul.mubr.msk.bf16.gmra.mrb[108].mxu0 %vm299_vm1, %v1455_v61  ;;  %v1806_v61 = vld [vmem:[#allocation2 + $0x17] sm:$0xff] }
  0xf7   : > { %5944 = vmatmul.mubr.msk.bf16.gmra.mrb[108].mxu1 %vm299_vm1, %v1270_v0  ;;  %5981 = vmatprep.mubr.msk.bf16.mxu0 %vm6763_vm0, %v6762_v1  ;;  %v1622_v0 = vld [vmem:[#allocation2 + $0x26] sm:$0xff] }
  0xf8   : > { %5947 = vmatprep.mubr.msk.bf16.mxu1 %vm6763_vm0, %v6762_v1 }
  0xf9   : > { %v7142_v7 = vpop.f32.mrb[4].mxu0 }
  0xfa   : > { %v5739_v8 = vpop.f32.mrb[5].mxu0  ;;  %v7144_v9 = vpop.f32.mrb[4].mxu1 }
  0xfb   : > { %v7146_v11 = vpop.f32.mrb[6].mxu0  ;;  %v5759_v12 = vpop.f32.mrb[5].mxu1 }
  0xfc   : > { %v5740_v14 = vpop.f32.mrb[7].mxu0  ;;  %v7150_v15 = vpop.f32.mrb[6].mxu1 }
  0xfd   : > { %v5760_v16 = vpop.f32.mrb[7].mxu1  ;;  %v6723_v14 = vld [vmem:[%s8506_s2 + $0x50] sm:$0xff]  }
  0xfe   : > { %5982 = vmatmul.mubr.msk.bf16.gmra.mrb[112].mxu0 %vm299_vm1, %v1456_v10 }
  0xff   : > { %5948 = vmatmul.mubr.msk.bf16.gmra.mrb[112].mxu1 %vm299_vm1, %v1271_v13  ;;  %5985 = vmatprep.mubr.msk.bf16.mxu0 %vm6763_vm0, %v6762_v1  ;;  %v1638_v13 = vpack.c.bf16 %v1622_v0, %v1621_v63 }
 0x100   : > { %5951 = vmatprep.mubr.msk.bf16.mxu1 %vm6763_vm0, %v6762_v1 }
 0x101   : > { %v7158_v19 = vpop.f32.mrb[8].mxu0 }
 0x102   : > { %v5743_v20 = vpop.f32.mrb[9].mxu0  ;;  %v7160_v21 = vpop.f32.mrb[8].mxu1 }
 0x103   : > { %v7162_v23 = vpop.f32.mrb[10].mxu0  ;;  %v5763_v24 = vpop.f32.mrb[9].mxu1  ;;  %v320_v20 = vld [vmem:[%s6844_s28 + $0x10] sm:$0xff] }
 0x104   : > { %v5744_v26 = vpop.f32.mrb[11].mxu0  ;;  %v7166_v27 = vpop.f32.mrb[10].mxu1  ;;  %338 = vst.msk [vmem:[#allocation2 + $0xa0] sm:$0xff] %vm299_vm1, %v320_v20 }
 0x105   : > { %v5764_v28 = vpop.f32.mrb[11].mxu1  ;;  %v1623_v26 = vld [vmem:[#allocation2 + $0x2e] sm:$0xff] }
 0x106   : > { %5986 = vmatmul.mubr.msk.bf16.gmra.mrb[116].mxu0 %vm299_vm1, %v1457_v22  ;;  %v1624_v28 = vld [vmem:[#allocation2 + $0x36] sm:$0xff] }
 0x107   : > { %5952 = vmatmul.mubr.msk.bf16.gmra.mrb[116].mxu1 %vm299_vm1, %v1272_v25  ;;  %5989 = vmatprep.mubr.msk.bf16.mxu0 %vm6763_vm0, %v6762_v1  ;;  %v1808_v25 = vld [vmem:[#allocation2 + $0x27] sm:$0xff] }
 0x108   : > { %5955 = vmatprep.mubr.msk.bf16.mxu1 %vm6763_vm0, %v6762_v1 }
 0x109   : > { %v7174_v33 = vpop.f32.mrb[12].mxu0 }
 0x10a   : > { %v5747_v29 = vpop.f32.mrb[13].mxu0  ;;  %v7176_v34 = vpop.f32.mrb[12].mxu1 }
 0x10b   : > { %v7178_v37 = vpop.f32.mrb[14].mxu0  ;;  %v5767_v38 = vpop.f32.mrb[13].mxu1 }
 0x10c   : > { %v5748_v40 = vpop.f32.mrb[15].mxu0  ;;  %v7181_v41 = vpop.f32.mrb[14].mxu1 }
 0x10d   : > { %v5768_v42 = vpop.f32.mrb[15].mxu1  ;;  %v1639_v40 = vpack.c.bf16 %v1624_v28, %v1623_v26  ;;  %v1813_v28 = vld [vmem:[#allocation2 + $0x4f] sm:$0xff] }
 0x10e   : > { %5990 = vmatmul.mubr.msk.bf16.gmra.mrb[120].mxu0 %vm299_vm1, %v1458_v36 }
 0x10f   : > { %5956 = vmatmul.mubr.msk.bf16.gmra.mrb[120].mxu1 %vm299_vm1, %v1273_v39  ;;  %5993 = vmatprep.mubr.msk.bf16.mxu0 %vm6763_vm0, %v6762_v1 }
 0x110   : > { %5999 = vmatprep.mubr.msk.bf16.mxu1 %vm6763_vm0, %v6762_v1 }
 0x111   : > { %v7189_v47 = vpop.f32.mrb[16].mxu0 }
 0x112   : > { %v618_v35 = vpop.f32.mrb[16].mxu1  ;;  %v5751_v48 = vpop.f32.mrb[17].mxu0 }
 0x113   : > { %v619_v50 = vadd.f32 %v618_v35, %v7126_v58  ;;  %v5773_v51 = vpop.f32.mrb[17].mxu1  ;;  %v7192_v52 = vpop.f32.mrb[18].mxu0  ;;  %v1805_v58 = vld [vmem:[#allocation2 + $0xf] sm:$0xff]  ;;  %v1810_v48 = vld [vmem:[#allocation2 + $0x37] sm:$0xff] }
 0x114   : > { %v621_v54 = vpop.f32.mrb[18].mxu1  ;;  %v5752_v55 = vpop.f32.mrb[19].mxu0  ;;  %v1823_v6 = vpack.c.bf16 %v1806_v61, %v1805_v58  ;;  %v1809_v35 = vld [vmem:[#allocation2 + $0x2f] sm:$0xff] }
 0x115   : > { %v622_v57 = vadd.f32 %v621_v54, %v7130_v62  ;;  %v5774_v59 = vpop.f32.mrb[19].mxu1  ;;  %v1825_v54 = vpack.c.bf16 %v1810_v48, %v1809_v35 }
 0x116   : > { %5994 = vmatmul.mubr.msk.bf16.gmra.mrb[124].mxu0 %vm299_vm1, %v1459_v49  ;;  %v1626_v49 = vld [vmem:[#allocation2 + $0x46] sm:$0xff] }
 0x117   : > { %6000 = vmatmul.mubr.msk.bf16.vlgmr.msra.gmra.mrb[124].mxu1 %vm299_vm1, %v1637_v53  ;;  %6037 = vmatprep.mubr.msk.bf16.mxu0 %vm6763_vm0, %v6762_v1 }
 0x118   : > { %6074 = vmatpush3.bf16.msra.mxu1 %v6722_v56  ;;  %6003 = vmatprep.mubr.msk.bf16.mxu1 %vm6763_vm0, %v6762_v1 }
 0x119   : > { %v786_v2 = vpop.f32.mrb[20].mxu0  ;;  %6149 = vmatprep.subr.bf16.mxu1 %v6762_v1 }
 0x11a   : > { %v626_v62 = vpop.f32.mrb[20].mxu1  ;;  %v7205_v4 = vadd.f32 %v786_v2, %v619_v50  ;;  %v5811_v5 = vpop.f32.mrb[21].mxu0 }
 0x11b   : > { %v627_v8 = vadd.f32 %v626_v62, %v7142_v7  ;;  %v5777_v10 = vpop.f32.mrb[21].mxu1  ;;  %v789_v12 = vpop.f32.mrb[22].mxu0  ;;  %v1807_v7 = vld [vmem:[#allocation2 + $0x1f] sm:$0xff]  ;;  %v1812_v5 = vld [vmem:[#allocation2 + $0x47] sm:$0xff] }
 0x11c   : > { %v629_v16 = vpop.f32.mrb[22].mxu1  ;;  %v7211_v17 = vadd.f32 %v789_v12, %v622_v57  ;;  %v5812_v18 = vpop.f32.mrb[23].mxu0  ;;  %v1824_v29 = vpack.c.bf16 %v1808_v25, %v1807_v7  ;;  %v1811_v62 = vld [vmem:[#allocation2 + $0x3f] sm:$0xff] }
 0x11d   : > { %v630_v22 = vadd.f32 %v629_v16, %v7146_v11  ;;  %v5778_v24 = vpop.f32.mrb[23].mxu1 }
 0x11e   : > { %6038 = vmatmul.mubr.msk.bf16.vlgmr.msra.gmra.mrb[128].mxu0 %vm299_vm1, %v1823_v6  ;;  %v1628_v6 = vld [vmem:[#allocation2 + $0x56] sm:$0xff] }
 0x11f   : > { %6004 = vmatmul.mubr.msk.bf16.gmra.mrb[128].mxu1 %vm299_vm1, %v1638_v13  ;;  %6112 = vmatpush3.bf16.msra.mxu0 %v6723_v14  ;;  %v1826_v13 = vpack.c.bf16 %v1812_v5, %v1811_v62 }
 0x120   : > { %6007 = vmatprep.mubr.msk.bf16.mxu1 %vm6763_vm0, %v6762_v1  ;;  %6041 = vmatprep.mubr.msk.bf16.mxu0 %vm6763_vm0, %v6762_v1 }
 0x121   : > { %v794_v30 = vpop.f32.mrb[24].mxu0  ;;  %6187 = vmatprep.subr.bf16.mxu0 %v6762_v1 }
 0x122   : > { %v634_v11 = vpop.f32.mrb[24].mxu1  ;;  %v7223_v31 = vadd.f32 %v794_v30, %v627_v8  ;;  %v5815_v32 = vpop.f32.mrb[25].mxu0  ;;  %v1814_v30 = vld [vmem:[#allocation2 + $0x57] sm:$0xff] }
 0x123   : > { %v635_v36 = vadd.f32 %v634_v11, %v7158_v19  ;;  %v5781_v38 = vpop.f32.mrb[25].mxu1  ;;  %v797_v39 = vpop.f32.mrb[26].mxu0  ;;  %v1625_v19 = vld [vmem:[#allocation2 + $0x3e] sm:$0xff]  ;;  %v1630_v11 = vld [vmem:[#allocation2 + $0x66] sm:$0xff] }
 0x124   : > { %v637_v42 = vpop.f32.mrb[26].mxu1  ;;  %v7226_v43 = vadd.f32 %v797_v39, %v630_v22  ;;  %v5816_v44 = vpop.f32.mrb[27].mxu0  ;;  %v1640_v59 = vpack.c.bf16 %v1626_v49, %v1625_v19  ;;  %v1827_v38 = vpack.c.bf16 %v1814_v30, %v1813_v28  ;;  %v1815_v49 = vld [vmem:[#allocation2 + $0x5f] sm:$0xff] }
 0x125   : > { %v638_v45 = vadd.f32 %v637_v42, %v7162_v23  ;;  %v5782_v46 = vpop.f32.mrb[27].mxu1 }
 0x126   : > { %6042 = vmatmul.mubr.msk.bf16.gmra.mrb[132].mxu0 %vm299_vm1, %v1824_v29 }
 0x127   : > { %6008 = vmatmul.mubr.msk.bf16.gmra.mrb[132].mxu1 %vm299_vm1, %v1639_v40  ;;  %6045 = vmatprep.mubr.msk.bf16.mxu0 %vm6763_vm0, %v6762_v1 }
 0x128   : > { %6011 = vmatprep.mubr.msk.bf16.mxu1 %vm6763_vm0, %v6762_v1 }
 0x129   : > { %v802_v50 = vpop.f32.mrb[28].mxu0 }
 0x12a   : > { %v642_v51 = vpop.f32.mrb[28].mxu1  ;;  %v7235_v53 = vadd.f32 %v802_v50, %v635_v36  ;;  %v5819_v23 = vpop.f32.mrb[29].mxu0  ;;  %v1816_v50 = vld [vmem:[#allocation2 + $0x67] sm:$0xff] }
 0x12b   : > { %v643_v55 = vadd.f32 %v642_v51, %v7174_v33  ;;  %v5785_v56 = vpop.f32.mrb[29].mxu1  ;;  %v805_v57 = vpop.f32.mrb[30].mxu0  ;;  %v1627_v33 = vld [vmem:[#allocation2 + $0x4e] sm:$0xff]  ;;  %v1632_v51 = vld [vmem:[#allocation2 + $0x76] sm:$0xff] }
 0x12c   : > { %v645_v58 = vpop.f32.mrb[30].mxu1  ;;  %v7238_v61 = vadd.f32 %v805_v57, %v638_v45  ;;  %v5820_v63 = vpop.f32.mrb[31].mxu0  ;;  %v1641_v20 = vpack.c.bf16 %v1628_v6, %v1627_v33  ;;  %v1828_v56 = vpack.c.bf16 %v1816_v50, %v1815_v49  ;;  %v1817_v6 = vld [vmem:[#allocation2 + $0x6f] sm:$0xff] }
 0x12d   : > { %v646_v0 = vadd.f32 %v645_v58, %v7178_v37  ;;  %v5786_v2 = vpop.f32.mrb[31].mxu1 }
 0x12e   : > { %6046 = vmatmul.mubr.msk.bf16.gmra.mrb[136].mxu0 %vm299_vm1, %v1825_v54 }
 0x12f   : > { %6012 = vmatmul.mubr.msk.bf16.gmra.mrb[136].mxu1 %vm299_vm1, %v1640_v59  ;;  %6049 = vmatprep.mubr.msk.bf16.mxu0 %vm6763_vm0, %v6762_v1 }
 0x130   : > { %6015 = vmatprep.mubr.msk.bf16.mxu1 %vm6763_vm0, %v6762_v1 }
 0x131   : > { %v810_v8 = vpop.f32.mrb[32].mxu0 }
 0x132   : > { %v650_v10 = vpop.f32.mrb[32].mxu1  ;;  %v7247_v12 = vadd.f32 %v810_v8, %v643_v55  ;;  %v5823_v37 = vpop.f32.mrb[33].mxu0  ;;  %v1818_v8 = vld [vmem:[#allocation2 + $0x77] sm:$0xff] }
 0x133   : > { %v651_v14 = vadd.f32 %v650_v10, %v7189_v47  ;;  %v5789_v16 = vpop.f32.mrb[33].mxu1  ;;  %v813_v18 = vpop.f32.mrb[34].mxu0  ;;  %v1629_v47 = vld [vmem:[#allocation2 + $0x5e] sm:$0xff]  ;;  %v1634_v10 = vld [vmem:[#allocation2 + $0x86] sm:$0xff] }
 0x134   : > { %v653_v22 = vpop.f32.mrb[34].mxu1  ;;  %v7250_v24 = vadd.f32 %v813_v18, %v646_v0  ;;  %v5824_v7 = vpop.f32.mrb[35].mxu0  ;;  %v1642_v44 = vpack.c.bf16 %v1630_v11, %v1629_v47  ;;  %v1829_v16 = vpack.c.bf16 %v1818_v8, %v1817_v6  ;;  %v1819_v11 = vld [vmem:[#allocation2 + $0x7f] sm:$0xff] }
 0x135   : > { %v654_v25 = vadd.f32 %v653_v22, %v7192_v52  ;;  %v5790_v26 = vpop.f32.mrb[35].mxu1  ;;  %v6724_v8 = vld [vmem:[%s8506_s2 + $0x58] sm:$0xff]  }
 0x136   : > { %6050 = vmatmul.mubr.msk.bf16.gmra.mrb[140].mxu0 %vm299_vm1, %v1826_v13 }
 0x137   : > { %6016 = vmatmul.mubr.msk.bf16.gmra.mrb[140].mxu1 %vm299_vm1, %v1641_v20  ;;  %6053 = vmatprep.mubr.msk.bf16.mxu0 %vm6763_vm0, %v6762_v1 }
 0x138   : > { %6019 = vmatprep.mubr.msk.bf16.mxu1 %vm6763_vm0, %v6762_v1 }
 0x139   : > { %v818_v32 = vpop.f32.mrb[36].mxu0 }
 0x13a   : > { %v658_v29 = vpop.f32.mrb[36].mxu1  ;;  %v7259_v36 = vadd.f32 %v818_v32, %v651_v14  ;;  %v5827_v52 = vpop.f32.mrb[37].mxu0  ;;  %v1820_v32 = vld [vmem:[#allocation2 + $0x87] sm:$0xff] }
 0x13b   : > { %v659_v39 = vadd.f32 %v658_v29, %v7128_v60  ;;  %v5793_v40 = vpop.f32.mrb[37].mxu1  ;;  %v821_v42 = vpop.f32.mrb[38].mxu0  ;;  %v1631_v60 = vld [vmem:[#allocation2 + $0x6e] sm:$0xff]  ;;  %v1636_v29 = vld [vmem:[#allocation2 + $0x96] sm:$0xff] }
 0x13c   : > { %v661_v45 = vpop.f32.mrb[38].mxu1  ;;  %v7262_v46 = vadd.f32 %v821_v42, %v654_v25  ;;  %v5828_v35 = vpop.f32.mrb[39].mxu0  ;;  %v1643_v63 = vpack.c.bf16 %v1632_v51, %v1631_v60  ;;  %v1830_v40 = vpack.c.bf16 %v1820_v32, %v1819_v11  ;;  %v1821_v51 = vld [vmem:[#allocation2 + $0x8f] sm:$0xff] }
 0x13d   : > { %v662_v48 = vadd.f32 %v661_v45, %v7134_v3  ;;  %v5794_v19 = vpop.f32.mrb[39].mxu1 }
 0x13e   : > { %6054 = vmatmul.mubr.msk.bf16.gmra.mrb[144].mxu0 %vm299_vm1, %v1827_v38 }
 0x13f   : > { %6020 = vmatmul.mubr.msk.bf16.gmra.mrb[144].mxu1 %vm299_vm1, %v1642_v44  ;;  %6057 = vmatprep.mubr.msk.bf16.mxu0 %vm6763_vm0, %v6762_v1 }
 0x140   : > { %6023 = vmatprep.mubr.msk.bf16.mxu1 %vm6763_vm0, %v6762_v1 }
 0x141   : > { %v826_v23 = vpop.f32.mrb[40].mxu0 }
 0x142   : > { %v666_v54 = vpop.f32.mrb[40].mxu1  ;;  %v7271_v55 = vadd.f32 %v826_v23, %v659_v39  ;;  %v5831_v3 = vpop.f32.mrb[41].mxu0  ;;  %v1822_v23 = vld [vmem:[#allocation2 + $0x97] sm:$0xff] }
 0x143   : > { %v667_v57 = vadd.f32 %v666_v54, %v7144_v9  ;;  %v5797_v59 = vpop.f32.mrb[41].mxu1  ;;  %v829_v58 = vpop.f32.mrb[42].mxu0  ;;  %v1633_v9 = vld [vmem:[#allocation2 + $0x7e] sm:$0xff] }
 0x144   : > { %v669_v0 = vpop.f32.mrb[42].mxu1  ;;  %v7274_v2 = vadd.f32 %v829_v58, %v662_v48  ;;  %v5832_v62 = vpop.f32.mrb[43].mxu0  ;;  %v1644_v7 = vpack.c.bf16 %v1634_v10, %v1633_v9  ;;  %v1992_v54 = vld [vmem:[#allocation2 + $0x18] sm:$0xff]  ;;  %v1831_v59 = vpack.c.bf16 %v1822_v23, %v1821_v51 }
 0x145   : > { %v670_v5 = vadd.f32 %v669_v0, %v7150_v15  ;;  %v5798_v33 = vpop.f32.mrb[43].mxu1 }
 0x146   : > { %6058 = vmatmul.mubr.msk.bf16.gmra.mrb[148].mxu0 %vm299_vm1, %v1828_v56 }
 0x147   : > { %6024 = vmatmul.mubr.msk.bf16.gmra.mrb[148].mxu1 %vm299_vm1, %v1643_v63  ;;  %6061 = vmatprep.mubr.msk.bf16.mxu0 %vm6763_vm0, %v6762_v1 }
 0x148   : > { %6027 = vmatprep.mubr.msk.bf16.mxu1 %vm6763_vm0, %v6762_v1 }
 0x149   : > { %v834_v37 = vpop.f32.mrb[44].mxu0 }
 0x14a   : > { %v674_v13 = vpop.f32.mrb[44].mxu1  ;;  %v7283_v14 = vadd.f32 %v834_v37, %v667_v57  ;;  %v5835_v15 = vpop.f32.mrb[45].mxu0  ;;  %v321_v37 = vld [vmem:[%s6844_s28 + $0x18] sm:$0xff] }
 0x14b   : > { %v675_v18 = vadd.f32 %v674_v13, %v7160_v21  ;;  %v5801_v20 = vpop.f32.mrb[45].mxu1  ;;  %v837_v22 = vpop.f32.mrb[46].mxu0  ;;  %v1635_v21 = vld [vmem:[#allocation2 + $0x8e] sm:$0xff]  ;;  %339 = vst.msk [vmem:[#allocation2 + $0xa8] sm:$0xff] %vm299_vm1, %v321_v37 }
 0x14c   : > { %v677_v25 = vpop.f32.mrb[46].mxu1  ;;  %v7286_v26 = vadd.f32 %v837_v22, %v670_v5  ;;  %v5836_v28 = vpop.f32.mrb[47].mxu0  ;;  %v1645_v35 = vpack.c.bf16 %v1636_v29, %v1635_v21  ;;  %v1994_v13 = vld [vmem:[#allocation2 + $0x28] sm:$0xff] }
 0x14d   : > { %v678_v30 = vadd.f32 %v677_v25, %v7166_v27  ;;  %v5802_v47 = vpop.f32.mrb[47].mxu1 }
 0x14e   : > { %6062 = vmatmul.mubr.msk.bf16.gmra.mrb[152].mxu0 %vm299_vm1, %v1829_v16 }
 0x14f   : > { %6028 = vmatmul.mubr.msk.bf16.gmra.mrb[152].mxu1 %vm299_vm1, %v1644_v7  ;;  %6065 = vmatprep.mubr.msk.bf16.mxu0 %vm6763_vm0, %v6762_v1 }
 0x150   : > { %6031 = vmatprep.mubr.msk.bf16.mxu1 %vm6763_vm0, %v6762_v1 }
 0x151   : > { %v842_v52 = vpop.f32.mrb[48].mxu0 }
 0x152   : > { %v682_v38 = vpop.f32.mrb[48].mxu1  ;;  %v7295_v39 = vadd.f32 %v842_v52, %v675_v18  ;;  %v5839_v27 = vpop.f32.mrb[49].mxu0  ;;  %v1996_v52 = vld [vmem:[#allocation2 + $0x38] sm:$0xff] }
 0x153   : > { %v683_v42 = vadd.f32 %v682_v38, %v7176_v34  ;;  %v5805_v44 = vpop.f32.mrb[49].mxu1  ;;  %v845_v45 = vpop.f32.mrb[50].mxu0  ;;  %v1991_v34 = vld [vmem:[#allocation2 + $0x10] sm:$0xff] }
 0x154   : > { %v685_v48 = vpop.f32.mrb[50].mxu1  ;;  %v7298_v19 = vadd.f32 %v845_v45, %v678_v30  ;;  %v5840_v49 = vpop.f32.mrb[51].mxu0  ;;  %v2009_v62 = vpack.c.bf16 %v1992_v54, %v1991_v34  ;;  %v6725_v30 = vld [vmem:[%s8506_s2 + $0x60] sm:$0xff]  }
 0x155   : > { %v686_v50 = vadd.f32 %v685_v48, %v7181_v41  ;;  %v5806_v60 = vpop.f32.mrb[51].mxu1  ;;  %v1997_v34 = vld [vmem:[#allocation2 + $0x40] sm:$0xff] }
 0x156   : > { %6066 = vmatmul.mubr.msk.bf16.gmra.mrb[156].mxu0 %vm299_vm1, %v1830_v40 }
 0x157   : > { %6032 = vmatmul.mubr.msk.bf16.gmra.mrb[156].mxu1 %vm299_vm1, %v1645_v35  ;;  %6069 = vmatprep.mubr.msk.bf16.mxu0 %vm6763_vm0, %v6762_v1 }
 0x158   : > { %6075 = vmatprep.mubr.msk.bf16.mxu1 %vm6763_vm0, %v6762_v1 }
 0x159   : > { %v850_v3 = vpop.f32.mrb[52].mxu0 }
 0x15a   : > { %v7307_v56 = vadd.f32 %v850_v3, %v683_v42  ;;  %v972_v41 = vpop.f32.mrb[52].mxu1  ;;  %v5843_v57 = vpop.f32.mrb[53].mxu0 }
 0x15b   : > { %v1043_v58 = vadd.f32 %v972_v41, %v7205_v4  ;;  %v5849_v63 = vpop.f32.mrb[53].mxu1  ;;  %v853_v0 = vpop.f32.mrb[54].mxu0  ;;  %v1993_v4 = vld [vmem:[#allocation2 + $0x20] sm:$0xff] }
 0x15c   : > { %v7310_v5 = vadd.f32 %v853_v0, %v686_v50  ;;  %v975_v33 = vpop.f32.mrb[54].mxu1  ;;  %v5844_v6 = vpop.f32.mrb[55].mxu0  ;;  %v2195_v20 = vpack.c.bf16 %v1993_v4, %v1992_v54  ;;  %v2010_v28 = vpack.c.bf16 %v1994_v13, %v1993_v4 }
 0x15d   : > { %v1044_v9 = vadd.f32 %v975_v33, %v7211_v17  ;;  %v5850_v10 = vpop.f32.mrb[55].mxu1 }
 0x15e   : > { %6070 = vmatmul.mubr.msk.bf16.gmra.mrb[160].mxu0 %vm299_vm1, %v1831_v59  ;;  %v2197_v59 = vpack.c.bf16 %v1997_v34, %v1996_v52  ;;  %v1999_v10 = vld [vmem:[#allocation2 + $0x50] sm:$0xff] }
 0x15f   : > { %6076 = vmatmul.mubr.msk.bf16.vlgmr.msra.gmra.mrb[160].mxu1 %vm299_vm1, %v2009_v62  ;;  %6113 = vmatprep.mubr.msk.bf16.mxu0 %vm6763_vm0, %v6762_v1 }
 0x160   : > { %6150 = vmatpush3.bf16.msra.mxu1 %v6724_v8  ;;  %6079 = vmatprep.mubr.msk.bf16.mxu1 %vm6763_vm0, %v6762_v1 }
 0x161   : > { %v1158_v15 = vpop.f32.mrb[56].mxu0  ;;  %6225 = vmatprep.subr.bf16.mxu1 %v6762_v1 }
 0x162   : > { %v980_v17 = vpop.f32.mrb[56].mxu1  ;;  %v7325_v16 = vadd.f32 %v1158_v15, %v1043_v58  ;;  %v5887_v18 = vpop.f32.mrb[57].mxu0 }
 0x163   : > { %v1045_v22 = vadd.f32 %v980_v17, %v7223_v31  ;;  %v5853_v7 = vpop.f32.mrb[57].mxu1  ;;  %v1161_v25 = vpop.f32.mrb[58].mxu0  ;;  %v1995_v31 = vld [vmem:[#allocation2 + $0x30] sm:$0xff] }
 0x164   : > { %v983_v47 = vpop.f32.mrb[58].mxu1  ;;  %v7331_v11 = vadd.f32 %v1161_v25, %v1044_v9  ;;  %v5888_v32 = vpop.f32.mrb[59].mxu0  ;;  %v2196_v42 = vpack.c.bf16 %v1995_v31, %v1994_v13  ;;  %v2011_v48 = vpack.c.bf16 %v1996_v52, %v1995_v31 }
 0x165   : > { %v1046_v21 = vadd.f32 %v983_v47, %v7226_v43  ;;  %v5854_v29 = vpop.f32.mrb[59].mxu1  ;;  %v2001_v32 = vld [vmem:[#allocation2 + $0x60] sm:$0xff] }
 0x166   : > { %6114 = vmatmul.mubr.msk.bf16.vlgmr.msra.gmra.mrb[164].mxu0 %vm299_vm1, %v2195_v20 }
 0x167   : > { %6080 = vmatmul.mubr.msk.bf16.gmra.mrb[164].mxu1 %vm299_vm1, %v2010_v28  ;;  %6188 = vmatpush3.bf16.msra.mxu0 %v6725_v30 }
 0x168   : > { %6083 = vmatprep.mubr.msk.bf16.mxu1 %vm6763_vm0, %v6762_v1  ;;  %6117 = vmatprep.mubr.msk.bf16.mxu0 %vm6763_vm0, %v6762_v1 }
 0x169   : > { %v1166_v38 = vpop.f32.mrb[60].mxu0  ;;  %6263 = vmatprep.subr.bf16.mxu0 %v6762_v1 }
 0x16a   : > { %v988_v27 = vpop.f32.mrb[60].mxu1  ;;  %v7341_v40 = vadd.f32 %v1166_v38, %v1045_v22  ;;  %v5891_v43 = vpop.f32.mrb[61].mxu0 }
 0x16b   : > { %v1047_v44 = vadd.f32 %v988_v27, %v7235_v53  ;;  %v5857_v45 = vpop.f32.mrb[61].mxu1  ;;  %v1169_v35 = vpop.f32.mrb[62].mxu0  ;;  %v1998_v53 = vld [vmem:[#allocation2 + $0x48] sm:$0xff] }
 0x16c   : > { %v991_v49 = vpop.f32.mrb[62].mxu1  ;;  %v7344_v50 = vadd.f32 %v1169_v35, %v1046_v21  ;;  %v5892_v60 = vpop.f32.mrb[63].mxu0  ;;  %v2012_v0 = vpack.c.bf16 %v1998_v53, %v1997_v34  ;;  %v2198_v17 = vpack.c.bf16 %v1999_v10, %v1998_v53 }
 0x16d   : > { %v1048_v51 = vadd.f32 %v991_v49, %v7238_v61  ;;  %v5858_v23 = vpop.f32.mrb[63].mxu1  ;;  %v2003_v60 = vld [vmem:[#allocation2 + $0x70] sm:$0xff] }
 0x16e   : > { %6118 = vmatmul.mubr.msk.bf16.gmra.mrb[168].mxu0 %vm299_vm1, %v2196_v42 }
 0x16f   : > { %6084 = vmatmul.mubr.msk.bf16.gmra.mrb[168].mxu1 %vm299_vm1, %v2011_v48  ;;  %6121 = vmatprep.mubr.msk.bf16.mxu0 %vm6763_vm0, %v6762_v1 }
 0x170   : > { %6087 = vmatprep.mubr.msk.bf16.mxu1 %vm6763_vm0, %v6762_v1 }
 0x171   : > { %v1174_v54 = vpop.f32.mrb[64].mxu0 }
 0x172   : > { %v996_v3 = vpop.f32.mrb[64].mxu1  ;;  %v7353_v41 = vadd.f32 %v1174_v54, %v1047_v44  ;;  %v5895_v57 = vpop.f32.mrb[65].mxu0 }
 0x173   : > { %v1049_v61 = vadd.f32 %v996_v3, %v7247_v12  ;;  %v5861_v58 = vpop.f32.mrb[65].mxu1  ;;  %v1177_v63 = vpop.f32.mrb[66].mxu0  ;;  %v2000_v12 = vld [vmem:[#allocation2 + $0x58] sm:$0xff] }
 0x174   : > { %v999_v62 = vpop.f32.mrb[66].mxu1  ;;  %v7356_v33 = vadd.f32 %v1177_v63, %v1048_v51  ;;  %v5896_v6 = vpop.f32.mrb[67].mxu0  ;;  %v2013_v22 = vpack.c.bf16 %v2000_v12, %v1999_v10  ;;  %v2199_v38 = vpack.c.bf16 %v2001_v32, %v2000_v12 }
 0x175   : > { %v1050_v8 = vadd.f32 %v999_v62, %v7250_v24  ;;  %v5862_v9 = vpop.f32.mrb[67].mxu1  ;;  %v2005_v6 = vld [vmem:[#allocation2 + $0x80] sm:$0xff] }
 0x176   : > { %6122 = vmatmul.mubr.msk.bf16.gmra.mrb[172].mxu0 %vm299_vm1, %v2197_v59 }
 0x177   : > { %6088 = vmatmul.mubr.msk.bf16.gmra.mrb[172].mxu1 %vm299_vm1, %v2012_v0  ;;  %6125 = vmatprep.mubr.msk.bf16.mxu0 %vm6763_vm0, %v6762_v1 }
 0x178   : > { %6091 = vmatprep.mubr.msk.bf16.mxu1 %vm6763_vm0, %v6762_v1 }
 0x179   : > { %v1182_v37 = vpop.f32.mrb[68].mxu0 }
 0x17a   : > { %v1004_v4 = vpop.f32.mrb[68].mxu1  ;;  %v7365_v13 = vadd.f32 %v1182_v37, %v1049_v61  ;;  %v5899_v15 = vpop.f32.mrb[69].mxu0 }
 0x17b   : > { %v1051_v24 = vadd.f32 %v1004_v4, %v7259_v36  ;;  %v5865_v18 = vpop.f32.mrb[69].mxu1  ;;  %v1185_v20 = vpop.f32.mrb[70].mxu0  ;;  %v2002_v36 = vld [vmem:[#allocation2 + $0x68] sm:$0xff] }
 0x17c   : > { %v1007_v7 = vpop.f32.mrb[70].mxu1  ;;  %v7368_v25 = vadd.f32 %v1185_v20, %v1050_v8  ;;  %v5900_v28 = vpop.f32.mrb[71].mxu0  ;;  %v2014_v42 = vpack.c.bf16 %v2002_v36, %v2001_v32  ;;  %v2200_v54 = vpack.c.bf16 %v2003_v60, %v2002_v36 }
 0x17d   : > { %v1052_v30 = vadd.f32 %v1007_v7, %v7262_v46  ;;  %v5866_v47 = vpop.f32.mrb[71].mxu1  ;;  %v2007_v28 = vld [vmem:[#allocation2 + $0x90] sm:$0xff] }
 0x17e   : > { %6126 = vmatmul.mubr.msk.bf16.gmra.mrb[176].mxu0 %vm299_vm1, %v2198_v17 }
 0x17f   : > { %6092 = vmatmul.mubr.msk.bf16.gmra.mrb[176].mxu1 %vm299_vm1, %v2013_v22  ;;  %6129 = vmatprep.mubr.msk.bf16.mxu0 %vm6763_vm0, %v6762_v1 }
 0x180   : > { %6095 = vmatprep.mubr.msk.bf16.mxu1 %vm6763_vm0, %v6762_v1 }
 0x181   : > { %v1190_v21 = vpop.f32.mrb[72].mxu0 }
 0x182   : > { %v1012_v29 = vpop.f32.mrb[72].mxu1  ;;  %v7377_v31 = vadd.f32 %v1190_v21, %v1051_v24  ;;  %v5903_v52 = vpop.f32.mrb[73].mxu0 }
 0x183   : > { %v1053_v46 = vadd.f32 %v1012_v29, %v7271_v55  ;;  %v5869_v27 = vpop.f32.mrb[73].mxu1  ;;  %v1193_v43 = vpop.f32.mrb[74].mxu0  ;;  %v2004_v55 = vld [vmem:[#allocation2 + $0x78] sm:$0xff] }
 0x184   : > { %v1015_v44 = vpop.f32.mrb[74].mxu1  ;;  %v7380_v45 = vadd.f32 %v1193_v43, %v1052_v30  ;;  %v5904_v35 = vpop.f32.mrb[75].mxu0  ;;  %v2015_v59 = vpack.c.bf16 %v2004_v55, %v2003_v60  ;;  %v2201_v37 = vpack.c.bf16 %v2005_v6, %v2004_v55 }
 0x185   : > { %v1054_v48 = vadd.f32 %v1015_v44, %v7274_v2  ;;  %v5870_v49 = vpop.f32.mrb[75].mxu1  ;;  %v2194_v35 = vld [vmem:[#allocation2 + $0xa0] sm:$0xff] }
 0x186   : > { %6130 = vmatmul.mubr.msk.bf16.gmra.mrb[180].mxu0 %vm299_vm1, %v2199_v38 }
 0x187   : > { %6096 = vmatmul.mubr.msk.bf16.gmra.mrb[180].mxu1 %vm299_vm1, %v2014_v42  ;;  %6133 = vmatprep.mubr.msk.bf16.mxu0 %vm6763_vm0, %v6762_v1 }
 0x188   : > { %6099 = vmatprep.mubr.msk.bf16.mxu1 %vm6763_vm0, %v6762_v1 }
 0x189   : > { %v1198_v51 = vpop.f32.mrb[76].mxu0 }
 0x18a   : > { %v1020_v23 = vpop.f32.mrb[76].mxu1  ;;  %v7389_v34 = vadd.f32 %v1198_v51, %v1053_v46  ;;  %v5907_v53 = vpop.f32.mrb[77].mxu0 }
 0x18b   : > { %v1055_v2 = vadd.f32 %v1020_v23, %v7283_v14  ;;  %v5873_v3 = vpop.f32.mrb[77].mxu1  ;;  %v1201_v57 = vpop.f32.mrb[78].mxu0  ;;  %v2006_v14 = vld [vmem:[#allocation2 + $0x88] sm:$0xff] }
 0x18c   : > { %v1023_v61 = vpop.f32.mrb[78].mxu1  ;;  %v7392_v58 = vadd.f32 %v1201_v57, %v1054_v48  ;;  %v5908_v63 = vpop.f32.mrb[79].mxu0  ;;  %v2016_v17 = vpack.c.bf16 %v2006_v14, %v2005_v6  ;;  %v2202_v21 = vpack.c.bf16 %v2007_v28, %v2006_v14  ;;  %v2364_v48 = vld [vmem:[#allocation2 + $0x21] sm:$0xff]  ;;  %v2365_v6 = vld [vmem:[#allocation2 + $0x29] sm:$0xff]  ;;  %v2366_v14 = vld [vmem:[#allocation2 + $0x31] sm:$0xff] }
 0x18d   : > { %v1056_v0 = vadd.f32 %v1023_v61, %v7286_v26  ;;  %v5874_v62 = vpop.f32.mrb[79].mxu1  ;;  %v6726_v61 = vld [vmem:[%s8506_s2 + $0x68] sm:$0xff]  }
 0x18e   : > { %6134 = vmatmul.mubr.msk.bf16.gmra.mrb[184].mxu0 %vm299_vm1, %v2200_v54  ;;  %v2550_v62 = vld [vmem:[#allocation2 + $0x22] sm:$0xff] }
 0x18f   : > { %6100 = vmatmul.mubr.msk.bf16.gmra.mrb[184].mxu1 %vm299_vm1, %v2015_v59  ;;  %6137 = vmatprep.mubr.msk.bf16.mxu0 %vm6763_vm0, %v6762_v1 }
 0x190   : > { %6103 = vmatprep.mubr.msk.bf16.mxu1 %vm6763_vm0, %v6762_v1 }
 0x191   : > { %v1206_v8 = vpop.f32.mrb[80].mxu0 }
 0x192   : > { %v1028_v9 = vpop.f32.mrb[80].mxu1  ;;  %v7401_v10 = vadd.f32 %v1206_v8, %v1055_v2  ;;  %v5911_v12 = vpop.f32.mrb[81].mxu0 }
 0x193   : > { %v1057_v26 = vadd.f32 %v1028_v9, %v7295_v39  ;;  %v5877_v4 = vpop.f32.mrb[81].mxu1  ;;  %v1209_v15 = vpop.f32.mrb[82].mxu0  ;;  %v2008_v39 = vld [vmem:[#allocation2 + $0x98] sm:$0xff] }
 0x194   : > { %v1031_v24 = vpop.f32.mrb[82].mxu1  ;;  %v7404_v18 = vadd.f32 %v1209_v15, %v1056_v0  ;;  %v5912_v20 = vpop.f32.mrb[83].mxu0  ;;  %v2017_v38 = vpack.c.bf16 %v2008_v39, %v2007_v28 }
 0x195   : > { %v1058_v22 = vadd.f32 %v1031_v24, %v7298_v19  ;;  %v5878_v7 = vpop.f32.mrb[83].mxu1  ;;  %v6727_v24 = vld [vmem:[%s8506_s2 + $0x70] sm:$0xff]  }
 0x196   : > { %6138 = vmatmul.mubr.msk.bf16.gmra.mrb[188].mxu0 %vm299_vm1, %v2201_v37 }
 0x197   : > { %6104 = vmatmul.mubr.msk.bf16.gmra.mrb[188].mxu1 %vm299_vm1, %v2016_v17  ;;  %6141 = vmatprep.mubr.msk.bf16.mxu0 %vm6763_vm0, %v6762_v1  ;;  %v2382_v17 = vpack.c.bf16 %v2366_v14, %v2365_v6 }
 0x198   : > { %6107 = vmatprep.mubr.msk.bf16.mxu1 %vm6763_vm0, %v6762_v1 }
 0x199   : > { %v1214_v30 = vpop.f32.mrb[84].mxu0 }
 0x19a   : > { %v1036_v47 = vpop.f32.mrb[84].mxu1  ;;  %v7413_v32 = vadd.f32 %v1214_v30, %v1057_v26  ;;  %v5915_v36 = vpop.f32.mrb[85].mxu0  ;;  %v2552_v30 = vld [vmem:[#allocation2 + $0x32] sm:$0xff] }
 0x19b   : > { %v1059_v19 = vadd.f32 %v1036_v47, %v7307_v56  ;;  %v5881_v29 = vpop.f32.mrb[85].mxu1  ;;  %v1217_v52 = vpop.f32.mrb[86].mxu0  ;;  %v2363_v56 = vld [vmem:[#allocation2 + $0x19] sm:$0xff]  ;;  %v2368_v36 = vld [vmem:[#allocation2 + $0x41] sm:$0xff] }
 0x19c   : > { %v1039_v46 = vpop.f32.mrb[86].mxu1  ;;  %v7416_v27 = vadd.f32 %v1217_v52, %v1058_v22  ;;  %v5916_v43 = vpop.f32.mrb[87].mxu0  ;;  %v2381_v2 = vpack.c.bf16 %v2364_v48, %v2363_v56  ;;  %v2367_v47 = vld [vmem:[#allocation2 + $0x39] sm:$0xff] }
 0x19d   : > { %v1060_v42 = vadd.f32 %v1039_v46, %v7310_v5  ;;  %v5882_v44 = vpop.f32.mrb[87].mxu1  ;;  %v2203_v5 = vpack.c.bf16 %v2194_v35, %v2008_v39 }
 0x19e   : > { %6142 = vmatmul.mubr.msk.bf16.gmra.mrb[192].mxu0 %vm299_vm1, %v2202_v21 }
 0x19f   : > { %6108 = vmatmul.mubr.msk.bf16.gmra.mrb[192].mxu1 %vm299_vm1, %v2017_v38  ;;  %6145 = vmatprep.mubr.msk.bf16.mxu0 %vm6763_vm0, %v6762_v1 }
 0x1a0   : > { %6151 = vmatprep.mubr.msk.bf16.mxu1 %vm6763_vm0, %v6762_v1 }
 0x1a1   : > { %v1222_v49 = vpop.f32.mrb[88].mxu0 }
 0x1a2   : > { %v7425_v60 = vadd.f32 %v1222_v49, %v1059_v19  ;;  %v1344_v55 = vpop.f32.mrb[88].mxu1  ;;  %v5919_v51 = vpop.f32.mrb[89].mxu0 }
 0x1a3   : > { %v1415_v23 = vadd.f32 %v1344_v55, %v7325_v16  ;;  %v5925_v53 = vpop.f32.mrb[89].mxu1  ;;  %v1225_v54 = vpop.f32.mrb[90].mxu0  ;;  %v2549_v16 = vld [vmem:[#allocation2 + $0x1a] sm:$0xff]  ;;  %v2554_v51 = vld [vmem:[#allocation2 + $0x42] sm:$0xff] }
 0x1a4   : > { %v7428_v3 = vadd.f32 %v1225_v54, %v1060_v42  ;;  %v1347_v57 = vpop.f32.mrb[90].mxu1  ;;  %v5920_v59 = vpop.f32.mrb[91].mxu0  ;;  %v2567_v37 = vpack.c.bf16 %v2550_v62, %v2549_v16  ;;  %v2383_v42 = vpack.c.bf16 %v2368_v36, %v2367_v47  ;;  %v2553_v55 = vld [vmem:[#allocation2 + $0x3a] sm:$0xff] }
 0x1a5   : > { %v1416_v63 = vadd.f32 %v1347_v57, %v7331_v11  ;;  %v5926_v0 = vpop.f32.mrb[91].mxu1  ;;  %v2557_v36 = vld [vmem:[#allocation2 + $0x5a] sm:$0xff] }
 0x1a6   : > { %6146 = vmatmul.mubr.msk.bf16.gmra.mrb[196].mxu0 %vm299_vm1, %v2203_v5  ;;  %v2370_v5 = vld [vmem:[#allocation2 + $0x51] sm:$0xff] }
 0x1a7   : > { %6152 = vmatmul.mubr.msk.bf16.vlgmr.msra.gmra.mrb[196].mxu1 %vm299_vm1, %v2381_v2  ;;  %6189 = vmatprep.mubr.msk.bf16.mxu0 %vm6763_vm0, %v6762_v1  ;;  %v2569_v2 = vpack.c.bf16 %v2554_v51, %v2553_v55 }
 0x1a8   : > { %6226 = vmatpush3.bf16.msra.mxu1 %v6726_v61  ;;  %6155 = vmatprep.mubr.msk.bf16.mxu1 %vm6763_vm0, %v6762_v1 }
 0x1a9   : > { %v1530_v8 = vpop.f32.mrb[92].mxu0  ;;  %6301 = vmatprep.subr.bf16.mxu1 %v6762_v1 }
 0x1aa   : > { %v1352_v11 = vpop.f32.mrb[92].mxu1  ;;  %v7441_v9 = vadd.f32 %v1530_v8, %v1415_v23  ;;  %v5963_v12 = vpop.f32.mrb[93].mxu0  ;;  %v2555_v8 = vld [vmem:[#allocation2 + $0x4a] sm:$0xff] }
 0x1ab   : > { %v1417_v26 = vadd.f32 %v1352_v11, %v7341_v40  ;;  %v5929_v4 = vpop.f32.mrb[93].mxu1  ;;  %v1533_v15 = vpop.f32.mrb[94].mxu0  ;;  %v2551_v40 = vld [vmem:[#allocation2 + $0x2a] sm:$0xff]  ;;  %v2556_v11 = vld [vmem:[#allocation2 + $0x52] sm:$0xff]  ;;  %v2372_v12 = vld [vmem:[#allocation2 + $0x61] sm:$0xff] }
 0x1ac   : > { %v1355_v20 = vpop.f32.mrb[94].mxu1  ;;  %v7447_v22 = vadd.f32 %v1533_v15, %v1416_v63  ;;  %v5964_v7 = vpop.f32.mrb[95].mxu0  ;;  %v2568_v52 = vpack.c.bf16 %v2552_v30, %v2551_v40  ;;  %v2570_v15 = vpack.c.bf16 %v2556_v11, %v2555_v8 }
 0x1ad   : > { %v1418_v28 = vadd.f32 %v1355_v20, %v7344_v50  ;;  %v5930_v39 = vpop.f32.mrb[95].mxu1 }
 0x1ae   : > { %6190 = vmatmul.mubr.msk.bf16.vlgmr.msra.gmra.mrb[200].mxu0 %vm299_vm1, %v2567_v37 }
 0x1af   : > { %6156 = vmatmul.mubr.msk.bf16.gmra.mrb[200].mxu1 %vm299_vm1, %v2382_v17  ;;  %6264 = vmatpush3.bf16.msra.mxu0 %v6727_v24 }
 0x1b0   : > { %6159 = vmatprep.mubr.msk.bf16.mxu1 %vm6763_vm0, %v6762_v1  ;;  %6193 = vmatprep.mubr.msk.bf16.mxu0 %vm6763_vm0, %v6762_v1 }
 0x1b1   : > { %v1538_v21 = vpop.f32.mrb[96].mxu0  ;;  %6339 = vmatprep.subr.bf16.mxu0 %v6762_v1 }
 0x1b2   : > { %v1360_v50 = vpop.f32.mrb[96].mxu1  ;;  %v7457_v19 = vadd.f32 %v1538_v21, %v1417_v26  ;;  %v5967_v29 = vpop.f32.mrb[97].mxu0  ;;  %v2558_v21 = vld [vmem:[#allocation2 + $0x62] sm:$0xff] }
 0x1b3   : > { %v1419_v38 = vadd.f32 %v1360_v50, %v7353_v41  ;;  %v5933_v46 = vpop.f32.mrb[97].mxu1  ;;  %v1541_v43 = vpop.f32.mrb[98].mxu0  ;;  %v2369_v41 = vld [vmem:[#allocation2 + $0x49] sm:$0xff]  ;;  %v2374_v50 = vld [vmem:[#allocation2 + $0x71] sm:$0xff] }
 0x1b4   : > { %v1363_v44 = vpop.f32.mrb[98].mxu1  ;;  %v7460_v35 = vadd.f32 %v1541_v43, %v1418_v28  ;;  %v5968_v56 = vpop.f32.mrb[99].mxu0  ;;  %v2384_v63 = vpack.c.bf16 %v2370_v5, %v2369_v41  ;;  %v2571_v46 = vpack.c.bf16 %v2558_v21, %v2557_v36  ;;  %v2559_v5 = vld [vmem:[#allocation2 + $0x6a] sm:$0xff] }
 0x1b5   : > { %v1420_v48 = vadd.f32 %v1363_v44, %v7356_v33  ;;  %v5934_v49 = vpop.f32.mrb[99].mxu1 }
 0x1b6   : > { %6194 = vmatmul.mubr.msk.bf16.gmra.mrb[204].mxu0 %vm299_vm1, %v2568_v52 }
 0x1b7   : > { %6160 = vmatmul.mubr.msk.bf16.gmra.mrb[204].mxu1 %vm299_vm1, %v2383_v42  ;;  %6197 = vmatprep.mubr.msk.bf16.mxu0 %vm6763_vm0, %v6762_v1 }
 0x1b8   : > { %6163 = vmatprep.mubr.msk.bf16.mxu1 %vm6763_vm0, %v6762_v1 }
 0x1b9   : > { %v1546_v23 = vpop.f32.mrb[100].mxu0 }
 0x1ba   : > { %v1368_v53 = vpop.f32.mrb[100].mxu1  ;;  %v7469_v54 = vadd.f32 %v1546_v23, %v1419_v38  ;;  %v5971_v33 = vpop.f32.mrb[101].mxu0  ;;  %v2560_v23 = vld [vmem:[#allocation2 + $0x72] sm:$0xff] }
 0x1bb   : > { %v1421_v57 = vadd.f32 %v1368_v53, %v7365_v13  ;;  %v5937_v59 = vpop.f32.mrb[101].mxu1  ;;  %v1549_v61 = vpop.f32.mrb[102].mxu0  ;;  %v2371_v13 = vld [vmem:[#allocation2 + $0x59] sm:$0xff]  ;;  %v2376_v53 = vld [vmem:[#allocation2 + $0x81] sm:$0xff] }
 0x1bc   : > { %v1371_v0 = vpop.f32.mrb[102].mxu1  ;;  %v7472_v16 = vadd.f32 %v1549_v61, %v1420_v48  ;;  %v5972_v62 = vpop.f32.mrb[103].mxu0  ;;  %v2385_v7 = vpack.c.bf16 %v2372_v12, %v2371_v13  ;;  %v2572_v59 = vpack.c.bf16 %v2560_v23, %v2559_v5  ;;  %v2561_v12 = vld [vmem:[#allocation2 + $0x7a] sm:$0xff] }
 0x1bd   : > { %v1422_v6 = vadd.f32 %v1371_v0, %v7368_v25  ;;  %v5938_v14 = vpop.f32.mrb[103].mxu1 }
 0x1be   : > { %6198 = vmatmul.mubr.msk.bf16.gmra.mrb[208].mxu0 %vm299_vm1, %v2569_v2 }
 0x1bf   : > { %6164 = vmatmul.mubr.msk.bf16.gmra.mrb[208].mxu1 %vm299_vm1, %v2384_v63  ;;  %6201 = vmatprep.mubr.msk.bf16.mxu0 %vm6763_vm0, %v6762_v1 }
 0x1c0   : > { %6167 = vmatprep.mubr.msk.bf16.mxu1 %vm6763_vm0, %v6762_v1 }
 0x1c1   : > { %v1554_v37 = vpop.f32.mrb[104].mxu0 }
 0x1c2   : > { %v1376_v26 = vpop.f32.mrb[104].mxu1  ;;  %v7481_v4 = vadd.f32 %v1554_v37, %v1421_v57  ;;  %v5975_v25 = vpop.f32.mrb[105].mxu0  ;;  %v2562_v37 = vld [vmem:[#allocation2 + $0x82] sm:$0xff] }
 0x1c3   : > { %v1423_v17 = vadd.f32 %v1376_v26, %v7377_v31  ;;  %v5941_v24 = vpop.f32.mrb[105].mxu1  ;;  %v1557_v20 = vpop.f32.mrb[106].mxu0  ;;  %v2373_v31 = vld [vmem:[#allocation2 + $0x69] sm:$0xff]  ;;  %v2378_v26 = vld [vmem:[#allocation2 + $0x91] sm:$0xff] }
 0x1c4   : > { %v1379_v28 = vpop.f32.mrb[106].mxu1  ;;  %v7484_v39 = vadd.f32 %v1557_v20, %v1422_v6  ;;  %v5976_v40 = vpop.f32.mrb[107].mxu0  ;;  %v2386_v56 = vpack.c.bf16 %v2374_v50, %v2373_v31  ;;  %v2573_v24 = vpack.c.bf16 %v2562_v37, %v2561_v12  ;;  %v2563_v50 = vld [vmem:[#allocation2 + $0x8a] sm:$0xff]  ;;  %v6728_v37 = vld [vmem:[%s8506_s2 + $0x78] sm:$0xff]  }
 0x1c5   : > { %v1424_v30 = vadd.f32 %v1379_v28, %v7380_v45  ;;  %v5942_v47 = vpop.f32.mrb[107].mxu1 }
 0x1c6   : > { %6202 = vmatmul.mubr.msk.bf16.gmra.mrb[212].mxu0 %vm299_vm1, %v2570_v15 }
 0x1c7   : > { %6168 = vmatmul.mubr.msk.bf16.gmra.mrb[212].mxu1 %vm299_vm1, %v2385_v7  ;;  %6205 = vmatprep.mubr.msk.bf16.mxu0 %vm6763_vm0, %v6762_v1 }
 0x1c8   : > { %6171 = vmatprep.mubr.msk.bf16.mxu1 %vm6763_vm0, %v6762_v1 }
 0x1c9   : > { %v1562_v29 = vpop.f32.mrb[108].mxu0 }
 0x1ca   : > { %v1384_v52 = vpop.f32.mrb[108].mxu1  ;;  %v7493_v38 = vadd.f32 %v1562_v29, %v1423_v17  ;;  %v5979_v45 = vpop.f32.mrb[109].mxu0  ;;  %v2564_v29 = vld [vmem:[#allocation2 + $0x92] sm:$0xff] }
 0x1cb   : > { %v1425_v43 = vadd.f32 %v1384_v52, %v7389_v34  ;;  %v5945_v42 = vpop.f32.mrb[109].mxu1  ;;  %v1565_v44 = vpop.f32.mrb[110].mxu0  ;;  %v2375_v34 = vld [vmem:[#allocation2 + $0x79] sm:$0xff]  ;;  %v2380_v52 = vld [vmem:[#allocation2 + $0xa1] sm:$0xff] }
 0x1cc   : > { %v1387_v48 = vpop.f32.mrb[110].mxu1  ;;  %v7496_v49 = vadd.f32 %v1565_v44, %v1424_v30  ;;  %v5980_v55 = vpop.f32.mrb[111].mxu0  ;;  %v2387_v62 = vpack.c.bf16 %v2376_v53, %v2375_v34  ;;  %v2574_v42 = vpack.c.bf16 %v2564_v29, %v2563_v50  ;;  %v2565_v53 = vld [vmem:[#allocation2 + $0x9a] sm:$0xff] }
 0x1cd   : > { %v1426_v51 = vadd.f32 %v1387_v48, %v7392_v58  ;;  %v5946_v41 = vpop.f32.mrb[111].mxu1  ;;  %v6729_v50 = vld [vmem:[%s8506_s2 + $0x80] sm:$0xff]  }
 0x1ce   : > { %6206 = vmatmul.mubr.msk.bf16.gmra.mrb[216].mxu0 %vm299_vm1, %v2571_v46 }
 0x1cf   : > { %6172 = vmatmul.mubr.msk.bf16.gmra.mrb[216].mxu1 %vm299_vm1, %v2386_v56  ;;  %6209 = vmatprep.mubr.msk.bf16.mxu0 %vm6763_vm0, %v6762_v1 }
 0x1d0   : > { %6175 = vmatprep.mubr.msk.bf16.mxu1 %vm6763_vm0, %v6762_v1 }
 0x1d1   : > { %v1570_v33 = vpop.f32.mrb[112].mxu0 }
 0x1d2   : > { %v1392_v2 = vpop.f32.mrb[112].mxu1  ;;  %v7505_v57 = vadd.f32 %v1570_v33, %v1425_v43  ;;  %v5983_v58 = vpop.f32.mrb[113].mxu0  ;;  %v2566_v33 = vld [vmem:[#allocation2 + $0xa2] sm:$0xff] }
 0x1d3   : > { %v1427_v61 = vadd.f32 %v1392_v2, %v7401_v10  ;;  %v5949_v63 = vpop.f32.mrb[113].mxu1  ;;  %v1573_v0 = vpop.f32.mrb[114].mxu0  ;;  %v2377_v10 = vld [vmem:[#allocation2 + $0x89] sm:$0xff] }
 0x1d4   : > { %v1395_v6 = vpop.f32.mrb[114].mxu1  ;;  %v7508_v14 = vadd.f32 %v1573_v0, %v1426_v51  ;;  %v5984_v8 = vpop.f32.mrb[115].mxu0  ;;  %v2388_v40 = vpack.c.bf16 %v2378_v26, %v2377_v10  ;;  %v2736_v2 = vld [vmem:[#allocation2 + $0x23] sm:$0xff]  ;;  %v2575_v63 = vpack.c.bf16 %v2566_v33, %v2565_v53 }
 0x1d5   : > { %v1428_v11 = vadd.f32 %v1395_v6, %v7404_v18  ;;  %v5950_v13 = vpop.f32.mrb[115].mxu1  ;;  %v322_v10 = vld [vmem:[%s6844_s28 + $0x20] sm:$0xff] }
 0x1d6   : > { %6210 = vmatmul.mubr.msk.bf16.gmra.mrb[220].mxu0 %vm299_vm1, %v2572_v59  ;;  %340 = vst.msk [vmem:[#allocation2 + $0xb0] sm:$0xff] %vm299_vm1, %v322_v10 }
 0x1d7   : > { %6176 = vmatmul.mubr.msk.bf16.gmra.mrb[220].mxu1 %vm299_vm1, %v2387_v62  ;;  %6213 = vmatprep.mubr.msk.bf16.mxu0 %vm6763_vm0, %v6762_v1 }
 0x1d8   : > { %6179 = vmatprep.mubr.msk.bf16.mxu1 %vm6763_vm0, %v6762_v1 }
 0x1d9   : > { %v1578_v25 = vpop.f32.mrb[116].mxu0 }
 0x1da   : > { %v1400_v15 = vpop.f32.mrb[116].mxu1  ;;  %v7517_v17 = vadd.f32 %v1578_v25, %v1427_v61  ;;  %v5987_v18 = vpop.f32.mrb[117].mxu0 }
 0x1db   : > { %v1429_v20 = vadd.f32 %v1400_v15, %v7413_v32  ;;  %v5953_v7 = vpop.f32.mrb[117].mxu1  ;;  %v1581_v28 = vpop.f32.mrb[118].mxu0  ;;  %v2379_v32 = vld [vmem:[#allocation2 + $0x99] sm:$0xff]  ;;  %v7556_v15 = vld [vmem:[#allocation2 + $0x24] sm:$0xff] }
 0x1dc   : > { %v1403_v30 = vpop.f32.mrb[118].mxu1  ;;  %v7520_v47 = vadd.f32 %v1581_v28, %v1428_v11  ;;  %v5988_v36 = vpop.f32.mrb[119].mxu0  ;;  %v2389_v55 = vpack.c.bf16 %v2380_v52, %v2379_v32  ;;  %v2737_v18 = vld [vmem:[#allocation2 + $0x2b] sm:$0xff] }
 0x1dd   : > { %v1430_v21 = vadd.f32 %v1403_v30, %v7416_v27  ;;  %v5954_v31 = vpop.f32.mrb[119].mxu1 }
 0x1de   : > { %6214 = vmatmul.mubr.msk.bf16.gmra.mrb[224].mxu0 %vm299_vm1, %v2573_v24  ;;  %v2738_v24 = vld [vmem:[#allocation2 + $0x33] sm:$0xff] }
 0x1df   : > { %6180 = vmatmul.mubr.msk.bf16.gmra.mrb[224].mxu1 %vm299_vm1, %v2388_v40  ;;  %6217 = vmatprep.mubr.msk.bf16.mxu0 %vm6763_vm0, %v6762_v1  ;;  %v2754_v31 = vpack.c.bf16 %v2738_v24, %v2737_v18 }
 0x1e0   : > { %6183 = vmatprep.mubr.msk.bf16.mxu1 %vm6763_vm0, %v6762_v1 }
 0x1e1   : > { %v1586_v45 = vpop.f32.mrb[120].mxu0 }
 0x1e2   : > { %v1408_v46 = vpop.f32.mrb[120].mxu1  ;;  %v7529_v43 = vadd.f32 %v1586_v45, %v1429_v20  ;;  %v5991_v27 = vpop.f32.mrb[121].mxu0 }
 0x1e3   : > { %v1431_v44 = vadd.f32 %v1408_v46, %v7425_v60  ;;  %v5957_v56 = vpop.f32.mrb[121].mxu1  ;;  %v1589_v48 = vpop.f32.mrb[122].mxu0  ;;  %v2735_v60 = vld [vmem:[#allocation2 + $0x1b] sm:$0xff] }
 0x1e4   : > { %v1411_v51 = vpop.f32.mrb[122].mxu1  ;;  %v7532_v41 = vadd.f32 %v1589_v48, %v1430_v21  ;;  %v5992_v5 = vpop.f32.mrb[123].mxu0  ;;  %v2753_v8 = vpack.c.bf16 %v2736_v2, %v2735_v60  ;;  %v7575_v27 = vld [vmem:[#allocation2 + $0x34] sm:$0xff] }
 0x1e5   : > { %v1432_v23 = vadd.f32 %v1411_v51, %v7428_v3  ;;  %v5958_v34 = vpop.f32.mrb[123].mxu1 }
 0x1e6   : > { %6218 = vmatmul.mubr.msk.bf16.gmra.mrb[228].mxu0 %vm299_vm1, %v2574_v42  ;;  %v2739_v42 = vld [vmem:[#allocation2 + $0x3b] sm:$0xff] }
 0x1e7   : > { %6184 = vmatmul.mubr.msk.bf16.gmra.mrb[228].mxu1 %vm299_vm1, %v2389_v55  ;;  %6221 = vmatprep.mubr.msk.bf16.mxu0 %vm6763_vm0, %v6762_v1 }
 0x1e8   : > { %6227 = vmatprep.mubr.msk.bf16.mxu1 %vm6763_vm0, %v6762_v1 }
 0x1e9   : > { %v1594_v58 = vpop.f32.mrb[124].mxu0 }
 0x1ea   : > { %v7541_v59 = vadd.f32 %v1594_v58, %v1431_v44  ;;  %v1716_v3 = vpop.f32.mrb[124].mxu1  ;;  %v5995_v61 = vpop.f32.mrb[125].mxu0  ;;  %v2740_v44 = vld [vmem:[#allocation2 + $0x43] sm:$0xff] }
 0x1eb   : > { %v1787_v0 = vadd.f32 %v1716_v3, %v7441_v9  ;;  %v6001_v62 = vpop.f32.mrb[125].mxu1  ;;  %v1597_v6 = vpop.f32.mrb[126].mxu0  ;;  %v2921_v9 = vld [vmem:[#allocation2 + $0x1c] sm:$0xff]  ;;  %v2755_v53 = vpack.c.bf16 %v2740_v44, %v2739_v42 }
 0x1ec   : > { %v7544_v11 = vadd.f32 %v1597_v6, %v1432_v23  ;;  %v1719_v13 = vpop.f32.mrb[126].mxu1  ;;  %v5996_v12 = vpop.f32.mrb[127].mxu0  ;;  %v2939_v40 = vpack.c.bf16 %v7556_v15, %v2921_v9  ;;  %v7594_v61 = vld [vmem:[#allocation2 + $0x3c] sm:$0xff] }
 0x1ed   : > { %v1788_v26 = vadd.f32 %v1719_v13, %v7447_v22  ;;  %v6002_v25 = vpop.f32.mrb[127].mxu1 }
 0x1ee   : > { %6222 = vmatmul.mubr.msk.bf16.gmra.mrb[232].mxu0 %vm299_vm1, %v2575_v63  ;;  %v2741_v63 = vld [vmem:[#allocation2 + $0x4b] sm:$0xff] }
 0x1ef   : > { %6228 = vmatmul.mubr.msk.bf16.vlgmr.msra.gmra.mrb[232].mxu1 %vm299_vm1, %v2753_v8  ;;  %6265 = vmatprep.mubr.msk.bf16.mxu0 %vm6763_vm0, %v6762_v1 }
 0x1f0   : > { %6302 = vmatpush3.bf16.msra.mxu1 %v6728_v37  ;;  %6231 = vmatprep.mubr.msk.bf16.mxu1 %vm6763_vm0, %v6762_v1 }
 0x1f1   : > { %v1902_v22 = vpop.f32.mrb[128].mxu0  ;;  %6377 = vmatprep.subr.bf16.mxu1 %v6762_v1 }
 0x1f2   : > { %v1724_v20 = vpop.f32.mrb[128].mxu1  ;;  %v7561_v7 = vadd.f32 %v1902_v22, %v1787_v0  ;;  %v6039_v28 = vpop.f32.mrb[129].mxu0  ;;  %v2742_v0 = vld [vmem:[#allocation2 + $0x53] sm:$0xff] }
 0x1f3   : > { %v1789_v30 = vadd.f32 %v1724_v20, %v7457_v19  ;;  %v6005_v36 = vpop.f32.mrb[129].mxu1  ;;  %v1905_v21 = vpop.f32.mrb[130].mxu0  ;;  %v7573_v19 = vld [vmem:[#allocation2 + $0x2c] sm:$0xff]  ;;  %v2743_v28 = vld [vmem:[#allocation2 + $0x5b] sm:$0xff] }
 0x1f4   : > { %v1727_v29 = vpop.f32.mrb[130].mxu1  ;;  %v7568_v32 = vadd.f32 %v1905_v21, %v1788_v26  ;;  %v6040_v52 = vpop.f32.mrb[131].mxu0  ;;  %v2940_v51 = vpack.c.bf16 %v7575_v27, %v7573_v19  ;;  %v2756_v26 = vpack.c.bf16 %v2742_v0, %v2741_v63  ;;  %v7612_v20 = vld [vmem:[#allocation2 + $0x4c] sm:$0xff] }
 0x1f5   : > { %v1790_v45 = vadd.f32 %v1727_v29, %v7460_v35  ;;  %v6006_v46 = vpop.f32.mrb[131].mxu1 }
 0x1f6   : > { %6266 = vmatmul.mubr.msk.bf16.vlgmr.msra.gmra.mrb[236].mxu0 %vm299_vm1, %v2939_v40  ;;  %v2744_v40 = vld [vmem:[#allocation2 + $0x63] sm:$0xff] }
 0x1f7   : > { %6232 = vmatmul.mubr.msk.bf16.gmra.mrb[236].mxu1 %vm299_vm1, %v2754_v31  ;;  %6340 = vmatpush3.bf16.msra.mxu0 %v6729_v50 }
 0x1f8   : > { %6235 = vmatprep.mubr.msk.bf16.mxu1 %vm6763_vm0, %v6762_v1  ;;  %6269 = vmatprep.mubr.msk.bf16.mxu0 %vm6763_vm0, %v6762_v1 }
 0x1f9   : > { %v1910_v56 = vpop.f32.mrb[132].mxu0  ;;  %6415 = vmatprep.subr.bf16.mxu0 %v6762_v1 }
 0x1fa   : > { %v1732_v35 = vpop.f32.mrb[132].mxu1  ;;  %v7582_v48 = vadd.f32 %v1910_v56, %v1789_v30  ;;  %v6043_v55 = vpop.f32.mrb[133].mxu0 }
 0x1fb   : > { %v1791_v5 = vadd.f32 %v1732_v35, %v7469_v54  ;;  %v6009_v23 = vpop.f32.mrb[133].mxu1  ;;  %v1913_v34 = vpop.f32.mrb[134].mxu0  ;;  %v7596_v54 = vld [vmem:[#allocation2 + $0x44] sm:$0xff]  ;;  %v7630_v55 = vld [vmem:[#allocation2 + $0x5c] sm:$0xff] }
 0x1fc   : > { %v1735_v33 = vpop.f32.mrb[134].mxu1  ;;  %v7587_v60 = vadd.f32 %v1913_v34, %v1790_v45  ;;  %v6044_v2 = vpop.f32.mrb[135].mxu0  ;;  %v2941_v13 = vpack.c.bf16 %v7596_v54, %v7594_v61  ;;  %v2757_v45 = vpack.c.bf16 %v2744_v40, %v2743_v28 }
 0x1fd   : > { %v1792_v58 = vadd.f32 %v1735_v33, %v7472_v16  ;;  %v6010_v3 = vpop.f32.mrb[135].mxu1 }
 0x1fe   : > { %6270 = vmatmul.mubr.msk.bf16.gmra.mrb[240].mxu0 %vm299_vm1, %v2940_v51  ;;  %v2745_v51 = vld [vmem:[#allocation2 + $0x6b] sm:$0xff] }
 0x1ff   : > { %6236 = vmatmul.mubr.msk.bf16.gmra.mrb[240].mxu1 %vm299_vm1, %v2755_v53  ;;  %6273 = vmatprep.mubr.msk.bf16.mxu0 %vm6763_vm0, %v6762_v1 }
 0x200   : > { %6239 = vmatprep.mubr.msk.bf16.mxu1 %vm6763_vm0, %v6762_v1 }
 0x201   : > { %v1918_v62 = vpop.f32.mrb[136].mxu0 }
 0x202   : > { %v1740_v6 = vpop.f32.mrb[136].mxu1  ;;  %v7600_v16 = vadd.f32 %v1918_v62, %v1791_v5  ;;  %v6047_v8 = vpop.f32.mrb[137].mxu0  ;;  %v2746_v5 = vld [vmem:[#allocation2 + $0x73] sm:$0xff] }
 0x203   : > { %v1793_v12 = vadd.f32 %v1740_v6, %v7481_v4  ;;  %v6013_v37 = vpop.f32.mrb[137].mxu1  ;;  %v1921_v10 = vpop.f32.mrb[138].mxu0  ;;  %v7614_v4 = vld [vmem:[#allocation2 + $0x54] sm:$0xff]  ;;  %v2758_v63 = vpack.c.bf16 %v2746_v5, %v2745_v51 }
 0x204   : > { %v1743_v25 = vpop.f32.mrb[138].mxu1  ;;  %v7605_v9 = vadd.f32 %v1921_v10, %v1792_v58  ;;  %v6048_v18 = vpop.f32.mrb[139].mxu0  ;;  %v2942_v31 = vpack.c.bf16 %v7614_v4, %v7612_v20  ;;  %v2747_v37 = vld [vmem:[#allocation2 + $0x7b] sm:$0xff]  ;;  %v2748_v10 = vld [vmem:[#allocation2 + $0x83] sm:$0xff] }
 0x205   : > { %v1794_v24 = vadd.f32 %v1743_v25, %v7484_v39  ;;  %v6014_v22 = vpop.f32.mrb[139].mxu1 }
 0x206   : > { %6274 = vmatmul.mubr.msk.bf16.gmra.mrb[244].mxu0 %vm299_vm1, %v2941_v13 }
 0x207   : > { %6240 = vmatmul.mubr.msk.bf16.gmra.mrb[244].mxu1 %vm299_vm1, %v2756_v26  ;;  %6277 = vmatprep.mubr.msk.bf16.mxu0 %vm6763_vm0, %v6762_v1 }
 0x208   : > { %6243 = vmatprep.mubr.msk.bf16.mxu1 %vm6763_vm0, %v6762_v1 }
 0x209   : > { %v1926_v30 = vpop.f32.mrb[140].mxu0 }
 0x20a   : > { %v1748_v36 = vpop.f32.mrb[140].mxu1  ;;  %v7618_v39 = vadd.f32 %v1926_v30, %v1793_v12  ;;  %v6051_v21 = vpop.f32.mrb[141].mxu0  ;;  %v7648_v12 = vld [vmem:[#allocation2 + $0x6c] sm:$0xff]  ;;  %v2759_v30 = vpack.c.bf16 %v2748_v10, %v2747_v37 }
 0x20b   : > { %v1795_v50 = vadd.f32 %v1748_v36, %v7493_v38  ;;  %v6017_v29 = vpop.f32.mrb[141].mxu1  ;;  %v1929_v52 = vpop.f32.mrb[142].mxu0  ;;  %v7632_v38 = vld [vmem:[#allocation2 + $0x64] sm:$0xff] }
 0x20c   : > { %v1751_v46 = vpop.f32.mrb[142].mxu1  ;;  %v7623_v42 = vadd.f32 %v1929_v52, %v1794_v24  ;;  %v6052_v44 = vpop.f32.mrb[143].mxu0  ;;  %v2943_v33 = vpack.c.bf16 %v7632_v38, %v7630_v55  ;;  %v7666_v52 = vld [vmem:[#allocation2 + $0x7c] sm:$0xff] }
 0x20d   : > { %v1796_v56 = vadd.f32 %v1751_v46, %v7496_v49  ;;  %v6018_v35 = vpop.f32.mrb[143].mxu1  ;;  %v2750_v46 = vld [vmem:[#allocation2 + $0x93] sm:$0xff] }
 0x20e   : > { %6278 = vmatmul.mubr.msk.bf16.gmra.mrb[248].mxu0 %vm299_vm1, %v2942_v31 }
 0x20f   : > { %6244 = vmatmul.mubr.msk.bf16.gmra.mrb[248].mxu1 %vm299_vm1, %v2757_v45  ;;  %6281 = vmatprep.mubr.msk.bf16.mxu0 %vm6763_vm0, %v6762_v1  ;;  %v2749_v45 = vld [vmem:[#allocation2 + $0x8b] sm:$0xff] }
 0x210   : > { %6247 = vmatprep.mubr.msk.bf16.mxu1 %vm6763_vm0, %v6762_v1 }
 0x211   : > { %v1934_v23 = vpop.f32.mrb[144].mxu0 }
 0x212   : > { %v1756_v34 = vpop.f32.mrb[144].mxu1  ;;  %v7636_v49 = vadd.f32 %v1934_v23, %v1795_v50  ;;  %v6055_v53 = vpop.f32.mrb[145].mxu0 }
 0x213   : > { %v1797_v2 = vadd.f32 %v1756_v34, %v7505_v57  ;;  %v6021_v58 = vpop.f32.mrb[145].mxu1  ;;  %v1937_v3 = vpop.f32.mrb[146].mxu0  ;;  %v7650_v57 = vld [vmem:[#allocation2 + $0x74] sm:$0xff]  ;;  %v2760_v53 = vpack.c.bf16 %v2750_v46, %v2749_v45 }
 0x214   : > { %v1759_v0 = vpop.f32.mrb[146].mxu1  ;;  %v7641_v62 = vadd.f32 %v1937_v3, %v1796_v56  ;;  %v6056_v6 = vpop.f32.mrb[147].mxu0  ;;  %v2944_v24 = vpack.c.bf16 %v7650_v57, %v7648_v12 }
 0x215   : > { %v1798_v8 = vadd.f32 %v1759_v0, %v7508_v14  ;;  %v6022_v13 = vpop.f32.mrb[147].mxu1  ;;  %v7684_v0 = vld [vmem:[#allocation2 + $0x8c] sm:$0xff]  ;;  %v2751_v6 = vld [vmem:[#allocation2 + $0x9b] sm:$0xff] }
 0x216   : > { %6282 = vmatmul.mubr.msk.bf16.gmra.mrb[252].mxu0 %vm299_vm1, %v2943_v33 }
 0x217   : > { %6248 = vmatmul.mubr.msk.bf16.gmra.mrb[252].mxu1 %vm299_vm1, %v2758_v63  ;;  %6285 = vmatprep.mubr.msk.bf16.mxu0 %vm6763_vm0, %v6762_v1 }
 0x218   : > { %6251 = vmatprep.mubr.msk.bf16.mxu1 %vm6763_vm0, %v6762_v1 }
 0x219   : > { %v1942_v26 = vpop.f32.mrb[148].mxu0 }
 0x21a   : > { %v1764_v25 = vpop.f32.mrb[148].mxu1  ;;  %v7654_v14 = vadd.f32 %v1942_v26, %v1797_v2  ;;  %v6059_v18 = vpop.f32.mrb[149].mxu0 }
 0x21b   : > { %v1799_v22 = vadd.f32 %v1764_v25, %v7517_v17  ;;  %v6025_v28 = vpop.f32.mrb[149].mxu1  ;;  %v1945_v40 = vpop.f32.mrb[150].mxu0  ;;  %v7668_v17 = vld [vmem:[#allocation2 + $0x84] sm:$0xff] }
 0x21c   : > { %v1767_v36 = vpop.f32.mrb[150].mxu1  ;;  %v7659_v21 = vadd.f32 %v1945_v40, %v1798_v8  ;;  %v6060_v31 = vpop.f32.mrb[151].mxu0  ;;  %v2945_v51 = vpack.c.bf16 %v7668_v17, %v7666_v52  ;;  %v2752_v8 = vld [vmem:[#allocation2 + $0xa3] sm:$0xff] }
 0x21d   : > { %v1800_v50 = vadd.f32 %v1767_v36, %v7520_v47  ;;  %v6026_v29 = vpop.f32.mrb[151].mxu1 }
 0x21e   : > { %6286 = vmatmul.mubr.msk.bf16.gmra.mrb[0].mxu0 %vm299_vm1, %v2944_v24 }
 0x21f   : > { %6252 = vmatmul.mubr.msk.bf16.gmra.mrb[0].mxu1 %vm299_vm1, %v2759_v30  ;;  %6289 = vmatprep.mubr.msk.bf16.mxu0 %vm6763_vm0, %v6762_v1 }
 0x220   : > { %6255 = vmatprep.mubr.msk.bf16.mxu1 %vm6763_vm0, %v6762_v1 }
 0x221   : > { %v1950_v44 = vpop.f32.mrb[152].mxu0 }
 0x222   : > { %v1772_v56 = vpop.f32.mrb[152].mxu1  ;;  %v7672_v47 = vadd.f32 %v1950_v44, %v1799_v22  ;;  %v6063_v35 = vpop.f32.mrb[153].mxu0  ;;  %v2761_v22 = vpack.c.bf16 %v2752_v8, %v2751_v6 }
 0x223   : > { %v1801_v5 = vadd.f32 %v1772_v56, %v7529_v43  ;;  %v6029_v23 = vpop.f32.mrb[153].mxu1  ;;  %v1953_v34 = vpop.f32.mrb[154].mxu0  ;;  %v7686_v43 = vld [vmem:[#allocation2 + $0x94] sm:$0xff] }
 0x224   : > { %v1775_v33 = vpop.f32.mrb[154].mxu1  ;;  %v7677_v2 = vadd.f32 %v1953_v34, %v1800_v50  ;;  %v6064_v58 = vpop.f32.mrb[155].mxu0  ;;  %v2946_v26 = vpack.c.bf16 %v7686_v43, %v7684_v0  ;;  %v7702_v50 = vld [vmem:[#allocation2 + $0x9c] sm:$0xff] }
 0x225   : > { %v1802_v3 = vadd.f32 %v1775_v33, %v7532_v41  ;;  %v6030_v63 = vpop.f32.mrb[155].mxu1 }
 0x226   : > { %6290 = vmatmul.mubr.msk.bf16.gmra.mrb[4].mxu0 %vm299_vm1, %v2945_v51 }
 0x227   : > { %6256 = vmatmul.mubr.msk.bf16.gmra.mrb[4].mxu1 %vm299_vm1, %v2760_v53  ;;  %6293 = vmatprep.mubr.msk.bf16.mxu0 %vm6763_vm0, %v6762_v1  ;;  %v6730_v53 = vld [vmem:[%s8506_s2 + $0x88] sm:$0xff]  }
 0x228   : > { %6259 = vmatprep.mubr.msk.bf16.mxu1 %vm6763_vm0, %v6762_v1 }
 0x229   : > { %v1958_v13 = vpop.f32.mrb[156].mxu0 }
 0x22a   : > { %v1780_v37 = vpop.f32.mrb[156].mxu1  ;;  %v7690_v41 = vadd.f32 %v1958_v13, %v1801_v5  ;;  %v6067_v10 = vpop.f32.mrb[157].mxu0  ;;  %v3125_v5 = vpack.c.bf16 %v7573_v19, %v7556_v15  ;;  %v3294_v15 = vld [vmem:[#allocation2 + $0x2d] sm:$0xff] }
 0x22b   : > { %v1803_v25 = vadd.f32 %v1780_v37, %v7541_v59  ;;  %v6033_v18 = vpop.f32.mrb[157].mxu1  ;;  %v1961_v24 = vpop.f32.mrb[158].mxu0  ;;  %v7704_v59 = vld [vmem:[#allocation2 + $0xa4] sm:$0xff] }
 0x22c   : > { %v1783_v28 = vpop.f32.mrb[158].mxu1  ;;  %v7695_v40 = vadd.f32 %v1961_v24, %v1802_v3  ;;  %v6068_v30 = vpop.f32.mrb[159].mxu0 }
 0x22d   : > { %v1804_v36 = vadd.f32 %v1783_v28, %v7544_v11  ;;  %v6034_v31 = vpop.f32.mrb[159].mxu1  ;;  %v2947_v11 = vpack.c.bf16 %v7704_v59, %v7702_v50 }
 0x22e   : > { %6294 = vmatmul.mubr.msk.bf16.gmra.mrb[8].mxu0 %vm299_vm1, %v2946_v26  ;;  %v3126_v26 = vpack.c.bf16 %v7594_v61, %v7575_v27 }
 0x22f   : > { %6260 = vmatmul.mubr.msk.bf16.gmra.mrb[8].mxu1 %vm299_vm1, %v2761_v22  ;;  %6297 = vmatprep.mubr.msk.bf16.mxu0 %vm6763_vm0, %v6762_v1 }
 0x230   : > { %6303 = vmatprep.mubr.msk.bf16.mxu1 %vm6763_vm0, %v6762_v1 }
 0x231   : > { %v1966_v29 = vpop.f32.mrb[160].mxu0 }
 0x232   : > { %v2088_v45 = vpop.f32.mrb[160].mxu1  ;;  %v6071_v46 = vpop.f32.mrb[161].mxu0  ;;  %v7710_v44 = vadd.f32 %v1966_v29, %v1803_v25  ;;  %v6731_v25 = vld [vmem:[%s8506_s2 + $0x90] sm:$0xff]  }
 0x233   : > { %v2159_v56 = vadd.f32 %v2088_v45, %v7561_v7  ;;  %v6077_v35 = vpop.f32.mrb[161].mxu1  ;;  %v1969_v51 = vpop.f32.mrb[162].mxu0  ;;  %v3293_v7 = vld [vmem:[#allocation2 + $0x25] sm:$0xff] }
 0x234   : > { %v2091_v23 = vpop.f32.mrb[162].mxu1  ;;  %v6072_v34 = vpop.f32.mrb[163].mxu0  ;;  %v7718_v33 = vadd.f32 %v1969_v51, %v1804_v36  ;;  %v3296_v36 = vld [vmem:[#allocation2 + $0x3d] sm:$0xff] }
 0x235   : > { %v2160_v58 = vadd.f32 %v2091_v23, %v7568_v32  ;;  %v6078_v3 = vpop.f32.mrb[163].mxu1  ;;  %v3311_v32 = vpack.c.bf16 %v3294_v15, %v3293_v7 }
 0x236   : > { %6298 = vmatmul.mubr.msk.bf16.gmra.mrb[12].mxu0 %vm299_vm1, %v2947_v11 }
 0x237   : > { %6304 = vmatmul.mubr.msk.bf16.vlgmr.msra.gmra.mrb[12].mxu1 %vm299_vm1, %v3125_v5  ;;  %6341 = vmatprep.mubr.msk.bf16.mxu0 %vm6763_vm0, %v6762_v1 }
 0x238   : > { %6378 = vmatpush3.bf16.msra.mxu1 %v6730_v53  ;;  %6307 = vmatprep.mubr.msk.bf16.mxu1 %vm6763_vm0, %v6762_v1  ;;  %v3298_v53 = vld [vmem:[#allocation2 + $0x4d] sm:$0xff] }
 0x239   : > { %v2274_v19 = vpop.f32.mrb[164].mxu0  ;;  %6453 = vmatprep.subr.bf16.mxu1 %v6762_v1 }
 0x23a   : > { %v2096_v63 = vpop.f32.mrb[164].mxu1  ;;  %v6115_v6 = vpop.f32.mrb[165].mxu0  ;;  %v7728_v8 = vadd.f32 %v2274_v19, %v2159_v56  ;;  %v3127_v56 = vpack.c.bf16 %v7612_v20, %v7596_v54 }
 0x23b   : > { %v2161_v13 = vadd.f32 %v2096_v63, %v7582_v48  ;;  %v6081_v37 = vpop.f32.mrb[165].mxu1  ;;  %v2277_v10 = vpop.f32.mrb[166].mxu0  ;;  %v3295_v48 = vld [vmem:[#allocation2 + $0x35] sm:$0xff]  ;;  %v3128_v63 = vpack.c.bf16 %v7630_v55, %v7614_v4 }
 0x23c   : > { %v2099_v18 = vpop.f32.mrb[166].mxu1  ;;  %v6116_v24 = vpop.f32.mrb[167].mxu0  ;;  %v7736_v22 = vadd.f32 %v2277_v10, %v2160_v58 }
 0x23d   : > { %v2162_v28 = vadd.f32 %v2099_v18, %v7587_v60  ;;  %v6082_v30 = vpop.f32.mrb[167].mxu1  ;;  %v3312_v60 = vpack.c.bf16 %v3296_v36, %v3295_v48  ;;  %v3129_v48 = vpack.c.bf16 %v7648_v12, %v7632_v38 }
 0x23e   : > { %6342 = vmatmul.mubr.msk.bf16.vlgmr.msra.gmra.mrb[16].mxu0 %vm299_vm1, %v3311_v32 }
 0x23f   : > { %6308 = vmatmul.mubr.msk.bf16.gmra.mrb[16].mxu1 %vm299_vm1, %v3126_v26  ;;  %6416 = vmatpush3.bf16.msra.mxu0 %v6731_v25  ;;  %v3300_v26 = vld [vmem:[#allocation2 + $0x5d] sm:$0xff] }
 0x240   : > { %6311 = vmatprep.mubr.msk.bf16.mxu1 %vm6763_vm0, %v6762_v1  ;;  %6345 = vmatprep.mubr.msk.bf16.mxu0 %vm6763_vm0, %v6762_v1 }
 0x241   : > { %v2282_v27 = vpop.f32.mrb[168].mxu0  ;;  %6491 = vmatprep.subr.bf16.mxu0 %v6762_v1 }
 0x242   : > { %v2104_v61 = vpop.f32.mrb[168].mxu1  ;;  %v6119_v31 = vpop.f32.mrb[169].mxu0  ;;  %v7746_v29 = vadd.f32 %v2282_v27, %v2161_v13 }
 0x243   : > { %v2163_v45 = vadd.f32 %v2104_v61, %v7600_v16  ;;  %v6085_v46 = vpop.f32.mrb[169].mxu1  ;;  %v2285_v11 = vpop.f32.mrb[170].mxu0  ;;  %v3297_v16 = vld [vmem:[#allocation2 + $0x45] sm:$0xff] }
 0x244   : > { %v2107_v35 = vpop.f32.mrb[170].mxu1  ;;  %v6120_v51 = vpop.f32.mrb[171].mxu0  ;;  %v7751_v5 = vadd.f32 %v2285_v11, %v2162_v28  ;;  %v3313_v3 = vpack.c.bf16 %v3298_v53, %v3297_v16 }
 0x245   : > { %v2164_v23 = vadd.f32 %v2107_v35, %v7605_v9  ;;  %v6086_v34 = vpop.f32.mrb[171].mxu1 }
 0x246   : > { %6346 = vmatmul.mubr.msk.bf16.gmra.mrb[20].mxu0 %vm299_vm1, %v3312_v60 }
 0x247   : > { %6312 = vmatmul.mubr.msk.bf16.gmra.mrb[20].mxu1 %vm299_vm1, %v3127_v56  ;;  %6349 = vmatprep.mubr.msk.bf16.mxu0 %vm6763_vm0, %v6762_v1 }
 0x248   : > { %6315 = vmatprep.mubr.msk.bf16.mxu1 %vm6763_vm0, %v6762_v1 }
 0x249   : > { %v2290_v54 = vpop.f32.mrb[172].mxu0 }
 0x24a   : > { %v2112_v20 = vpop.f32.mrb[172].mxu1  ;;  %v6123_v58 = vpop.f32.mrb[173].mxu0  ;;  %v7760_v7 = vadd.f32 %v2290_v54, %v2163_v45  ;;  %v3302_v45 = vld [vmem:[#allocation2 + $0x6d] sm:$0xff] }
 0x24b   : > { %v2165_v9 = vadd.f32 %v2112_v20, %v7618_v39  ;;  %v6089_v15 = vpop.f32.mrb[173].mxu1  ;;  %v2293_v19 = vpop.f32.mrb[174].mxu0  ;;  %v3299_v39 = vld [vmem:[#allocation2 + $0x55] sm:$0xff]  ;;  %v3304_v58 = vld [vmem:[#allocation2 + $0x7d] sm:$0xff] }
 0x24c   : > { %v2115_v6 = vpop.f32.mrb[174].mxu1  ;;  %v6124_v32 = vpop.f32.mrb[175].mxu0  ;;  %v7765_v13 = vadd.f32 %v2293_v19, %v2164_v23  ;;  %v3314_v18 = vpack.c.bf16 %v3300_v26, %v3299_v39  ;;  %v3130_v23 = vpack.c.bf16 %v7666_v52, %v7650_v57 }
 0x24d   : > { %v2166_v37 = vadd.f32 %v2115_v6, %v7623_v42  ;;  %v6090_v10 = vpop.f32.mrb[175].mxu1  ;;  %v3131_v6 = vpack.c.bf16 %v7684_v0, %v7668_v17 }
 0x24e   : > { %6350 = vmatmul.mubr.msk.bf16.gmra.mrb[24].mxu0 %vm299_vm1, %v3313_v3 }
 0x24f   : > { %6316 = vmatmul.mubr.msk.bf16.gmra.mrb[24].mxu1 %vm299_vm1, %v3128_v63  ;;  %6353 = vmatprep.mubr.msk.bf16.mxu0 %vm6763_vm0, %v6762_v1 }
 0x250   : > { %6319 = vmatprep.mubr.msk.bf16.mxu1 %vm6763_vm0, %v6762_v1 }
 0x251   : > { %v2298_v4 = vpop.f32.mrb[176].mxu0 }
 0x252   : > { %v2120_v55 = vpop.f32.mrb[176].mxu1  ;;  %v6127_v25 = vpop.f32.mrb[177].mxu0  ;;  %v7774_v24 = vadd.f32 %v2298_v4, %v2165_v9  ;;  %v3306_v4 = vld [vmem:[#allocation2 + $0x8d] sm:$0xff] }
 0x253   : > { %v2167_v42 = vadd.f32 %v2120_v55, %v7636_v49  ;;  %v6093_v28 = vpop.f32.mrb[177].mxu1  ;;  %v2301_v30 = vpop.f32.mrb[178].mxu0  ;;  %v3301_v49 = vld [vmem:[#allocation2 + $0x65] sm:$0xff] }
 0x254   : > { %v2123_v36 = vpop.f32.mrb[178].mxu1  ;;  %v6128_v27 = vpop.f32.mrb[179].mxu0  ;;  %v7779_v61 = vadd.f32 %v2301_v30, %v2166_v37  ;;  %v3315_v11 = vpack.c.bf16 %v3302_v45, %v3301_v49  ;;  %v3132_v30 = vpack.c.bf16 %v7702_v50, %v7686_v43  ;;  %v3308_v49 = vld [vmem:[#allocation2 + $0x9d] sm:$0xff]  ;;  %v3124_v43 = vld [vmem:[#allocation2 + $0xac] sm:$0xff] }
 0x255   : > { %v2168_v31 = vadd.f32 %v2123_v36, %v7641_v62  ;;  %v6094_v60 = vpop.f32.mrb[179].mxu1 }
 0x256   : > { %6354 = vmatmul.mubr.msk.bf16.gmra.mrb[28].mxu0 %vm299_vm1, %v3314_v18 }
 0x257   : > { %6320 = vmatmul.mubr.msk.bf16.gmra.mrb[28].mxu1 %vm299_vm1, %v3129_v48  ;;  %6357 = vmatprep.mubr.msk.bf16.mxu0 %vm6763_vm0, %v6762_v1 }
 0x258   : > { %6323 = vmatprep.mubr.msk.bf16.mxu1 %vm6763_vm0, %v6762_v1 }
 0x259   : > { %v2306_v38 = vpop.f32.mrb[180].mxu0 }
 0x25a   : > { %v2128_v12 = vpop.f32.mrb[180].mxu1  ;;  %v6131_v46 = vpop.f32.mrb[181].mxu0  ;;  %v7788_v56 = vadd.f32 %v2306_v38, %v2167_v42 }
 0x25b   : > { %v2169_v62 = vadd.f32 %v2128_v12, %v7654_v14  ;;  %v6097_v35 = vpop.f32.mrb[181].mxu1  ;;  %v2309_v51 = vpop.f32.mrb[182].mxu0  ;;  %v3303_v14 = vld [vmem:[#allocation2 + $0x75] sm:$0xff] }
 0x25c   : > { %v2131_v34 = vpop.f32.mrb[182].mxu1  ;;  %v6132_v16 = vpop.f32.mrb[183].mxu0  ;;  %v7793_v53 = vadd.f32 %v2309_v51, %v2168_v31  ;;  %v3316_v9 = vpack.c.bf16 %v3304_v58, %v3303_v14  ;;  %v3133_v35 = vpack.c.bf16 %v3124_v43, %v7704_v59  ;;  %v3479_v59 = vld [vmem:[#allocation2 + $0x26] sm:$0xff]  ;;  %v3480_v14 = vld [vmem:[#allocation2 + $0x2e] sm:$0xff] }
 0x25d   : > { %v2170_v54 = vadd.f32 %v2131_v34, %v7659_v21  ;;  %v6098_v20 = vpop.f32.mrb[183].mxu1  ;;  %v323_v43 = vld [vmem:[%s6844_s28 + $0x28] sm:$0xff] }
 0x25e   : > { %6358 = vmatmul.mubr.msk.bf16.gmra.mrb[32].mxu0 %vm299_vm1, %v3315_v11  ;;  %v3309_v20 = vld [vmem:[#allocation2 + $0xa5] sm:$0xff]  ;;  %341 = vst.msk [vmem:[#allocation2 + $0xb8] sm:$0xff] %vm299_vm1, %v323_v43 }
 0x25f   : > { %6324 = vmatmul.mubr.msk.bf16.gmra.mrb[32].mxu1 %vm299_vm1, %v3130_v23  ;;  %6361 = vmatprep.mubr.msk.bf16.mxu0 %vm6763_vm0, %v6762_v1 }
 0x260   : > { %6327 = vmatprep.mubr.msk.bf16.mxu1 %vm6763_vm0, %v6762_v1 }
 0x261   : > { %v2314_v57 = vpop.f32.mrb[184].mxu0 }
 0x262   : > { %v2136_v52 = vpop.f32.mrb[184].mxu1  ;;  %v6135_v3 = vpop.f32.mrb[185].mxu0  ;;  %v7802_v15 = vadd.f32 %v2314_v57, %v2169_v62 }
 0x263   : > { %v2171_v21 = vadd.f32 %v2136_v52, %v7672_v47  ;;  %v6101_v19 = vpop.f32.mrb[185].mxu1  ;;  %v2317_v63 = vpop.f32.mrb[186].mxu0  ;;  %v3305_v47 = vld [vmem:[#allocation2 + $0x85] sm:$0xff] }
 0x264   : > { %v2139_v32 = vpop.f32.mrb[186].mxu1  ;;  %v6136_v37 = vpop.f32.mrb[187].mxu0  ;;  %v7807_v10 = vadd.f32 %v2317_v63, %v2170_v54  ;;  %v3317_v25 = vpack.c.bf16 %v3306_v4, %v3305_v47  ;;  %v3497_v63 = vpack.c.bf16 %v3480_v14, %v3479_v59  ;;  %v3666_v4 = vld [vmem:[#allocation2 + $0x2f] sm:$0xff] }
 0x265   : > { %v2172_v39 = vadd.f32 %v2139_v32, %v7677_v2  ;;  %v6102_v26 = vpop.f32.mrb[187].mxu1 }
 0x266   : > { %6362 = vmatmul.mubr.msk.bf16.gmra.mrb[36].mxu0 %vm299_vm1, %v3316_v9 }
 0x267   : > { %6328 = vmatmul.mubr.msk.bf16.gmra.mrb[36].mxu1 %vm299_vm1, %v3131_v6  ;;  %6365 = vmatprep.mubr.msk.bf16.mxu0 %vm6763_vm0, %v6762_v1 }
 0x268   : > { %6331 = vmatprep.mubr.msk.bf16.mxu1 %vm6763_vm0, %v6762_v1 }
 0x269   : > { %v2322_v17 = vpop.f32.mrb[188].mxu0 }
 0x26a   : > { %v2144_v0 = vpop.f32.mrb[188].mxu1  ;;  %v6139_v55 = vpop.f32.mrb[189].mxu0  ;;  %v7816_v18 = vadd.f32 %v2322_v17, %v2171_v21  ;;  %v3481_v17 = vld [vmem:[#allocation2 + $0x36] sm:$0xff] }
 0x26b   : > { %v2173_v2 = vadd.f32 %v2144_v0, %v7690_v41  ;;  %v6105_v42 = vpop.f32.mrb[189].mxu1  ;;  %v2325_v28 = vpop.f32.mrb[190].mxu0  ;;  %v3307_v41 = vld [vmem:[#allocation2 + $0x95] sm:$0xff]  ;;  %v3482_v0 = vld [vmem:[#allocation2 + $0x3e] sm:$0xff] }
 0x26c   : > { %v2147_v48 = vpop.f32.mrb[190].mxu1  ;;  %v6140_v36 = vpop.f32.mrb[191].mxu0  ;;  %v7821_v27 = vadd.f32 %v2325_v28, %v2172_v39  ;;  %v3318_v12 = vpack.c.bf16 %v3308_v49, %v3307_v41  ;;  %v6732_v39 = vld [vmem:[%s8506_s2 + $0x98] sm:$0xff]  }
 0x26d   : > { %v2174_v31 = vadd.f32 %v2147_v48, %v7695_v40  ;;  %v6106_v60 = vpop.f32.mrb[191].mxu1  ;;  %v3498_v36 = vpack.c.bf16 %v3482_v0, %v3481_v17 }
 0x26e   : > { %6366 = vmatmul.mubr.msk.bf16.gmra.mrb[40].mxu0 %vm299_vm1, %v3317_v25 }
 0x26f   : > { %6332 = vmatmul.mubr.msk.bf16.gmra.mrb[40].mxu1 %vm299_vm1, %v3132_v30  ;;  %6369 = vmatprep.mubr.msk.bf16.mxu0 %vm6763_vm0, %v6762_v1 }
 0x270   : > { %6335 = vmatprep.mubr.msk.bf16.mxu1 %vm6763_vm0, %v6762_v1 }
 0x271   : > { %v2330_v50 = vpop.f32.mrb[192].mxu0 }
 0x272   : > { %v2152_v45 = vpop.f32.mrb[192].mxu1  ;;  %v6143_v38 = vpop.f32.mrb[193].mxu0  ;;  %v7830_v46 = vadd.f32 %v2330_v50, %v2173_v2 }
 0x273   : > { %v2175_v40 = vadd.f32 %v2152_v45, %v7710_v44  ;;  %v6109_v11 = vpop.f32.mrb[193].mxu1  ;;  %v2333_v62 = vpop.f32.mrb[194].mxu0  ;;  %v3310_v44 = vld [vmem:[#allocation2 + $0xad] sm:$0xff]  ;;  %v3668_v38 = vld [vmem:[#allocation2 + $0x3f] sm:$0xff] }
 0x274   : > { %v2155_v51 = vpop.f32.mrb[194].mxu1  ;;  %v6144_v23 = vpop.f32.mrb[195].mxu0  ;;  %v7834_v34 = vadd.f32 %v2333_v62, %v2174_v31  ;;  %v3319_v3 = vpack.c.bf16 %v3310_v44, %v3309_v20  ;;  %v6733_v31 = vld [vmem:[%s8506_s2 + $0xa0] sm:$0xff]  }
 0x275   : > { %v2176_v16 = vadd.f32 %v2155_v51, %v7718_v33  ;;  %v6110_v54 = vpop.f32.mrb[195].mxu1 }
 0x276   : > { %6370 = vmatmul.mubr.msk.bf16.gmra.mrb[44].mxu0 %vm299_vm1, %v3318_v12  ;;  %v3483_v12 = vld [vmem:[#allocation2 + $0x46] sm:$0xff] }
 0x277   : > { %6336 = vmatmul.mubr.msk.bf16.gmra.mrb[44].mxu1 %vm299_vm1, %v3133_v35  ;;  %6373 = vmatprep.mubr.msk.bf16.mxu0 %vm6763_vm0, %v6762_v1 }
 0x278   : > { %6379 = vmatprep.mubr.msk.bf16.mxu1 %vm6763_vm0, %v6762_v1 }
 0x279   : > { %v2338_v58 = vpop.f32.mrb[196].mxu0 }
 0x27a   : > { %v7843_v57 = vadd.f32 %v2338_v58, %v2175_v40  ;;  %v2460_v52 = vpop.f32.mrb[196].mxu1  ;;  %v6147_v33 = vpop.f32.mrb[197].mxu0  ;;  %v3484_v40 = vld [vmem:[#allocation2 + $0x4e] sm:$0xff] }
 0x27b   : > { %v2531_v9 = vadd.f32 %v2460_v52, %v7728_v8  ;;  %v6153_v21 = vpop.f32.mrb[197].mxu1  ;;  %v2341_v19 = vpop.f32.mrb[198].mxu0  ;;  %v3665_v8 = vld [vmem:[#allocation2 + $0x27] sm:$0xff]  ;;  %v3499_v20 = vpack.c.bf16 %v3484_v40, %v3483_v12 }
 0x27c   : > { %v7846_v6 = vadd.f32 %v2341_v19, %v2176_v16  ;;  %v2463_v32 = vpop.f32.mrb[198].mxu1  ;;  %v6148_v37 = vpop.f32.mrb[199].mxu0  ;;  %v3683_v42 = vpack.c.bf16 %v3666_v4, %v3665_v8  ;;  %v3669_v33 = vld [vmem:[#allocation2 + $0x47] sm:$0xff] }
 0x27d   : > { %v2532_v26 = vadd.f32 %v2463_v32, %v7736_v22  ;;  %v6154_v47 = vpop.f32.mrb[199].mxu1  ;;  %v3673_v40 = vld [vmem:[#allocation2 + $0x67] sm:$0xff] }
 0x27e   : > { %6374 = vmatmul.mubr.msk.bf16.gmra.mrb[48].mxu0 %vm299_vm1, %v3319_v3  ;;  %v3670_v3 = vld [vmem:[#allocation2 + $0x4f] sm:$0xff] }
 0x27f   : > { %6380 = vmatmul.mubr.msk.bf16.vlgmr.msra.gmra.mrb[48].mxu1 %vm299_vm1, %v3497_v63  ;;  %6417 = vmatprep.mubr.msk.bf16.mxu0 %vm6763_vm0, %v6762_v1  ;;  %v3685_v32 = vpack.c.bf16 %v3670_v3, %v3669_v33 }
 0x280   : > { %6454 = vmatpush3.bf16.msra.mxu1 %v6732_v39  ;;  %6383 = vmatprep.mubr.msk.bf16.mxu1 %vm6763_vm0, %v6762_v1 }
 0x281   : > { %v2646_v55 = vpop.f32.mrb[200].mxu0  ;;  %6529 = vmatprep.subr.bf16.mxu1 %v6762_v1 }
 0x282   : > { %v2468_v22 = vpop.f32.mrb[200].mxu1  ;;  %v7859_v25 = vadd.f32 %v2646_v55, %v2531_v9  ;;  %v6191_v2 = vpop.f32.mrb[201].mxu0  ;;  %v3486_v9 = vld [vmem:[#allocation2 + $0x5e] sm:$0xff] }
 0x283   : > { %v2533_v28 = vadd.f32 %v2468_v22, %v7746_v29  ;;  %v6157_v30 = vpop.f32.mrb[201].mxu1  ;;  %v2649_v48 = vpop.f32.mrb[202].mxu0  ;;  %v3667_v29 = vld [vmem:[#allocation2 + $0x37] sm:$0xff]  ;;  %v3672_v2 = vld [vmem:[#allocation2 + $0x5f] sm:$0xff] }
 0x284   : > { %v2471_v60 = vpop.f32.mrb[202].mxu1  ;;  %v7865_v41 = vadd.f32 %v2649_v48, %v2532_v26  ;;  %v6192_v49 = vpop.f32.mrb[203].mxu0  ;;  %v3684_v51 = vpack.c.bf16 %v3668_v38, %v3667_v29  ;;  %v3671_v22 = vld [vmem:[#allocation2 + $0x57] sm:$0xff] }
 0x285   : > { %v2534_v50 = vadd.f32 %v2471_v60, %v7751_v5  ;;  %v6158_v45 = vpop.f32.mrb[203].mxu1 }
 0x286   : > { %6418 = vmatmul.mubr.msk.bf16.vlgmr.msra.gmra.mrb[52].mxu0 %vm299_vm1, %v3683_v42  ;;  %v3488_v42 = vld [vmem:[#allocation2 + $0x6e] sm:$0xff] }
 0x287   : > { %6384 = vmatmul.mubr.msk.bf16.gmra.mrb[52].mxu1 %vm299_vm1, %v3498_v36  ;;  %6492 = vmatpush3.bf16.msra.mxu0 %v6733_v31  ;;  %v3686_v36 = vpack.c.bf16 %v3672_v2, %v3671_v22 }
 0x288   : > { %6387 = vmatprep.mubr.msk.bf16.mxu1 %vm6763_vm0, %v6762_v1  ;;  %6421 = vmatprep.mubr.msk.bf16.mxu0 %vm6763_vm0, %v6762_v1 }
 0x289   : > { %v2654_v11 = vpop.f32.mrb[204].mxu0  ;;  %6567 = vmatprep.subr.bf16.mxu0 %v6762_v1 }
 0x28a   : > { %v2476_v5 = vpop.f32.mrb[204].mxu1  ;;  %v7877_v62 = vadd.f32 %v2654_v11, %v2533_v28  ;;  %v6195_v35 = vpop.f32.mrb[205].mxu0  ;;  %v3674_v11 = vld [vmem:[#allocation2 + $0x6f] sm:$0xff] }
 0x28b   : > { %v2535_v23 = vadd.f32 %v2476_v5, %v7760_v7  ;;  %v6161_v16 = vpop.f32.mrb[205].mxu1  ;;  %v2657_v54 = vpop.f32.mrb[206].mxu0  ;;  %v3485_v7 = vld [vmem:[#allocation2 + $0x56] sm:$0xff]  ;;  %v3490_v5 = vld [vmem:[#allocation2 + $0x7e] sm:$0xff] }
 0x28c   : > { %v2479_v44 = vpop.f32.mrb[206].mxu1  ;;  %v7880_v59 = vadd.f32 %v2657_v54, %v2534_v50  ;;  %v6196_v14 = vpop.f32.mrb[207].mxu0  ;;  %v3500_v47 = vpack.c.bf16 %v3486_v9, %v3485_v7  ;;  %v3687_v16 = vpack.c.bf16 %v3674_v11, %v3673_v40  ;;  %v3675_v9 = vld [vmem:[#allocation2 + $0x77] sm:$0xff] }
 0x28d   : > { %v2536_v58 = vadd.f32 %v2479_v44, %v7765_v13  ;;  %v6162_v52 = vpop.f32.mrb[207].mxu1 }
 0x28e   : > { %6422 = vmatmul.mubr.msk.bf16.gmra.mrb[56].mxu0 %vm299_vm1, %v3684_v51 }
 0x28f   : > { %6388 = vmatmul.mubr.msk.bf16.gmra.mrb[56].mxu1 %vm299_vm1, %v3499_v20  ;;  %6425 = vmatprep.mubr.msk.bf16.mxu0 %vm6763_vm0, %v6762_v1 }
 0x290   : > { %6391 = vmatprep.mubr.msk.bf16.mxu1 %vm6763_vm0, %v6762_v1 }
 0x291   : > { %v2662_v21 = vpop.f32.mrb[208].mxu0 }
 0x292   : > { %v2484_v19 = vpop.f32.mrb[208].mxu1  ;;  %v7889_v63 = vadd.f32 %v2662_v21, %v2535_v23  ;;  %v6199_v13 = vpop.f32.mrb[209].mxu0  ;;  %v3676_v21 = vld [vmem:[#allocation2 + $0x7f] sm:$0xff] }
 0x293   : > { %v2537_v37 = vadd.f32 %v2484_v19, %v7774_v24  ;;  %v6165_v39 = vpop.f32.mrb[209].mxu1  ;;  %v2665_v26 = vpop.f32.mrb[210].mxu0  ;;  %v3487_v24 = vld [vmem:[#allocation2 + $0x66] sm:$0xff]  ;;  %v3492_v19 = vld [vmem:[#allocation2 + $0x8e] sm:$0xff] }
 0x294   : > { %v2487_v8 = vpop.f32.mrb[210].mxu1  ;;  %v7892_v4 = vadd.f32 %v2665_v26, %v2536_v58  ;;  %v6200_v17 = vpop.f32.mrb[211].mxu0  ;;  %v3501_v43 = vpack.c.bf16 %v3488_v42, %v3487_v24  ;;  %v3688_v39 = vpack.c.bf16 %v3676_v21, %v3675_v9  ;;  %v3677_v42 = vld [vmem:[#allocation2 + $0x87] sm:$0xff] }
 0x295   : > { %v2538_v0 = vadd.f32 %v2487_v8, %v7779_v61  ;;  %v6166_v55 = vpop.f32.mrb[211].mxu1 }
 0x296   : > { %6426 = vmatmul.mubr.msk.bf16.gmra.mrb[60].mxu0 %vm299_vm1, %v3685_v32 }
 0x297   : > { %6392 = vmatmul.mubr.msk.bf16.gmra.mrb[60].mxu1 %vm299_vm1, %v3500_v47  ;;  %6429 = vmatprep.mubr.msk.bf16.mxu0 %vm6763_vm0, %v6762_v1 }
 0x298   : > { %6395 = vmatprep.mubr.msk.bf16.mxu1 %vm6763_vm0, %v6762_v1 }
 0x299   : > { %v2670_v28 = vpop.f32.mrb[212].mxu0 }
 0x29a   : > { %v2492_v30 = vpop.f32.mrb[212].mxu1  ;;  %v7901_v48 = vadd.f32 %v2670_v28, %v2537_v37  ;;  %v6203_v61 = vpop.f32.mrb[213].mxu0  ;;  %v3678_v28 = vld [vmem:[#allocation2 + $0x8f] sm:$0xff] }
 0x29b   : > { %v2539_v31 = vadd.f32 %v2492_v30, %v7788_v56  ;;  %v6169_v60 = vpop.f32.mrb[213].mxu1  ;;  %v2673_v49 = vpop.f32.mrb[214].mxu0  ;;  %v3489_v56 = vld [vmem:[#allocation2 + $0x76] sm:$0xff]  ;;  %v3494_v30 = vld [vmem:[#allocation2 + $0x9e] sm:$0xff] }
 0x29c   : > { %v2495_v50 = vpop.f32.mrb[214].mxu1  ;;  %v7904_v45 = vadd.f32 %v2673_v49, %v2538_v0  ;;  %v6204_v29 = vpop.f32.mrb[215].mxu0  ;;  %v3502_v14 = vpack.c.bf16 %v3490_v5, %v3489_v56  ;;  %v3689_v60 = vpack.c.bf16 %v3678_v28, %v3677_v42  ;;  %v3679_v5 = vld [vmem:[#allocation2 + $0x97] sm:$0xff]  ;;  %v6734_v28 = vld [vmem:[%s8506_s2 + $0xa8] sm:$0xff]  }
 0x29d   : > { %v2540_v38 = vadd.f32 %v2495_v50, %v7793_v53  ;;  %v6170_v12 = vpop.f32.mrb[215].mxu1 }
 0x29e   : > { %6430 = vmatmul.mubr.msk.bf16.gmra.mrb[64].mxu0 %vm299_vm1, %v3686_v36 }
 0x29f   : > { %6396 = vmatmul.mubr.msk.bf16.gmra.mrb[64].mxu1 %vm299_vm1, %v3501_v43  ;;  %6433 = vmatprep.mubr.msk.bf16.mxu0 %vm6763_vm0, %v6762_v1 }
 0x2a0   : > { %6399 = vmatprep.mubr.msk.bf16.mxu1 %vm6763_vm0, %v6762_v1 }
 0x2a1   : > { %v2678_v35 = vpop.f32.mrb[216].mxu0 }
 0x2a2   : > { %v2500_v51 = vpop.f32.mrb[216].mxu1  ;;  %v7913_v23 = vadd.f32 %v2678_v35, %v2539_v31  ;;  %v6207_v53 = vpop.f32.mrb[217].mxu0  ;;  %v3680_v35 = vld [vmem:[#allocation2 + $0x9f] sm:$0xff] }
 0x2a3   : > { %v2541_v54 = vadd.f32 %v2500_v51, %v7802_v15  ;;  %v6173_v20 = vpop.f32.mrb[217].mxu1  ;;  %v2681_v44 = vpop.f32.mrb[218].mxu0  ;;  %v3491_v15 = vld [vmem:[#allocation2 + $0x86] sm:$0xff]  ;;  %v3496_v51 = vld [vmem:[#allocation2 + $0xae] sm:$0xff] }
 0x2a4   : > { %v2503_v58 = vpop.f32.mrb[218].mxu1  ;;  %v7916_v52 = vadd.f32 %v2681_v44, %v2540_v38  ;;  %v6208_v33 = vpop.f32.mrb[219].mxu0  ;;  %v3503_v17 = vpack.c.bf16 %v3492_v19, %v3491_v15  ;;  %v3690_v20 = vpack.c.bf16 %v3680_v35, %v3679_v5  ;;  %v3681_v19 = vld [vmem:[#allocation2 + $0xa7] sm:$0xff] }
 0x2a5   : > { %v2542_v3 = vadd.f32 %v2503_v58, %v7807_v10  ;;  %v6174_v7 = vpop.f32.mrb[219].mxu1 }
 0x2a6   : > { %6434 = vmatmul.mubr.msk.bf16.gmra.mrb[68].mxu0 %vm299_vm1, %v3687_v16 }
 0x2a7   : > { %6400 = vmatmul.mubr.msk.bf16.gmra.mrb[68].mxu1 %vm299_vm1, %v3502_v14  ;;  %6437 = vmatprep.mubr.msk.bf16.mxu0 %vm6763_vm0, %v6762_v1 }
 0x2a8   : > { %6403 = vmatprep.mubr.msk.bf16.mxu1 %vm6763_vm0, %v6762_v1 }
 0x2a9   : > { %v2686_v13 = vpop.f32.mrb[220].mxu0 }
 0x2aa   : > { %v2508_v32 = vpop.f32.mrb[220].mxu1  ;;  %v7925_v37 = vadd.f32 %v2686_v13, %v2541_v54  ;;  %v6211_v10 = vpop.f32.mrb[221].mxu0  ;;  %v3682_v13 = vld [vmem:[#allocation2 + $0xaf] sm:$0xff] }
 0x2ab   : > { %v2543_v26 = vadd.f32 %v2508_v32, %v7816_v18  ;;  %v6177_v47 = vpop.f32.mrb[221].mxu1  ;;  %v2689_v8 = vpop.f32.mrb[222].mxu0  ;;  %v3493_v18 = vld [vmem:[#allocation2 + $0x96] sm:$0xff] }
 0x2ac   : > { %v2511_v0 = vpop.f32.mrb[222].mxu1  ;;  %v7928_v55 = vadd.f32 %v2689_v8, %v2542_v3  ;;  %v6212_v22 = vpop.f32.mrb[223].mxu0  ;;  %v3504_v29 = vpack.c.bf16 %v3494_v30, %v3493_v18  ;;  %v3852_v32 = vld [vmem:[#allocation2 + $0x30] sm:$0xff]  ;;  %v3691_v47 = vpack.c.bf16 %v3682_v13, %v3681_v19 }
 0x2ad   : > { %v2544_v2 = vadd.f32 %v2511_v0, %v7821_v27  ;;  %v6178_v24 = vpop.f32.mrb[223].mxu1 }
 0x2ae   : > { %6438 = vmatmul.mubr.msk.bf16.gmra.mrb[72].mxu0 %vm299_vm1, %v3688_v39 }
 0x2af   : > { %6404 = vmatmul.mubr.msk.bf16.gmra.mrb[72].mxu1 %vm299_vm1, %v3503_v17  ;;  %6441 = vmatprep.mubr.msk.bf16.mxu0 %vm6763_vm0, %v6762_v1 }
 0x2b0   : > { %6407 = vmatprep.mubr.msk.bf16.mxu1 %vm6763_vm0, %v6762_v1 }
 0x2b1   : > { %v2694_v61 = vpop.f32.mrb[224].mxu0 }
 0x2b2   : > { %v2516_v36 = vpop.f32.mrb[224].mxu1  ;;  %v7937_v31 = vadd.f32 %v2694_v61, %v2543_v26  ;;  %v6215_v27 = vpop.f32.mrb[225].mxu0  ;;  %v324_v61 = vld [vmem:[%s6844_s28 + $0x30] sm:$0xff] }
 0x2b3   : > { %v2545_v49 = vadd.f32 %v2516_v36, %v7830_v46  ;;  %v6181_v43 = vpop.f32.mrb[225].mxu1  ;;  %v2697_v50 = vpop.f32.mrb[226].mxu0  ;;  %v3495_v46 = vld [vmem:[#allocation2 + $0xa6] sm:$0xff]  ;;  %342 = vst.msk [vmem:[#allocation2 + $0xc0] sm:$0xff] %vm299_vm1, %v324_v61 }
 0x2b4   : > { %v2519_v38 = vpop.f32.mrb[226].mxu1  ;;  %v7940_v12 = vadd.f32 %v2697_v50, %v2544_v2  ;;  %v6216_v40 = vpop.f32.mrb[227].mxu0  ;;  %v3505_v33 = vpack.c.bf16 %v3496_v51, %v3495_v46  ;;  %v3854_v36 = vld [vmem:[#allocation2 + $0x40] sm:$0xff] }
 0x2b5   : > { %v2546_v11 = vadd.f32 %v2519_v38, %v7834_v34  ;;  %v6182_v56 = vpop.f32.mrb[227].mxu1 }
 0x2b6   : > { %6442 = vmatmul.mubr.msk.bf16.gmra.mrb[76].mxu0 %vm299_vm1, %v3689_v60 }
 0x2b7   : > { %6408 = vmatmul.mubr.msk.bf16.gmra.mrb[76].mxu1 %vm299_vm1, %v3504_v29  ;;  %6445 = vmatprep.mubr.msk.bf16.mxu0 %vm6763_vm0, %v6762_v1 }
 0x2b8   : > { %6411 = vmatprep.mubr.msk.bf16.mxu1 %vm6763_vm0, %v6762_v1 }
 0x2b9   : > { %v2702_v53 = vpop.f32.mrb[228].mxu0 }
 0x2ba   : > { %v2524_v16 = vpop.f32.mrb[228].mxu1  ;;  %v7949_v54 = vadd.f32 %v2702_v53, %v2545_v49  ;;  %v6219_v34 = vpop.f32.mrb[229].mxu0  ;;  %v3856_v53 = vld [vmem:[#allocation2 + $0x50] sm:$0xff] }
 0x2bb   : > { %v2547_v44 = vadd.f32 %v2524_v16, %v7843_v57  ;;  %v6185_v14 = vpop.f32.mrb[229].mxu1  ;;  %v2705_v58 = vpop.f32.mrb[230].mxu0  ;;  %v3851_v57 = vld [vmem:[#allocation2 + $0x28] sm:$0xff] }
 0x2bc   : > { %v2527_v3 = vpop.f32.mrb[230].mxu1  ;;  %v7952_v7 = vadd.f32 %v2705_v58, %v2546_v11  ;;  %v6220_v9 = vpop.f32.mrb[231].mxu0  ;;  %v3869_v22 = vpack.c.bf16 %v3852_v32, %v3851_v57  ;;  %v6735_v11 = vld [vmem:[%s8506_s2 + $0xb0] sm:$0xff]   ;;  %v3857_v57 = vld [vmem:[#allocation2 + $0x58] sm:$0xff] }
 0x2bd   : > { %v2548_v21 = vadd.f32 %v2527_v3, %v7846_v6  ;;  %v6186_v15 = vpop.f32.mrb[231].mxu1 }
 0x2be   : > { %6446 = vmatmul.mubr.msk.bf16.gmra.mrb[80].mxu0 %vm299_vm1, %v3690_v20 }
 0x2bf   : > { %6412 = vmatmul.mubr.msk.bf16.gmra.mrb[80].mxu1 %vm299_vm1, %v3505_v33  ;;  %6449 = vmatprep.mubr.msk.bf16.mxu0 %vm6763_vm0, %v6762_v1 }
 0x2c0   : > { %6455 = vmatprep.mubr.msk.bf16.mxu1 %vm6763_vm0, %v6762_v1 }
 0x2c1   : > { %v2710_v10 = vpop.f32.mrb[232].mxu0 }
 0x2c2   : > { %v7961_v39 = vadd.f32 %v2710_v10, %v2547_v44  ;;  %v2832_v6 = vpop.f32.mrb[232].mxu1  ;;  %v6223_v26 = vpop.f32.mrb[233].mxu0 }
 0x2c3   : > { %v2903_v8 = vadd.f32 %v2832_v6, %v7859_v25  ;;  %v6229_v17 = vpop.f32.mrb[233].mxu1  ;;  %v2713_v0 = vpop.f32.mrb[234].mxu0  ;;  %v3853_v25 = vld [vmem:[#allocation2 + $0x38] sm:$0xff] }
 0x2c4   : > { %v7964_v2 = vadd.f32 %v2713_v0, %v2548_v21  ;;  %v2835_v24 = vpop.f32.mrb[234].mxu1  ;;  %v6224_v42 = vpop.f32.mrb[235].mxu0  ;;  %v4055_v43 = vpack.c.bf16 %v3853_v25, %v3852_v32  ;;  %v3870_v40 = vpack.c.bf16 %v3854_v36, %v3853_v25 }
 0x2c5   : > { %v2904_v18 = vadd.f32 %v2835_v24, %v7865_v41  ;;  %v6230_v30 = vpop.f32.mrb[235].mxu1 }
 0x2c6   : > { %6450 = vmatmul.mubr.msk.bf16.gmra.mrb[84].mxu0 %vm299_vm1, %v3691_v47  ;;  %v4057_v47 = vpack.c.bf16 %v3857_v57, %v3856_v53  ;;  %v3859_v30 = vld [vmem:[#allocation2 + $0x68] sm:$0xff] }
 0x2c7   : > { %6456 = vmatmul.mubr.msk.bf16.vlgmr.msra.gmra.mrb[84].mxu1 %vm299_vm1, %v3869_v22  ;;  %6493 = vmatprep.mubr.msk.bf16.mxu0 %vm6763_vm0, %v6762_v1 }
 0x2c8   : > { %6530 = vmatpush3.bf16.msra.mxu1 %v6734_v28  ;;  %6459 = vmatprep.mubr.msk.bf16.mxu1 %vm6763_vm0, %v6762_v1 }
 0x2c9   : > { %v3018_v27 = vpop.f32.mrb[236].mxu0  ;;  %6605 = vmatprep.subr.bf16.mxu1 %v6762_v1 }
 0x2ca   : > { %v2840_v41 = vpop.f32.mrb[236].mxu1  ;;  %v7979_v60 = vadd.f32 %v3018_v27, %v2903_v8  ;;  %v6267_v49 = vpop.f32.mrb[237].mxu0 }
 0x2cb   : > { %v2905_v50 = vadd.f32 %v2840_v41, %v7877_v62  ;;  %v6233_v29 = vpop.f32.mrb[237].mxu1  ;;  %v3021_v38 = vpop.f32.mrb[238].mxu0  ;;  %v3855_v62 = vld [vmem:[#allocation2 + $0x48] sm:$0xff] }
 0x2cc   : > { %v2843_v56 = vpop.f32.mrb[238].mxu1  ;;  %v7985_v5 = vadd.f32 %v3021_v38, %v2904_v18  ;;  %v6268_v35 = vpop.f32.mrb[239].mxu0  ;;  %v4056_v44 = vpack.c.bf16 %v3855_v62, %v3854_v36  ;;  %v3871_v3 = vpack.c.bf16 %v3856_v53, %v3855_v62 }
 0x2cd   : > { %v2906_v46 = vadd.f32 %v2843_v56, %v7880_v59  ;;  %v6234_v51 = vpop.f32.mrb[239].mxu1  ;;  %v3861_v35 = vld [vmem:[#allocation2 + $0x78] sm:$0xff] }
 0x2ce   : > { %6494 = vmatmul.mubr.msk.bf16.vlgmr.msra.gmra.mrb[88].mxu0 %vm299_vm1, %v4055_v43 }
 0x2cf   : > { %6460 = vmatmul.mubr.msk.bf16.gmra.mrb[88].mxu1 %vm299_vm1, %v3870_v40  ;;  %6568 = vmatpush3.bf16.msra.mxu0 %v6735_v11 }
 0x2d0   : > { %6463 = vmatprep.mubr.msk.bf16.mxu1 %vm6763_vm0, %v6762_v1  ;;  %6497 = vmatprep.mubr.msk.bf16.mxu0 %vm6763_vm0, %v6762_v1 }
 0x2d1   : > { %v3026_v16 = vpop.f32.mrb[240].mxu0  ;;  %6643 = vmatprep.subr.bf16.mxu0 %v6762_v1 }
 0x2d2   : > { %v2848_v34 = vpop.f32.mrb[240].mxu1  ;;  %v7995_v20 = vadd.f32 %v3026_v16, %v2905_v50  ;;  %v6271_v59 = vpop.f32.mrb[241].mxu0 }
 0x2d3   : > { %v2907_v14 = vadd.f32 %v2848_v34, %v7889_v63  ;;  %v6237_v58 = vpop.f32.mrb[241].mxu1  ;;  %v3029_v33 = vpop.f32.mrb[242].mxu0  ;;  %v3858_v63 = vld [vmem:[#allocation2 + $0x60] sm:$0xff] }
 0x2d4   : > { %v2851_v9 = vpop.f32.mrb[242].mxu1  ;;  %v7998_v21 = vadd.f32 %v3029_v33, %v2906_v46  ;;  %v6272_v15 = vpop.f32.mrb[243].mxu0  ;;  %v3872_v0 = vpack.c.bf16 %v3858_v63, %v3857_v57  ;;  %v4058_v41 = vpack.c.bf16 %v3859_v30, %v3858_v63 }
 0x2d5   : > { %v2908_v19 = vadd.f32 %v2851_v9, %v7892_v4  ;;  %v6238_v13 = vpop.f32.mrb[243].mxu1  ;;  %v3863_v15 = vld [vmem:[#allocation2 + $0x88] sm:$0xff] }
 0x2d6   : > { %6498 = vmatmul.mubr.msk.bf16.gmra.mrb[92].mxu0 %vm299_vm1, %v4056_v44 }
 0x2d7   : > { %6464 = vmatmul.mubr.msk.bf16.gmra.mrb[92].mxu1 %vm299_vm1, %v3871_v3  ;;  %6501 = vmatprep.mubr.msk.bf16.mxu0 %vm6763_vm0, %v6762_v1 }
 0x2d8   : > { %6467 = vmatprep.mubr.msk.bf16.mxu1 %vm6763_vm0, %v6762_v1 }
 0x2d9   : > { %v3034_v32 = vpop.f32.mrb[244].mxu0 }
 0x2da   : > { %v2856_v10 = vpop.f32.mrb[244].mxu1  ;;  %v8007_v6 = vadd.f32 %v3034_v32, %v2907_v14  ;;  %v6275_v26 = vpop.f32.mrb[245].mxu0 }
 0x2db   : > { %v2909_v4 = vadd.f32 %v2856_v10, %v7901_v48  ;;  %v6241_v8 = vpop.f32.mrb[245].mxu1  ;;  %v3037_v17 = vpop.f32.mrb[246].mxu0  ;;  %v3860_v48 = vld [vmem:[#allocation2 + $0x70] sm:$0xff] }
 0x2dc   : > { %v2859_v22 = vpop.f32.mrb[246].mxu1  ;;  %v8010_v24 = vadd.f32 %v3037_v17, %v2908_v19  ;;  %v6276_v42 = vpop.f32.mrb[247].mxu0  ;;  %v3873_v50 = vpack.c.bf16 %v3860_v48, %v3859_v30  ;;  %v4059_v16 = vpack.c.bf16 %v3861_v35, %v3860_v48 }
 0x2dd   : > { %v2910_v28 = vadd.f32 %v2859_v22, %v7904_v45  ;;  %v6242_v18 = vpop.f32.mrb[247].mxu1  ;;  %v3865_v42 = vld [vmem:[#allocation2 + $0x98] sm:$0xff] }
 0x2de   : > { %6502 = vmatmul.mubr.msk.bf16.gmra.mrb[96].mxu0 %vm299_vm1, %v4057_v47 }
 0x2df   : > { %6468 = vmatmul.mubr.msk.bf16.gmra.mrb[96].mxu1 %vm299_vm1, %v3872_v0  ;;  %6505 = vmatprep.mubr.msk.bf16.mxu0 %vm6763_vm0, %v6762_v1 }
 0x2e0   : > { %6471 = vmatprep.mubr.msk.bf16.mxu1 %vm6763_vm0, %v6762_v1 }
 0x2e1   : > { %v3042_v61 = vpop.f32.mrb[248].mxu0 }
 0x2e2   : > { %v2864_v25 = vpop.f32.mrb[248].mxu1  ;;  %v8019_v36 = vadd.f32 %v3042_v61, %v2909_v4  ;;  %v6279_v27 = vpop.f32.mrb[249].mxu0 }
 0x2e3   : > { %v2911_v45 = vadd.f32 %v2864_v25, %v7913_v23  ;;  %v6245_v49 = vpop.f32.mrb[249].mxu1  ;;  %v3045_v43 = vpop.f32.mrb[250].mxu0  ;;  %v3862_v23 = vld [vmem:[#allocation2 + $0x80] sm:$0xff] }
 0x2e4   : > { %v2867_v29 = vpop.f32.mrb[250].mxu1  ;;  %v8022_v38 = vadd.f32 %v3045_v43, %v2910_v28  ;;  %v6280_v40 = vpop.f32.mrb[251].mxu0  ;;  %v3874_v44 = vpack.c.bf16 %v3862_v23, %v3861_v35  ;;  %v4060_v32 = vpack.c.bf16 %v3863_v15, %v3862_v23 }
 0x2e5   : > { %v2912_v11 = vadd.f32 %v2867_v29, %v7916_v52  ;;  %v6246_v56 = vpop.f32.mrb[251].mxu1  ;;  %v3867_v40 = vld [vmem:[#allocation2 + $0xa8] sm:$0xff] }
 0x2e6   : > { %6506 = vmatmul.mubr.msk.bf16.gmra.mrb[100].mxu0 %vm299_vm1, %v4058_v41 }
 0x2e7   : > { %6472 = vmatmul.mubr.msk.bf16.gmra.mrb[100].mxu1 %vm299_vm1, %v3873_v50  ;;  %6509 = vmatprep.mubr.msk.bf16.mxu0 %vm6763_vm0, %v6762_v1 }
 0x2e8   : > { %6475 = vmatprep.mubr.msk.bf16.mxu1 %vm6763_vm0, %v6762_v1 }
 0x2e9   : > { %v3050_v46 = vpop.f32.mrb[252].mxu0 }
 0x2ea   : > { %v2872_v51 = vpop.f32.mrb[252].mxu1  ;;  %v8031_v62 = vadd.f32 %v3050_v46, %v2911_v45  ;;  %v6283_v53 = vpop.f32.mrb[253].mxu0 }
 0x2eb   : > { %v2913_v52 = vadd.f32 %v2872_v51, %v7925_v37  ;;  %v6249_v34 = vpop.f32.mrb[253].mxu1  ;;  %v3053_v59 = vpop.f32.mrb[254].mxu0  ;;  %v3864_v37 = vld [vmem:[#allocation2 + $0x90] sm:$0xff] }
 0x2ec   : > { %v2875_v14 = vpop.f32.mrb[254].mxu1  ;;  %v8034_v58 = vadd.f32 %v3053_v59, %v2912_v11  ;;  %v6284_v33 = vpop.f32.mrb[255].mxu0  ;;  %v3875_v47 = vpack.c.bf16 %v3864_v37, %v3863_v15  ;;  %v4061_v61 = vpack.c.bf16 %v3865_v42, %v3864_v37 }
 0x2ed   : > { %v2914_v3 = vadd.f32 %v2875_v14, %v7928_v55  ;;  %v6250_v9 = vpop.f32.mrb[255].mxu1  ;;  %v4054_v33 = vld [vmem:[#allocation2 + $0xb8] sm:$0xff] }
 0x2ee   : > { %6510 = vmatmul.mubr.msk.bf16.gmra.mrb[104].mxu0 %vm299_vm1, %v4059_v16 }
 0x2ef   : > { %6476 = vmatmul.mubr.msk.bf16.gmra.mrb[104].mxu1 %vm299_vm1, %v3874_v44  ;;  %6513 = vmatprep.mubr.msk.bf16.mxu0 %vm6763_vm0, %v6762_v1 }
 0x2f0   : > { %6479 = vmatprep.mubr.msk.bf16.mxu1 %vm6763_vm0, %v6762_v1 }
 0x2f1   : > { %v3058_v19 = vpop.f32.mrb[0].mxu0 }
 0x2f2   : > { %v2880_v13 = vpop.f32.mrb[0].mxu1  ;;  %v8043_v57 = vadd.f32 %v3058_v19, %v2913_v52  ;;  %v6287_v63 = vpop.f32.mrb[1].mxu0 }
 0x2f3   : > { %v2915_v55 = vadd.f32 %v2880_v13, %v7937_v31  ;;  %v6253_v10 = vpop.f32.mrb[1].mxu1  ;;  %v3061_v26 = vpop.f32.mrb[2].mxu0  ;;  %v3866_v31 = vld [vmem:[#allocation2 + $0xa0] sm:$0xff] }
 0x2f4   : > { %v2883_v4 = vpop.f32.mrb[2].mxu1  ;;  %v8046_v8 = vadd.f32 %v3061_v26, %v2914_v3  ;;  %v6288_v17 = vpop.f32.mrb[3].mxu0  ;;  %v3876_v41 = vpack.c.bf16 %v3866_v31, %v3865_v42  ;;  %v4062_v46 = vpack.c.bf16 %v3867_v40, %v3866_v31  ;;  %v4224_v3 = vld [vmem:[#allocation2 + $0x39] sm:$0xff]  ;;  %v4225_v42 = vld [vmem:[#allocation2 + $0x41] sm:$0xff]  ;;  %v4226_v31 = vld [vmem:[#allocation2 + $0x49] sm:$0xff] }
 0x2f5   : > { %v2916_v0 = vadd.f32 %v2883_v4, %v7940_v12  ;;  %v6254_v22 = vpop.f32.mrb[3].mxu1  ;;  %v6736_v4 = vld [vmem:[%s8506_s2 + $0xb8] sm:$0xff]  }
 0x2f6   : > { %6514 = vmatmul.mubr.msk.bf16.gmra.mrb[108].mxu0 %vm299_vm1, %v4060_v32  ;;  %v4410_v22 = vld [vmem:[#allocation2 + $0x3a] sm:$0xff] }
 0x2f7   : > { %6480 = vmatmul.mubr.msk.bf16.gmra.mrb[108].mxu1 %vm299_vm1, %v3875_v47  ;;  %6517 = vmatprep.mubr.msk.bf16.mxu0 %vm6763_vm0, %v6762_v1 }
 0x2f8   : > { %6483 = vmatprep.mubr.msk.bf16.mxu1 %vm6763_vm0, %v6762_v1 }
 0x2f9   : > { %v3066_v28 = vpop.f32.mrb[4].mxu0 }
 0x2fa   : > { %v2888_v18 = vpop.f32.mrb[4].mxu1  ;;  %v8055_v30 = vadd.f32 %v3066_v28, %v2915_v55  ;;  %v6291_v48 = vpop.f32.mrb[5].mxu0 }
 0x2fb   : > { %v2917_v12 = vadd.f32 %v2888_v18, %v7949_v54  ;;  %v6257_v25 = vpop.f32.mrb[5].mxu1  ;;  %v3069_v27 = vpop.f32.mrb[6].mxu0  ;;  %v3868_v54 = vld [vmem:[#allocation2 + $0xb0] sm:$0xff] }
 0x2fc   : > { %v2891_v45 = vpop.f32.mrb[6].mxu1  ;;  %v8058_v49 = vadd.f32 %v3069_v27, %v2916_v0  ;;  %v6292_v43 = vpop.f32.mrb[7].mxu0  ;;  %v3877_v16 = vpack.c.bf16 %v3868_v54, %v3867_v40 }
 0x2fd   : > { %v2918_v50 = vadd.f32 %v2891_v45, %v7952_v7  ;;  %v6258_v29 = vpop.f32.mrb[7].mxu1  ;;  %v6737_v45 = vld [vmem:[%s8506_s2 + $0xc0] sm:$0xff]  }
 0x2fe   : > { %6518 = vmatmul.mubr.msk.bf16.gmra.mrb[112].mxu0 %vm299_vm1, %v4061_v61 }
 0x2ff   : > { %6484 = vmatmul.mubr.msk.bf16.gmra.mrb[112].mxu1 %vm299_vm1, %v3876_v41  ;;  %6521 = vmatprep.mubr.msk.bf16.mxu0 %vm6763_vm0, %v6762_v1  ;;  %v4242_v41 = vpack.c.bf16 %v4226_v31, %v4225_v42 }
 0x300   : > { %6487 = vmatprep.mubr.msk.bf16.mxu1 %vm6763_vm0, %v6762_v1 }
 0x301   : > { %v3074_v11 = vpop.f32.mrb[8].mxu0 }
 0x302   : > { %v2896_v56 = vpop.f32.mrb[8].mxu1  ;;  %v8067_v35 = vadd.f32 %v3074_v11, %v2917_v12  ;;  %v6295_v23 = vpop.f32.mrb[9].mxu0  ;;  %v4412_v11 = vld [vmem:[#allocation2 + $0x4a] sm:$0xff] }
 0x303   : > { %v2919_v7 = vadd.f32 %v2896_v56, %v7961_v39  ;;  %v6261_v51 = vpop.f32.mrb[9].mxu1  ;;  %v3077_v53 = vpop.f32.mrb[10].mxu0  ;;  %v4223_v39 = vld [vmem:[#allocation2 + $0x31] sm:$0xff]  ;;  %v4228_v23 = vld [vmem:[#allocation2 + $0x59] sm:$0xff] }
 0x304   : > { %v2899_v52 = vpop.f32.mrb[10].mxu1  ;;  %v8070_v34 = vadd.f32 %v3077_v53, %v2918_v50  ;;  %v6296_v59 = vpop.f32.mrb[11].mxu0  ;;  %v4241_v55 = vpack.c.bf16 %v4224_v3, %v4223_v39  ;;  %v4227_v56 = vld [vmem:[#allocation2 + $0x51] sm:$0xff] }
 0x305   : > { %v2920_v44 = vadd.f32 %v2899_v52, %v7964_v2  ;;  %v6262_v14 = vpop.f32.mrb[11].mxu1  ;;  %v4063_v2 = vpack.c.bf16 %v4054_v33, %v3868_v54 }
 0x306   : > { %6522 = vmatmul.mubr.msk.bf16.gmra.mrb[116].mxu0 %vm299_vm1, %v4062_v46 }
 0x307   : > { %6488 = vmatmul.mubr.msk.bf16.gmra.mrb[116].mxu1 %vm299_vm1, %v3877_v16  ;;  %6525 = vmatprep.mubr.msk.bf16.mxu0 %vm6763_vm0, %v6762_v1 }
 0x308   : > { %6531 = vmatprep.mubr.msk.bf16.mxu1 %vm6763_vm0, %v6762_v1 }
 0x309   : > { %v3082_v9 = vpop.f32.mrb[12].mxu0 }
 0x30a   : > { %v8079_v15 = vadd.f32 %v3082_v9, %v2919_v7  ;;  %v3204_v37 = vpop.f32.mrb[12].mxu1  ;;  %v6299_v19 = vpop.f32.mrb[13].mxu0 }
 0x30b   : > { %v3275_v13 = vadd.f32 %v3204_v37, %v7979_v60  ;;  %v6305_v63 = vpop.f32.mrb[13].mxu1  ;;  %v3085_v32 = vpop.f32.mrb[14].mxu0  ;;  %v4409_v60 = vld [vmem:[#allocation2 + $0x32] sm:$0xff]  ;;  %v4414_v19 = vld [vmem:[#allocation2 + $0x5a] sm:$0xff] }
 0x30c   : > { %v8082_v10 = vadd.f32 %v3085_v32, %v2920_v44  ;;  %v3207_v26 = vpop.f32.mrb[14].mxu1  ;;  %v6300_v47 = vpop.f32.mrb[15].mxu0  ;;  %v4427_v61 = vpack.c.bf16 %v4410_v22, %v4409_v60  ;;  %v4243_v44 = vpack.c.bf16 %v4228_v23, %v4227_v56  ;;  %v4413_v37 = vld [vmem:[#allocation2 + $0x52] sm:$0xff] }
 0x30d   : > { %v3276_v17 = vadd.f32 %v3207_v26, %v7985_v5  ;;  %v6306_v0 = vpop.f32.mrb[15].mxu1  ;;  %v4417_v23 = vld [vmem:[#allocation2 + $0x72] sm:$0xff] }
 0x30e   : > { %6526 = vmatmul.mubr.msk.bf16.gmra.mrb[120].mxu0 %vm299_vm1, %v4063_v2  ;;  %v4230_v2 = vld [vmem:[#allocation2 + $0x69] sm:$0xff] }
 0x30f   : > { %6532 = vmatmul.mubr.msk.bf16.vlgmr.msra.gmra.mrb[120].mxu1 %vm299_vm1, %v4241_v55  ;;  %6569 = vmatprep.mubr.msk.bf16.mxu0 %vm6763_vm0, %v6762_v1  ;;  %v4429_v55 = vpack.c.bf16 %v4414_v19, %v4413_v37 }
 0x310   : > { %6606 = vmatpush3.bf16.msra.mxu1 %v6736_v4  ;;  %6535 = vmatprep.mubr.msk.bf16.mxu1 %vm6763_vm0, %v6762_v1 }
 0x311   : > { %v3390_v28 = vpop.f32.mrb[16].mxu0 }
 0x312   : > { %v3212_v18 = vpop.f32.mrb[16].mxu1  ;;  %v8094_v48 = vadd.f32 %v3390_v28, %v3275_v13  ;;  %v6343_v5 = vpop.f32.mrb[17].mxu0  ;;  %v4415_v28 = vld [vmem:[#allocation2 + $0x62] sm:$0xff] }
 0x313   : > { %v3277_v12 = vadd.f32 %v3212_v18, %v7995_v20  ;;  %v6309_v25 = vpop.f32.mrb[17].mxu1  ;;  %v3393_v27 = vpop.f32.mrb[18].mxu0  ;;  %v4411_v20 = vld [vmem:[#allocation2 + $0x42] sm:$0xff]  ;;  %v4416_v18 = vld [vmem:[#allocation2 + $0x6a] sm:$0xff]  ;;  %v4232_v5 = vld [vmem:[#allocation2 + $0x79] sm:$0xff] }
 0x314   : > { %v3215_v43 = vpop.f32.mrb[18].mxu1  ;;  %v8100_v50 = vadd.f32 %v3393_v27, %v3276_v17  ;;  %v6344_v29 = vpop.f32.mrb[19].mxu0  ;;  %v4428_v53 = vpack.c.bf16 %v4412_v11, %v4411_v20  ;;  %v4430_v27 = vpack.c.bf16 %v4416_v18, %v4415_v28 }
 0x315   : > { %v3278_v40 = vadd.f32 %v3215_v43, %v7998_v21  ;;  %v6310_v54 = vpop.f32.mrb[19].mxu1 }
 0x316   : > { %6570 = vmatmul.mubr.msk.bf16.vlgmr.msra.gmra.mrb[124].mxu0 %vm299_vm1, %v4427_v61 }
 0x317   : > { %6536 = vmatmul.mubr.msk.bf16.gmra.mrb[124].mxu1 %vm299_vm1, %v4242_v41  ;;  %6644 = vmatpush3.bf16.msra.mxu0 %v6737_v45 }
 0x318   : > { %6539 = vmatprep.mubr.msk.bf16.mxu1 %vm6763_vm0, %v6762_v1  ;;  %6573 = vmatprep.mubr.msk.bf16.mxu0 %vm6763_vm0, %v6762_v1 }
 0x319   : > { %v3398_v46 = vpop.f32.mrb[20].mxu0 }
 0x31a   : > { %v3220_v7 = vpop.f32.mrb[20].mxu1  ;;  %v8109_v51 = vadd.f32 %v3398_v46, %v3277_v12  ;;  %v6347_v21 = vpop.f32.mrb[21].mxu0  ;;  %v4418_v46 = vld [vmem:[#allocation2 + $0x7a] sm:$0xff] }
 0x31b   : > { %v3279_v16 = vadd.f32 %v3220_v7, %v8007_v6  ;;  %v6313_v52 = vpop.f32.mrb[21].mxu1  ;;  %v3401_v59 = vpop.f32.mrb[22].mxu0  ;;  %v4229_v6 = vld [vmem:[#allocation2 + $0x61] sm:$0xff]  ;;  %v4234_v7 = vld [vmem:[#allocation2 + $0x89] sm:$0xff] }
 0x31c   : > { %v3223_v14 = vpop.f32.mrb[22].mxu1  ;;  %v8112_v33 = vadd.f32 %v3401_v59, %v3278_v40  ;;  %v6348_v39 = vpop.f32.mrb[23].mxu0  ;;  %v4244_v17 = vpack.c.bf16 %v4230_v2, %v4229_v6  ;;  %v4431_v52 = vpack.c.bf16 %v4418_v46, %v4417_v23  ;;  %v4419_v2 = vld [vmem:[#allocation2 + $0x82] sm:$0xff] }
 0x31d   : > { %v3280_v3 = vadd.f32 %v3223_v14, %v8010_v24  ;;  %v6314_v9 = vpop.f32.mrb[23].mxu1 }
 0x31e   : > { %6574 = vmatmul.mubr.msk.bf16.gmra.mrb[128].mxu0 %vm299_vm1, %v4428_v53 }
 0x31f   : > { %6540 = vmatmul.mubr.msk.bf16.gmra.mrb[128].mxu1 %vm299_vm1, %v4243_v44  ;;  %6577 = vmatprep.mubr.msk.bf16.mxu0 %vm6763_vm0, %v6762_v1 }
 0x320   : > { %6543 = vmatprep.mubr.msk.bf16.mxu1 %vm6763_vm0, %v6762_v1 }
 0x321   : > { %v3406_v13 = vpop.f32.mrb[24].mxu0 }
 0x322   : > { %v3228_v63 = vpop.f32.mrb[24].mxu1  ;;  %v8121_v32 = vadd.f32 %v3406_v13, %v3279_v16  ;;  %v6351_v24 = vpop.f32.mrb[25].mxu0  ;;  %v4420_v13 = vld [vmem:[#allocation2 + $0x8a] sm:$0xff] }
 0x323   : > { %v3281_v26 = vadd.f32 %v3228_v63, %v8019_v36  ;;  %v6317_v47 = vpop.f32.mrb[25].mxu1  ;;  %v3409_v4 = vpop.f32.mrb[26].mxu0  ;;  %v4231_v36 = vld [vmem:[#allocation2 + $0x71] sm:$0xff]  ;;  %v4236_v63 = vld [vmem:[#allocation2 + $0x99] sm:$0xff] }
 0x324   : > { %v3231_v0 = vpop.f32.mrb[26].mxu1  ;;  %v8124_v60 = vadd.f32 %v3409_v4, %v3280_v3  ;;  %v6352_v22 = vpop.f32.mrb[27].mxu0  ;;  %v4245_v29 = vpack.c.bf16 %v4232_v5, %v4231_v36  ;;  %v4432_v47 = vpack.c.bf16 %v4420_v13, %v4419_v2  ;;  %v4421_v5 = vld [vmem:[#allocation2 + $0x92] sm:$0xff] }
 0x325   : > { %v3282_v42 = vadd.f32 %v3231_v0, %v8022_v38  ;;  %v6318_v31 = vpop.f32.mrb[27].mxu1 }
 0x326   : > { %6578 = vmatmul.mubr.msk.bf16.gmra.mrb[132].mxu0 %vm299_vm1, %v4429_v55 }
 0x327   : > { %6544 = vmatmul.mubr.msk.bf16.gmra.mrb[132].mxu1 %vm299_vm1, %v4244_v17  ;;  %6581 = vmatprep.mubr.msk.bf16.mxu0 %vm6763_vm0, %v6762_v1 }
 0x328   : > { %6547 = vmatprep.mubr.msk.bf16.mxu1 %vm6763_vm0, %v6762_v1 }
 0x329   : > { %v3414_v61 = vpop.f32.mrb[28].mxu0 }
 0x32a   : > { %v3236_v12 = vpop.f32.mrb[28].mxu1  ;;  %v8133_v25 = vadd.f32 %v3414_v61, %v3281_v26  ;;  %v6355_v38 = vpop.f32.mrb[29].mxu0  ;;  %v4422_v61 = vld [vmem:[#allocation2 + $0x9a] sm:$0xff] }
 0x32b   : > { %v3283_v41 = vadd.f32 %v3236_v12, %v8031_v62  ;;  %v6321_v45 = vpop.f32.mrb[29].mxu1  ;;  %v3417_v43 = vpop.f32.mrb[30].mxu0  ;;  %v4233_v62 = vld [vmem:[#allocation2 + $0x81] sm:$0xff]  ;;  %v4238_v12 = vld [vmem:[#allocation2 + $0xa9] sm:$0xff] }
 0x32c   : > { %v3239_v40 = vpop.f32.mrb[30].mxu1  ;;  %v8136_v54 = vadd.f32 %v3417_v43, %v3282_v42  ;;  %v6356_v20 = vpop.f32.mrb[31].mxu0  ;;  %v4246_v39 = vpack.c.bf16 %v4234_v7, %v4233_v62  ;;  %v4433_v45 = vpack.c.bf16 %v4422_v61, %v4421_v5  ;;  %v4423_v7 = vld [vmem:[#allocation2 + $0xa2] sm:$0xff] }
 0x32d   : > { %v3284_v11 = vadd.f32 %v3239_v40, %v8034_v58  ;;  %v6322_v56 = vpop.f32.mrb[31].mxu1 }
 0x32e   : > { %6582 = vmatmul.mubr.msk.bf16.gmra.mrb[136].mxu0 %vm299_vm1, %v4430_v27 }
 0x32f   : > { %6548 = vmatmul.mubr.msk.bf16.gmra.mrb[136].mxu1 %vm299_vm1, %v4245_v29  ;;  %6585 = vmatprep.mubr.msk.bf16.mxu0 %vm6763_vm0, %v6762_v1 }
 0x330   : > { %6551 = vmatprep.mubr.msk.bf16.mxu1 %vm6763_vm0, %v6762_v1 }
 0x331   : > { %v3422_v21 = vpop.f32.mrb[32].mxu0 }
 0x332   : > { %v3244_v53 = vpop.f32.mrb[32].mxu1  ;;  %v8145_v16 = vadd.f32 %v3422_v21, %v3283_v41  ;;  %v6359_v58 = vpop.f32.mrb[33].mxu0  ;;  %v4424_v21 = vld [vmem:[#allocation2 + $0xaa] sm:$0xff] }
 0x333   : > { %v3285_v59 = vadd.f32 %v3244_v53, %v8043_v57  ;;  %v6325_v44 = vpop.f32.mrb[33].mxu1  ;;  %v3425_v14 = vpop.f32.mrb[34].mxu0  ;;  %v4235_v57 = vld [vmem:[#allocation2 + $0x91] sm:$0xff]  ;;  %v4240_v53 = vld [vmem:[#allocation2 + $0xb9] sm:$0xff] }
 0x334   : > { %v3247_v3 = vpop.f32.mrb[34].mxu1  ;;  %v8148_v9 = vadd.f32 %v3425_v14, %v3284_v11  ;;  %v6360_v37 = vpop.f32.mrb[35].mxu0  ;;  %v4247_v22 = vpack.c.bf16 %v4236_v63, %v4235_v57  ;;  %v4434_v44 = vpack.c.bf16 %v4424_v21, %v4423_v7  ;;  %v4425_v63 = vld [vmem:[#allocation2 + $0xb2] sm:$0xff] }
 0x335   : > { %v3286_v19 = vadd.f32 %v3247_v3, %v8046_v8  ;;  %v6326_v6 = vpop.f32.mrb[35].mxu1 }
 0x336   : > { %6586 = vmatmul.mubr.msk.bf16.gmra.mrb[140].mxu0 %vm299_vm1, %v4431_v52 }
 0x337   : > { %6552 = vmatmul.mubr.msk.bf16.gmra.mrb[140].mxu1 %vm299_vm1, %v4246_v39  ;;  %6589 = vmatprep.mubr.msk.bf16.mxu0 %vm6763_vm0, %v6762_v1 }
 0x338   : > { %6555 = vmatprep.mubr.msk.bf16.mxu1 %vm6763_vm0, %v6762_v1 }
 0x339   : > { %v3430_v24 = vpop.f32.mrb[36].mxu0 }
 0x33a   : > { %v3252_v55 = vpop.f32.mrb[36].mxu1  ;;  %v8157_v26 = vadd.f32 %v3430_v24, %v3285_v59  ;;  %v6363_v8 = vpop.f32.mrb[37].mxu0  ;;  %v4426_v24 = vld [vmem:[#allocation2 + $0xba] sm:$0xff] }
 0x33b   : > { %v3287_v4 = vadd.f32 %v3252_v55, %v8055_v30  ;;  %v6329_v17 = vpop.f32.mrb[37].mxu1  ;;  %v3433_v0 = vpop.f32.mrb[38].mxu0  ;;  %v4237_v30 = vld [vmem:[#allocation2 + $0xa1] sm:$0xff] }
 0x33c   : > { %v3255_v42 = vpop.f32.mrb[38].mxu1  ;;  %v8160_v31 = vadd.f32 %v3433_v0, %v3286_v19  ;;  %v6364_v28 = vpop.f32.mrb[39].mxu0  ;;  %v4248_v20 = vpack.c.bf16 %v4238_v12, %v4237_v30  ;;  %v4596_v55 = vld [vmem:[#allocation2 + $0x3b] sm:$0xff]  ;;  %v4435_v17 = vpack.c.bf16 %v4426_v24, %v4425_v63 }
 0x33d   : > { %v3288_v18 = vadd.f32 %v3255_v42, %v8058_v49  ;;  %v6330_v36 = vpop.f32.mrb[39].mxu1  ;;  %v4781_v12 = vld [vmem:[#allocation2 + $0x34] sm:$0xff] }
 0x33e   : > { %6590 = vmatmul.mubr.msk.bf16.gmra.mrb[144].mxu0 %vm299_vm1, %v4432_v47 }
 0x33f   : > { %6556 = vmatmul.mubr.msk.bf16.gmra.mrb[144].mxu1 %vm299_vm1, %v4247_v22  ;;  %6593 = vmatprep.mubr.msk.bf16.mxu0 %vm6763_vm0, %v6762_v1 }
 0x340   : > { %6559 = vmatprep.mubr.msk.bf16.mxu1 %vm6763_vm0, %v6762_v1 }
 0x341   : > { %v3438_v38 = vpop.f32.mrb[40].mxu0 }
 0x342   : > { %v3260_v27 = vpop.f32.mrb[40].mxu1  ;;  %v8169_v41 = vadd.f32 %v3438_v38, %v3287_v4  ;;  %v6367_v49 = vpop.f32.mrb[41].mxu0  ;;  %v4782_v38 = vld [vmem:[#allocation2 + $0x3c] sm:$0xff] }
 0x343   : > { %v3289_v43 = vadd.f32 %v3260_v27, %v8067_v35  ;;  %v6333_v29 = vpop.f32.mrb[41].mxu1  ;;  %v3441_v40 = vpop.f32.mrb[42].mxu0  ;;  %v4239_v35 = vld [vmem:[#allocation2 + $0xb1] sm:$0xff] }
 0x344   : > { %v3263_v11 = vpop.f32.mrb[42].mxu1  ;;  %v8172_v56 = vadd.f32 %v3441_v40, %v3288_v18  ;;  %v6368_v23 = vpop.f32.mrb[43].mxu0  ;;  %v4249_v37 = vpack.c.bf16 %v4240_v53, %v4239_v35  ;;  %v4598_v27 = vld [vmem:[#allocation2 + $0x4b] sm:$0xff]  ;;  %v4799_v29 = vpack.c.bf16 %v4782_v38, %v4781_v12 }
 0x345   : > { %v3290_v46 = vadd.f32 %v3263_v11, %v8070_v34  ;;  %v6334_v62 = vpop.f32.mrb[43].mxu1  ;;  %v4783_v53 = vld [vmem:[#allocation2 + $0x44] sm:$0xff] }
 0x346   : > { %6594 = vmatmul.mubr.msk.bf16.gmra.mrb[148].mxu0 %vm299_vm1, %v4433_v45 }
 0x347   : > { %6560 = vmatmul.mubr.msk.bf16.gmra.mrb[148].mxu1 %vm299_vm1, %v4248_v20  ;;  %6597 = vmatprep.mubr.msk.bf16.mxu0 %vm6763_vm0, %v6762_v1 }
 0x348   : > { %6563 = vmatprep.mubr.msk.bf16.mxu1 %vm6763_vm0, %v6762_v1 }
 0x349   : > { %v3446_v58 = vpop.f32.mrb[44].mxu0 }
 0x34a   : > { %v3268_v52 = vpop.f32.mrb[44].mxu1  ;;  %v8181_v59 = vadd.f32 %v3446_v58, %v3289_v43  ;;  %v6371_v34 = vpop.f32.mrb[45].mxu0  ;;  %v4784_v58 = vld [vmem:[#allocation2 + $0x4c] sm:$0xff] }
 0x34b   : > { %v3291_v14 = vadd.f32 %v3268_v52, %v8079_v15  ;;  %v6337_v39 = vpop.f32.mrb[45].mxu1  ;;  %v3449_v3 = vpop.f32.mrb[46].mxu0  ;;  %v4595_v15 = vld [vmem:[#allocation2 + $0x33] sm:$0xff]  ;;  %v4600_v52 = vld [vmem:[#allocation2 + $0x5b] sm:$0xff] }
 0x34c   : > { %v3271_v19 = vpop.f32.mrb[46].mxu1  ;;  %v8184_v6 = vadd.f32 %v3449_v3, %v3290_v46  ;;  %v6372_v2 = vpop.f32.mrb[47].mxu0  ;;  %v4613_v28 = vpack.c.bf16 %v4596_v55, %v4595_v15  ;;  %v4800_v39 = vpack.c.bf16 %v4784_v58, %v4783_v53  ;;  %v4785_v55 = vld [vmem:[#allocation2 + $0x54] sm:$0xff] }
 0x34d   : > { %v3292_v13 = vadd.f32 %v3271_v19, %v8082_v10  ;;  %v6338_v57 = vpop.f32.mrb[47].mxu1 }
 0x34e   : > { %6598 = vmatmul.mubr.msk.bf16.gmra.mrb[152].mxu0 %vm299_vm1, %v4434_v44 }
 0x34f   : > { %6564 = vmatmul.mubr.msk.bf16.gmra.mrb[152].mxu1 %vm299_vm1, %v4249_v37  ;;  %6601 = vmatprep.mubr.msk.bf16.mxu0 %vm6763_vm0, %v6762_v1 }
 0x350   : > { %6607 = vmatprep.mubr.msk.bf16.mxu1 %vm6763_vm0, %v6762_v1 }
 0x351   : > { %v3454_v8 = vpop.f32.mrb[48].mxu0 }
 0x352   : > { %v8193_v47 = vadd.f32 %v3454_v8, %v3291_v14  ;;  %v3576_v4 = vpop.f32.mrb[48].mxu1  ;;  %v6375_v10 = vpop.f32.mrb[49].mxu0  ;;  %v4786_v8 = vld [vmem:[#allocation2 + $0x5c] sm:$0xff] }
 0x353   : > { %v3647_v0 = vadd.f32 %v3576_v4, %v8094_v48  ;;  %v6381_v22 = vpop.f32.mrb[49].mxu1  ;;  %v3457_v42 = vpop.f32.mrb[50].mxu0  ;;  %v4597_v48 = vld [vmem:[#allocation2 + $0x43] sm:$0xff]  ;;  %v4602_v4 = vld [vmem:[#allocation2 + $0x6b] sm:$0xff] }
 0x354   : > { %v8196_v18 = vadd.f32 %v3457_v42, %v3292_v13  ;;  %v3579_v36 = vpop.f32.mrb[50].mxu1  ;;  %v6376_v5 = vpop.f32.mrb[51].mxu0  ;;  %v4614_v23 = vpack.c.bf16 %v4598_v27, %v4597_v48  ;;  %v4801_v22 = vpack.c.bf16 %v4786_v8, %v4785_v55  ;;  %v4787_v27 = vld [vmem:[#allocation2 + $0x64] sm:$0xff] }
 0x355   : > { %v3648_v61 = vadd.f32 %v3579_v36, %v8100_v50  ;;  %v6382_v30 = vpop.f32.mrb[51].mxu1 }
 0x356   : > { %6602 = vmatmul.mubr.msk.bf16.gmra.mrb[156].mxu0 %vm299_vm1, %v4435_v17 }
 0x357   : > { %6608 = vmatmul.mubr.msk.bf16.vlgmr.msra.gmra.mrb[156].mxu1 %vm299_vm1, %v4613_v28  ;;  %6645 = vmatprep.mubr.msk.bf16.mxu0 %vm6763_vm0, %v6762_v1 }
 0x358   : > { %6611 = vmatprep.mubr.msk.bf16.mxu1 %vm6763_vm0, %v6762_v1 }
 0x359   : > { %v3762_v49 = vpop.f32.mrb[52].mxu0 }
 0x35a   : > { %v3584_v45 = vpop.f32.mrb[52].mxu1  ;;  %v8205_v43 = vadd.f32 %v3762_v49, %v3647_v0  ;;  %v6419_v50 = vpop.f32.mrb[53].mxu0  ;;  %v4788_v49 = vld [vmem:[#allocation2 + $0x6c] sm:$0xff] }
 0x35b   : > { %v3649_v40 = vadd.f32 %v3584_v45, %v8109_v51  ;;  %v6385_v20 = vpop.f32.mrb[53].mxu1  ;;  %v3765_v11 = vpop.f32.mrb[54].mxu0  ;;  %v4599_v51 = vld [vmem:[#allocation2 + $0x53] sm:$0xff]  ;;  %v4604_v45 = vld [vmem:[#allocation2 + $0x7b] sm:$0xff] }
 0x35c   : > { %v3587_v46 = vpop.f32.mrb[54].mxu1  ;;  %v8208_v62 = vadd.f32 %v3765_v11, %v3648_v61  ;;  %v6420_v7 = vpop.f32.mrb[55].mxu0  ;;  %v4615_v2 = vpack.c.bf16 %v4600_v52, %v4599_v51  ;;  %v4802_v20 = vpack.c.bf16 %v4788_v49, %v4787_v27  ;;  %v4789_v52 = vld [vmem:[#allocation2 + $0x74] sm:$0xff] }
 0x35d   : > { %v3650_v21 = vadd.f32 %v3587_v46, %v8112_v33  ;;  %v6386_v35 = vpop.f32.mrb[55].mxu1 }
 0x35e   : > { %6646 = vmatmul.mubr.msk.bf16.vlgmr.msra.gmra.mrb[160].mxu0 %vm299_vm1, %v4799_v29 }
 0x35f   : > { %6612 = vmatmul.mubr.msk.bf16.gmra.mrb[160].mxu1 %vm299_vm1, %v4614_v23  ;;  %6649 = vmatprep.mubr.msk.bf16.mxu0 %vm6763_vm0, %v6762_v1 }
 0x360   : > { %6615 = vmatprep.mubr.msk.bf16.mxu1 %vm6763_vm0, %v6762_v1 }
 0x361   : > { %v3770_v34 = vpop.f32.mrb[56].mxu0 }
 0x362   : > { %v3592_v44 = vpop.f32.mrb[56].mxu1  ;;  %v8217_v14 = vadd.f32 %v3770_v34, %v3649_v40  ;;  %v6423_v33 = vpop.f32.mrb[57].mxu0  ;;  %v4790_v34 = vld [vmem:[#allocation2 + $0x7c] sm:$0xff] }
 0x363   : > { %v3651_v3 = vadd.f32 %v3592_v44, %v8121_v32  ;;  %v6389_v37 = vpop.f32.mrb[57].mxu1  ;;  %v3773_v19 = vpop.f32.mrb[58].mxu0  ;;  %v4601_v32 = vld [vmem:[#allocation2 + $0x63] sm:$0xff]  ;;  %v4606_v44 = vld [vmem:[#allocation2 + $0x8b] sm:$0xff] }
 0x364   : > { %v3595_v13 = vpop.f32.mrb[58].mxu1  ;;  %v8220_v57 = vadd.f32 %v3773_v19, %v3650_v21  ;;  %v6424_v63 = vpop.f32.mrb[59].mxu0  ;;  %v4616_v5 = vpack.c.bf16 %v4602_v4, %v4601_v32  ;;  %v4803_v37 = vpack.c.bf16 %v4790_v34, %v4789_v52  ;;  %v4791_v4 = vld [vmem:[#allocation2 + $0x84] sm:$0xff] }
 0x365   : > { %v3652_v24 = vadd.f32 %v3595_v13, %v8124_v60  ;;  %v6390_v15 = vpop.f32.mrb[59].mxu1 }
 0x366   : > { %6650 = vmatmul.mubr.msk.bf16.gmra.mrb[164].mxu0 %vm299_vm1, %v4800_v39 }
 0x367   : > { %6616 = vmatmul.mubr.msk.bf16.gmra.mrb[164].mxu1 %vm299_vm1, %v4615_v2  ;;  %6653 = vmatprep.mubr.msk.bf16.mxu0 %vm6763_vm0, %v6762_v1 }
 0x368   : > { %6619 = vmatprep.mubr.msk.bf16.mxu1 %vm6763_vm0, %v6762_v1 }
 0x369   : > { %v3778_v10 = vpop.f32.mrb[60].mxu0 }
 0x36a   : > { %v3600_v17 = vpop.f32.mrb[60].mxu1  ;;  %v8229_v0 = vadd.f32 %v3778_v10, %v3651_v3  ;;  %v6427_v60 = vpop.f32.mrb[61].mxu0  ;;  %v4792_v10 = vld [vmem:[#allocation2 + $0x8c] sm:$0xff] }
 0x36b   : > { %v3653_v42 = vadd.f32 %v3600_v17, %v8133_v25  ;;  %v6393_v28 = vpop.f32.mrb[61].mxu1  ;;  %v3781_v36 = vpop.f32.mrb[62].mxu0  ;;  %v4603_v25 = vld [vmem:[#allocation2 + $0x73] sm:$0xff]  ;;  %v4608_v17 = vld [vmem:[#allocation2 + $0x9b] sm:$0xff] }
 0x36c   : > { %v3603_v61 = vpop.f32.mrb[62].mxu1  ;;  %v8232_v30 = vadd.f32 %v3781_v36, %v3652_v24  ;;  %v6428_v12 = vpop.f32.mrb[63].mxu0  ;;  %v4617_v7 = vpack.c.bf16 %v4604_v45, %v4603_v25  ;;  %v4804_v28 = vpack.c.bf16 %v4792_v10, %v4791_v4  ;;  %v4793_v45 = vld [vmem:[#allocation2 + $0x94] sm:$0xff] }
 0x36d   : > { %v3654_v38 = vadd.f32 %v3603_v61, %v8136_v54  ;;  %v6394_v48 = vpop.f32.mrb[63].mxu1 }
 0x36e   : > { %6654 = vmatmul.mubr.msk.bf16.gmra.mrb[168].mxu0 %vm299_vm1, %v4801_v22 }
 0x36f   : > { %6620 = vmatmul.mubr.msk.bf16.gmra.mrb[168].mxu1 %vm299_vm1, %v4616_v5  ;;  %6657 = vmatprep.mubr.msk.bf16.mxu0 %vm6763_vm0, %v6762_v1 }
 0x370   : > { %6623 = vmatprep.mubr.msk.bf16.mxu1 %vm6763_vm0, %v6762_v1 }
 0x371   : > { %v3786_v50 = vpop.f32.mrb[64].mxu0 }
 0x372   : > { %v3608_v29 = vpop.f32.mrb[64].mxu1  ;;  %v8241_v40 = vadd.f32 %v3786_v50, %v3653_v42  ;;  %v6431_v54 = vpop.f32.mrb[65].mxu0  ;;  %v4794_v50 = vld [vmem:[#allocation2 + $0x9c] sm:$0xff] }
 0x373   : > { %v3655_v11 = vadd.f32 %v3608_v29, %v8145_v16  ;;  %v6397_v23 = vpop.f32.mrb[65].mxu1  ;;  %v3789_v46 = vpop.f32.mrb[66].mxu0  ;;  %v4605_v16 = vld [vmem:[#allocation2 + $0x83] sm:$0xff]  ;;  %v4610_v29 = vld [vmem:[#allocation2 + $0xab] sm:$0xff] }
 0x374   : > { %v3611_v21 = vpop.f32.mrb[66].mxu1  ;;  %v8244_v35 = vadd.f32 %v3789_v46, %v3654_v38  ;;  %v6432_v53 = vpop.f32.mrb[67].mxu0  ;;  %v4618_v63 = vpack.c.bf16 %v4606_v44, %v4605_v16  ;;  %v4805_v23 = vpack.c.bf16 %v4794_v50, %v4793_v45  ;;  %v4795_v44 = vld [vmem:[#allocation2 + $0xa4] sm:$0xff] }
 0x375   : > { %v3656_v58 = vadd.f32 %v3611_v21, %v8148_v9  ;;  %v6398_v51 = vpop.f32.mrb[67].mxu1 }
 0x376   : > { %6658 = vmatmul.mubr.msk.bf16.gmra.mrb[172].mxu0 %vm299_vm1, %v4802_v20 }
 0x377   : > { %6624 = vmatmul.mubr.msk.bf16.gmra.mrb[172].mxu1 %vm299_vm1, %v4617_v7  ;;  %6661 = vmatprep.mubr.msk.bf16.mxu0 %vm6763_vm0, %v6762_v1 }
 0x378   : > { %6627 = vmatprep.mubr.msk.bf16.mxu1 %vm6763_vm0, %v6762_v1 }
 0x379   : > { %v3794_v33 = vpop.f32.mrb[68].mxu0 }
 0x37a   : > { %v3616_v39 = vpop.f32.mrb[68].mxu1  ;;  %v8253_v3 = vadd.f32 %v3794_v33, %v3655_v11  ;;  %v6435_v9 = vpop.f32.mrb[69].mxu0  ;;  %v4796_v33 = vld [vmem:[#allocation2 + $0xac] sm:$0xff] }
 0x37b   : > { %v3657_v19 = vadd.f32 %v3616_v39, %v8157_v26  ;;  %v6401_v2 = vpop.f32.mrb[69].mxu1  ;;  %v3797_v13 = vpop.f32.mrb[70].mxu0  ;;  %v4607_v26 = vld [vmem:[#allocation2 + $0x93] sm:$0xff]  ;;  %v4612_v39 = vld [vmem:[#allocation2 + $0xbb] sm:$0xff] }
 0x37c   : > { %v3619_v24 = vpop.f32.mrb[70].mxu1  ;;  %v8256_v15 = vadd.f32 %v3797_v13, %v3656_v58  ;;  %v6436_v55 = vpop.f32.mrb[71].mxu0  ;;  %v4619_v12 = vpack.c.bf16 %v4608_v17, %v4607_v26  ;;  %v4806_v2 = vpack.c.bf16 %v4796_v33, %v4795_v44  ;;  %v4797_v17 = vld [vmem:[#allocation2 + $0xb4] sm:$0xff] }
 0x37d   : > { %v3658_v8 = vadd.f32 %v3619_v24, %v8160_v31  ;;  %v6402_v32 = vpop.f32.mrb[71].mxu1 }
 0x37e   : > { %6662 = vmatmul.mubr.msk.bf16.gmra.mrb[176].mxu0 %vm299_vm1, %v4803_v37 }
 0x37f   : > { %6628 = vmatmul.mubr.msk.bf16.gmra.mrb[176].mxu1 %vm299_vm1, %v4618_v63  ;;  %6665 = vmatprep.mubr.msk.bf16.mxu0 %vm6763_vm0, %v6762_v1 }
 0x380   : > { %6631 = vmatprep.mubr.msk.bf16.mxu1 %vm6763_vm0, %v6762_v1 }
 0x381   : > { %v3802_v60 = vpop.f32.mrb[72].mxu0 }
 0x382   : > { %v3624_v22 = vpop.f32.mrb[72].mxu1  ;;  %v8265_v42 = vadd.f32 %v3802_v60, %v3657_v19  ;;  %v6439_v31 = vpop.f32.mrb[73].mxu0  ;;  %v4798_v60 = vld [vmem:[#allocation2 + $0xbc] sm:$0xff] }
 0x383   : > { %v3659_v36 = vadd.f32 %v3624_v22, %v8169_v41  ;;  %v6405_v5 = vpop.f32.mrb[73].mxu1  ;;  %v3805_v61 = vpop.f32.mrb[74].mxu0  ;;  %v4609_v41 = vld [vmem:[#allocation2 + $0xa3] sm:$0xff] }
 0x384   : > { %v3627_v38 = vpop.f32.mrb[74].mxu1  ;;  %v8268_v48 = vadd.f32 %v3805_v61, %v3658_v8  ;;  %v6440_v27 = vpop.f32.mrb[75].mxu0  ;;  %v4620_v53 = vpack.c.bf16 %v4610_v29, %v4609_v41 }
 0x385   : > { %v3660_v49 = vadd.f32 %v3627_v38, %v8172_v56  ;;  %v6406_v25 = vpop.f32.mrb[75].mxu1 }
 0x386   : > { %6666 = vmatmul.mubr.msk.bf16.gmra.mrb[180].mxu0 %vm299_vm1, %v4804_v28 }
 0x387   : > { %6632 = vmatmul.mubr.msk.bf16.gmra.mrb[180].mxu1 %vm299_vm1, %v4619_v12  ;;  %6669 = vmatprep.mubr.msk.bf16.mxu0 %vm6763_vm0, %v6762_v1 }
 0x388   : > { %6635 = vmatprep.mubr.msk.bf16.mxu1 %vm6763_vm0, %v6762_v1 }
 0x389   : > { %v3810_v54 = vpop.f32.mrb[76].mxu0 }
 0x38a   : > { %v3632_v20 = vpop.f32.mrb[76].mxu1  ;;  %v8277_v11 = vadd.f32 %v3810_v54, %v3659_v36  ;;  %v6443_v56 = vpop.f32.mrb[77].mxu0  ;;  %v4807_v36 = vpack.c.bf16 %v4798_v60, %v4797_v17 }
 0x38b   : > { %v3661_v46 = vadd.f32 %v3632_v20, %v8181_v59  ;;  %v6409_v7 = vpop.f32.mrb[77].mxu1  ;;  %v3813_v21 = vpop.f32.mrb[78].mxu0  ;;  %v4611_v59 = vld [vmem:[#allocation2 + $0xb3] sm:$0xff] }
 0x38c   : > { %v3635_v58 = vpop.f32.mrb[78].mxu1  ;;  %v8280_v51 = vadd.f32 %v3813_v21, %v3660_v49  ;;  %v6444_v52 = vpop.f32.mrb[79].mxu0  ;;  %v4621_v55 = vpack.c.bf16 %v4612_v39, %v4611_v59 }
 0x38d   : > { %v3662_v34 = vadd.f32 %v3635_v58, %v8184_v6  ;;  %v6410_v16 = vpop.f32.mrb[79].mxu1 }
 0x38e   : > { %6670 = vmatmul.mubr.msk.bf16.gmra.mrb[184].mxu0 %vm299_vm1, %v4805_v23 }
 0x38f   : > { %6636 = vmatmul.mubr.msk.bf16.gmra.mrb[184].mxu1 %vm299_vm1, %v4620_v53  ;;  %6673 = vmatprep.mubr.msk.bf16.mxu0 %vm6763_vm0, %v6762_v1 }
 0x390   : > { %6639 = vmatprep.mubr.msk.bf16.mxu1 %vm6763_vm0, %v6762_v1 }
 0x391   : > { %v3818_v9 = vpop.f32.mrb[80].mxu0 }
 0x392   : > { %v3640_v37 = vpop.f32.mrb[80].mxu1  ;;  %v8289_v19 = vadd.f32 %v3818_v9, %v3661_v46  ;;  %v6447_v6 = vpop.f32.mrb[81].mxu0 }
 0x393   : > { %v3663_v13 = vadd.f32 %v3640_v37, %v8193_v47  ;;  %v6413_v63 = vpop.f32.mrb[81].mxu1  ;;  %v3821_v24 = vpop.f32.mrb[82].mxu0 }
 0x394   : > { %v3643_v8 = vpop.f32.mrb[82].mxu1  ;;  %v8292_v32 = vadd.f32 %v3821_v24, %v3662_v34  ;;  %v6448_v4 = vpop.f32.mrb[83].mxu0 }
 0x395   : > { %v3664_v10 = vadd.f32 %v3643_v8, %v8196_v18  ;;  %v6414_v26 = vpop.f32.mrb[83].mxu1 }
 0x396   : > { %6674 = vmatmul.mubr.msk.bf16.gmra.mrb[188].mxu0 %vm299_vm1, %v4806_v2 }
 0x397   : > { %6640 = vmatmul.mubr.msk.bf16.gmra.mrb[188].mxu1 %vm299_vm1, %v4621_v55  ;;  %6677 = vmatprep.mubr.msk.bf16.mxu0 %vm6763_vm0, %v6762_v1 }
 0x399   : > { %v3826_v47 = vpop.f32.mrb[84].mxu0 }
 0x39a   : > { %v8299_v22 = vadd.f32 %v3826_v47, %v3663_v13  ;;  %v3948_v31 = vpop.f32.mrb[84].mxu1  ;;  %v6451_v28 = vpop.f32.mrb[85].mxu0 }
 0x39b   : > { %v4019_v5 = vadd.f32 %v3948_v31, %v8205_v43  ;;  %v6457_v61 = vpop.f32.mrb[85].mxu1  ;;  %v3829_v18 = vpop.f32.mrb[86].mxu0 }
 0x39c   : > { %v8302_v12 = vadd.f32 %v3829_v18, %v3664_v10  ;;  %v3951_v38 = vpop.f32.mrb[86].mxu1  ;;  %v6452_v27 = vpop.f32.mrb[87].mxu0 }
 0x39d   : > { %v4020_v49 = vadd.f32 %v3951_v38, %v8208_v62  ;;  %v6458_v25 = vpop.f32.mrb[87].mxu1 }
 0x39e   : > { %6678 = vmatmul.mubr.msk.bf16.gmra.mrb[192].mxu0 %vm299_vm1, %v4807_v36 }
 0x3a1   : > { %v4134_v1 = vpop.f32.mrb[88].mxu0 }
 0x3a2   : > { %v3956_v45 = vpop.f32.mrb[88].mxu1  ;;  %v8306_v50 = vadd.f32 %v4134_v1, %v4019_v5  ;;  %v6495_v41 = vpop.f32.mrb[89].mxu0 }
 0x3a3   : > { %v4021_v29 = vadd.f32 %v3956_v45, %v8217_v14  ;;  %v6461_v54 = vpop.f32.mrb[89].mxu1  ;;  %v4137_v43 = vpop.f32.mrb[90].mxu0 }
 0x3a4   : > { %v3959_v20 = vpop.f32.mrb[90].mxu1  ;;  %v8309_v56 = vadd.f32 %v4137_v43, %v4020_v49  ;;  %v6496_v23 = vpop.f32.mrb[91].mxu0 }
 0x3a5   : > { %v4022_v46 = vadd.f32 %v3959_v20, %v8220_v57  ;;  %v6462_v7 = vpop.f32.mrb[91].mxu1 }
 0x3a9   : > { %v4142_v62 = vpop.f32.mrb[92].mxu0 }
 0x3aa   : > { %v3964_v21 = vpop.f32.mrb[92].mxu1  ;;  %v8312_v53 = vadd.f32 %v4142_v62, %v4021_v29  ;;  %v6499_v58 = vpop.f32.mrb[93].mxu0 }
 0x3ab   : > { %v4023_v52 = vadd.f32 %v3964_v21, %v8229_v0  ;;  %v6465_v34 = vpop.f32.mrb[93].mxu1  ;;  %v4145_v16 = vpop.f32.mrb[94].mxu0 }
 0x3ac   : > { %v3967_v44 = vpop.f32.mrb[94].mxu1  ;;  %v8315_v14 = vadd.f32 %v4145_v16, %v4022_v46  ;;  %v6500_v33 = vpop.f32.mrb[95].mxu0 }
 0x3ad   : > { %v4024_v59 = vadd.f32 %v3967_v44, %v8232_v30  ;;  %v6466_v39 = vpop.f32.mrb[95].mxu1 }
 0x3b1   : > { %v4150_v9 = vpop.f32.mrb[96].mxu0 }
 0x3b2   : > { %v3972_v37 = vpop.f32.mrb[96].mxu1  ;;  %v8318_v57 = vadd.f32 %v4150_v9, %v4023_v52  ;;  %v6503_v6 = vpop.f32.mrb[97].mxu0 }
 0x3b3   : > { %v4025_v2 = vadd.f32 %v3972_v37, %v8241_v40  ;;  %v6469_v13 = vpop.f32.mrb[97].mxu1  ;;  %v4153_v63 = vpop.f32.mrb[98].mxu0 }
 0x3b4   : > { %v3975_v24 = vpop.f32.mrb[98].mxu1  ;;  %v8321_v0 = vadd.f32 %v4153_v63, %v4024_v59  ;;  %v6504_v55 = vpop.f32.mrb[99].mxu0 }
 0x3b5   : > { %v4026_v8 = vadd.f32 %v3975_v24, %v8244_v35  ;;  %v6470_v4 = vpop.f32.mrb[99].mxu1 }
 0x3b9   : > { %v4158_v10 = vpop.f32.mrb[100].mxu0 }
 0x3ba   : > { %v3980_v26 = vpop.f32.mrb[100].mxu1  ;;  %v8324_v30 = vadd.f32 %v4158_v10, %v4025_v2  ;;  %v6507_v17 = vpop.f32.mrb[101].mxu0 }
 0x3bb   : > { %v4027_v60 = vadd.f32 %v3980_v26, %v8253_v3  ;;  %v6473_v47 = vpop.f32.mrb[101].mxu1  ;;  %v4161_v31 = vpop.f32.mrb[102].mxu0 }
 0x3bc   : > { %v3983_v28 = vpop.f32.mrb[102].mxu1  ;;  %v8327_v40 = vadd.f32 %v4161_v31, %v4026_v8  ;;  %v6508_v36 = vpop.f32.mrb[103].mxu0 }
 0x3bd   : > { %v4028_v5 = vadd.f32 %v3983_v28, %v8256_v15  ;;  %v6474_v61 = vpop.f32.mrb[103].mxu1 }
 0x3c1   : > { %v4166_v18 = vpop.f32.mrb[104].mxu0 }
 0x3c2   : > { %v3988_v38 = vpop.f32.mrb[104].mxu1  ;;  %v8330_v35 = vadd.f32 %v4166_v18, %v4027_v60  ;;  %v6511_v27 = vpop.f32.mrb[105].mxu0 }
 0x3c3   : > { %v4029_v49 = vadd.f32 %v3988_v38, %v8265_v42  ;;  %v6477_v25 = vpop.f32.mrb[105].mxu1  ;;  %v4169_v1 = vpop.f32.mrb[106].mxu0 }
 0x3c4   : > { %v3991_v45 = vpop.f32.mrb[106].mxu1  ;;  %v8333_v3 = vadd.f32 %v4169_v1, %v4028_v5  ;;  %v6512_v41 = vpop.f32.mrb[107].mxu0 }
 0x3c5   : > { %v4030_v29 = vadd.f32 %v3991_v45, %v8268_v48  ;;  %v6478_v54 = vpop.f32.mrb[107].mxu1 }
 0x3c9   : > { %v4174_v43 = vpop.f32.mrb[108].mxu0 }
 0x3ca   : > { %v3996_v20 = vpop.f32.mrb[108].mxu1  ;;  %v8336_v15 = vadd.f32 %v4174_v43, %v4029_v49  ;;  %v6515_v23 = vpop.f32.mrb[109].mxu0 }
 0x3cb   : > { %v4031_v46 = vadd.f32 %v3996_v20, %v8277_v11  ;;  %v6481_v7 = vpop.f32.mrb[109].mxu1  ;;  %v4177_v62 = vpop.f32.mrb[110].mxu0 }
 0x3cc   : > { %v3999_v21 = vpop.f32.mrb[110].mxu1  ;;  %v8339_v42 = vadd.f32 %v4177_v62, %v4030_v29  ;;  %v6516_v58 = vpop.f32.mrb[111].mxu0 }
 0x3cd   : > { %v4032_v52 = vadd.f32 %v3999_v21, %v8280_v51  ;;  %v6482_v34 = vpop.f32.mrb[111].mxu1 }
 0x3d1   : > { %v4182_v16 = vpop.f32.mrb[112].mxu0 }
 0x3d2   : > { %v4004_v44 = vpop.f32.mrb[112].mxu1  ;;  %v8342_v48 = vadd.f32 %v4182_v16, %v4031_v46  ;;  %v6519_v33 = vpop.f32.mrb[113].mxu0 }
 0x3d3   : > { %v4033_v59 = vadd.f32 %v4004_v44, %v8289_v19  ;;  %v6485_v39 = vpop.f32.mrb[113].mxu1  ;;  %v4185_v9 = vpop.f32.mrb[114].mxu0 }
 0x3d4   : > { %v4007_v37 = vpop.f32.mrb[114].mxu1  ;;  %v8345_v11 = vadd.f32 %v4185_v9, %v4032_v52  ;;  %v6520_v6 = vpop.f32.mrb[115].mxu0 }
 0x3d5   : > { %v4034_v2 = vadd.f32 %v4007_v37, %v8292_v32  ;;  %v6486_v13 = vpop.f32.mrb[115].mxu1 }
 0x3d9   : > { %v4190_v63 = vpop.f32.mrb[116].mxu0 }
 0x3da   : > { %v4012_v24 = vpop.f32.mrb[116].mxu1  ;;  %v8348_v51 = vadd.f32 %v4190_v63, %v4033_v59  ;;  %v6523_v55 = vpop.f32.mrb[117].mxu0 }
 0x3db   : > { %v4035_v8 = vadd.f32 %v4012_v24, %v8299_v22  ;;  %v6489_v4 = vpop.f32.mrb[117].mxu1  ;;  %v4193_v10 = vpop.f32.mrb[118].mxu0 }
 0x3dc   : > { %v4015_v26 = vpop.f32.mrb[118].mxu1  ;;  %v8351_v19 = vadd.f32 %v4193_v10, %v4034_v2  ;;  %v6524_v17 = vpop.f32.mrb[119].mxu0 }
 0x3dd   : > { %v4036_v60 = vadd.f32 %v4015_v26, %v8302_v12  ;;  %v6490_v47 = vpop.f32.mrb[119].mxu1 }
 0x3e1   : > { %v4198_v31 = vpop.f32.mrb[120].mxu0 }
 0x3e2   : > { %v8354_v28 = vadd.f32 %v4198_v31, %v4035_v8  ;;  %v4320_v32 = vpop.f32.mrb[120].mxu1  ;;  %v6527_v36 = vpop.f32.mrb[121].mxu0 }
 0x3e3   : > { %v4391_v5 = vadd.f32 %v4320_v32, %v8306_v50  ;;  %v6533_v61 = vpop.f32.mrb[121].mxu1  ;;  %v4201_v18 = vpop.f32.mrb[122].mxu0 }
 0x3e4   : > { %v8357_v38 = vadd.f32 %v4201_v18, %v4036_v60  ;;  %v4323_v22 = vpop.f32.mrb[122].mxu1  ;;  %v6528_v27 = vpop.f32.mrb[123].mxu0 }
 0x3e5   : > { %v4392_v49 = vadd.f32 %v4323_v22, %v8309_v56  ;;  %v6534_v25 = vpop.f32.mrb[123].mxu1 }
 0x3e9   : > { %v4506_v1 = vpop.f32.mrb[124].mxu0 }
 0x3ea   : > { %v4328_v45 = vpop.f32.mrb[124].mxu1  ;;  %v8360_v12 = vadd.f32 %v4506_v1, %v4391_v5  ;;  %v6571_v41 = vpop.f32.mrb[125].mxu0 }
 0x3eb   : > { %v4393_v29 = vadd.f32 %v4328_v45, %v8312_v53  ;;  %v6537_v54 = vpop.f32.mrb[125].mxu1  ;;  %v4509_v43 = vpop.f32.mrb[126].mxu0 }
 0x3ec   : > { %v4331_v20 = vpop.f32.mrb[126].mxu1  ;;  %v8363_v50 = vadd.f32 %v4509_v43, %v4392_v49  ;;  %v6572_v23 = vpop.f32.mrb[127].mxu0 }
 0x3ed   : > { %v4394_v46 = vadd.f32 %v4331_v20, %v8315_v14  ;;  %v6538_v7 = vpop.f32.mrb[127].mxu1 }
 0x3f1   : > { %v4514_v62 = vpop.f32.mrb[128].mxu0 }
 0x3f2   : > { %v4336_v21 = vpop.f32.mrb[128].mxu1  ;;  %v8366_v56 = vadd.f32 %v4514_v62, %v4393_v29  ;;  %v6575_v58 = vpop.f32.mrb[129].mxu0 }
 0x3f3   : > { %v4395_v52 = vadd.f32 %v4336_v21, %v8318_v57  ;;  %v6541_v34 = vpop.f32.mrb[129].mxu1  ;;  %v4517_v16 = vpop.f32.mrb[130].mxu0 }
 0x3f4   : > { %v4339_v44 = vpop.f32.mrb[130].mxu1  ;;  %v8369_v53 = vadd.f32 %v4517_v16, %v4394_v46  ;;  %v6576_v33 = vpop.f32.mrb[131].mxu0 }
 0x3f5   : > { %v4396_v59 = vadd.f32 %v4339_v44, %v8321_v0  ;;  %v6542_v39 = vpop.f32.mrb[131].mxu1 }
 0x3f9   : > { %v4522_v9 = vpop.f32.mrb[132].mxu0 }
 0x3fa   : > { %v4344_v37 = vpop.f32.mrb[132].mxu1  ;;  %v8372_v14 = vadd.f32 %v4522_v9, %v4395_v52  ;;  %v6579_v6 = vpop.f32.mrb[133].mxu0 }
 0x3fb   : > { %v4397_v2 = vadd.f32 %v4344_v37, %v8324_v30  ;;  %v6545_v13 = vpop.f32.mrb[133].mxu1  ;;  %v4525_v63 = vpop.f32.mrb[134].mxu0 }
 0x3fc   : > { %v4347_v24 = vpop.f32.mrb[134].mxu1  ;;  %v8375_v57 = vadd.f32 %v4525_v63, %v4396_v59  ;;  %v6580_v55 = vpop.f32.mrb[135].mxu0 }
 0x3fd   : > { %v4398_v8 = vadd.f32 %v4347_v24, %v8327_v40  ;;  %v6546_v4 = vpop.f32.mrb[135].mxu1 }
 0x401   : > { %v4530_v10 = vpop.f32.mrb[136].mxu0 }
 0x402   : > { %v4352_v26 = vpop.f32.mrb[136].mxu1  ;;  %v8378_v0 = vadd.f32 %v4530_v10, %v4397_v2  ;;  %v6583_v17 = vpop.f32.mrb[137].mxu0 }
 0x403   : > { %v4399_v60 = vadd.f32 %v4352_v26, %v8330_v35  ;;  %v6549_v47 = vpop.f32.mrb[137].mxu1  ;;  %v4533_v31 = vpop.f32.mrb[138].mxu0 }
 0x404   : > { %v4355_v32 = vpop.f32.mrb[138].mxu1  ;;  %v8381_v30 = vadd.f32 %v4533_v31, %v4398_v8  ;;  %v6584_v36 = vpop.f32.mrb[139].mxu0 }
 0x405   : > { %v4400_v5 = vadd.f32 %v4355_v32, %v8333_v3  ;;  %v6550_v61 = vpop.f32.mrb[139].mxu1 }
 0x409   : > { %v4538_v18 = vpop.f32.mrb[140].mxu0 }
 0x40a   : > { %v4360_v22 = vpop.f32.mrb[140].mxu1  ;;  %v8384_v40 = vadd.f32 %v4538_v18, %v4399_v60  ;;  %v6587_v27 = vpop.f32.mrb[141].mxu0 }
 0x40b   : > { %v4401_v49 = vadd.f32 %v4360_v22, %v8336_v15  ;;  %v6553_v25 = vpop.f32.mrb[141].mxu1  ;;  %v4541_v1 = vpop.f32.mrb[142].mxu0 }
 0x40c   : > { %v4363_v45 = vpop.f32.mrb[142].mxu1  ;;  %v8387_v35 = vadd.f32 %v4541_v1, %v4400_v5  ;;  %v6588_v41 = vpop.f32.mrb[143].mxu0 }
 0x40d   : > { %v4402_v29 = vadd.f32 %v4363_v45, %v8339_v42  ;;  %v6554_v54 = vpop.f32.mrb[143].mxu1 }
 0x411   : > { %v4546_v43 = vpop.f32.mrb[144].mxu0 }
 0x412   : > { %v4368_v20 = vpop.f32.mrb[144].mxu1  ;;  %v8390_v3 = vadd.f32 %v4546_v43, %v4401_v49  ;;  %v6591_v23 = vpop.f32.mrb[145].mxu0 }
 0x413   : > { %v4403_v46 = vadd.f32 %v4368_v20, %v8342_v48  ;;  %v6557_v7 = vpop.f32.mrb[145].mxu1  ;;  %v4549_v62 = vpop.f32.mrb[146].mxu0 }
 0x414   : > { %v4371_v21 = vpop.f32.mrb[146].mxu1  ;;  %v8393_v15 = vadd.f32 %v4549_v62, %v4402_v29  ;;  %v6592_v58 = vpop.f32.mrb[147].mxu0 }
 0x415   : > { %v4404_v52 = vadd.f32 %v4371_v21, %v8345_v11  ;;  %v6558_v34 = vpop.f32.mrb[147].mxu1 }
 0x419   : > { %v4554_v16 = vpop.f32.mrb[148].mxu0 }
 0x41a   : > { %v4376_v44 = vpop.f32.mrb[148].mxu1  ;;  %v8396_v42 = vadd.f32 %v4554_v16, %v4403_v46  ;;  %v6595_v33 = vpop.f32.mrb[149].mxu0 }
 0x41b   : > { %v4405_v59 = vadd.f32 %v4376_v44, %v8348_v51  ;;  %v6561_v39 = vpop.f32.mrb[149].mxu1  ;;  %v4557_v9 = vpop.f32.mrb[150].mxu0 }
 0x41c   : > { %v4379_v37 = vpop.f32.mrb[150].mxu1  ;;  %v8399_v48 = vadd.f32 %v4557_v9, %v4404_v52  ;;  %v6596_v6 = vpop.f32.mrb[151].mxu0 }
 0x41d   : > { %v4406_v2 = vadd.f32 %v4379_v37, %v8351_v19  ;;  %v6562_v13 = vpop.f32.mrb[151].mxu1 }
 0x421   : > { %v4562_v63 = vpop.f32.mrb[152].mxu0 }
 0x422   : > { %v4384_v24 = vpop.f32.mrb[152].mxu1  ;;  %v8402_v11 = vadd.f32 %v4562_v63, %v4405_v59  ;;  %v6599_v55 = vpop.f32.mrb[153].mxu0 }
 0x423   : > { %v4407_v8 = vadd.f32 %v4384_v24, %v8354_v28  ;;  %v6565_v4 = vpop.f32.mrb[153].mxu1  ;;  %v4565_v10 = vpop.f32.mrb[154].mxu0 }
 0x424   : > { %v4387_v26 = vpop.f32.mrb[154].mxu1  ;;  %v8405_v51 = vadd.f32 %v4565_v10, %v4406_v2  ;;  %v6600_v17 = vpop.f32.mrb[155].mxu0 }
 0x425   : > { %v4408_v60 = vadd.f32 %v4387_v26, %v8357_v38  ;;  %v6566_v47 = vpop.f32.mrb[155].mxu1  ;;  %v8417_v38 = vld [vmem:[%s8507_s3] ss:$0 sm:$0xff] }
 0x429   : > { %v4570_v31 = vpop.f32.mrb[156].mxu0 }
 0x42a   : > { %v8408_v19 = vadd.f32 %v4570_v31, %v4407_v8  ;;  %v4692_v32 = vpop.f32.mrb[156].mxu1  ;;  %v6603_v36 = vpop.f32.mrb[157].mxu0 }
 0x42b   : > { %v4763_v5 = vadd.f32 %v4692_v32, %v8360_v12  ;;  %v6609_v61 = vpop.f32.mrb[157].mxu1  ;;  %v4573_v18 = vpop.f32.mrb[158].mxu0 }
 0x42c   : > { %v8411_v28 = vadd.f32 %v4573_v18, %v4408_v60  ;;  %v4695_v22 = vpop.f32.mrb[158].mxu1  ;;  %v6604_v27 = vpop.f32.mrb[159].mxu0 }
 0x42d   : > { %v4764_v49 = vadd.f32 %v4695_v22, %v8363_v50  ;;  %v6610_v25 = vpop.f32.mrb[159].mxu1 }
 0x431   : > { %v4878_v1 = vpop.f32.mrb[160].mxu0 }
 0x432   : > { %v4700_v45 = vpop.f32.mrb[160].mxu1  ;;  %v4949_v41 = vadd.f32 %v4878_v1, %v4763_v5  ;;  %v6647_v29 = vpop.f32.mrb[161].mxu0 }
 0x433   : > { %v4765_v12 = vadd.f32 %v4700_v45, %v8366_v56  ;;  %v6613_v54 = vpop.f32.mrb[161].mxu1  ;;  %v4881_v43 = vpop.f32.mrb[162].mxu0 }
 0x434   : > { %v4974_v20 = vadd.f32 %v8417_v38, %v4949_v41  ;;  %v4703_v23 = vpop.f32.mrb[162].mxu1  ;;  %v4950_v46 = vadd.f32 %v4881_v43, %v4764_v49  ;;  %v6648_v50 = vpop.f32.mrb[163].mxu0 }
 0x435   : > { %v4766_v7 = vadd.f32 %v4703_v23, %v8369_v53  ;;  %v6614_v62 = vpop.f32.mrb[163].mxu1 }
 0x436   : > { %vm4992_vm2 = vcmp.gt.f32.partialorder %v4974_v20, 0.0  ;;  %v5010_v21 = vmul.f32 0.1, %v4974_v20  ;;  %v4975_v56 = vadd.f32 %v8417_v38, %v4950_v46 }
 0x438   : > { %v5028_v58 = vsel %vm4992_vm2, %v4974_v20, %v5010_v21  ;;  %vm4993_vm4 = vcmp.gt.f32.partialorder %v4975_v56, 0.0  ;;  %v5011_v52 = vmul.f32 0.1, %v4975_v56 }
 0x439   : > { %5047 = vst.msk [vmem:[%s8426_s13] sm:$0xff] %vm5046_vm3, %v5028_v58  ;;  %v4886_v34 = vpop.f32.mrb[164].mxu0 }
 0x43a   : > { %v5029_v53 = vsel %vm4993_vm4, %v4975_v56, %v5011_v52  ;;  %v4708_v16 = vpop.f32.mrb[164].mxu1  ;;  %v4951_v44 = vadd.f32 %v4886_v34, %v4765_v12  ;;  %v6651_v33 = vpop.f32.mrb[165].mxu0 }
 0x43b   : > { %5048 = vst.msk [vmem:[%s8426_s13 + $0x8] sm:$0xff] %vm5046_vm3, %v5029_v53  ;;  %v4767_v59 = vadd.f32 %v4708_v16, %v8372_v14  ;;  %v6617_v39 = vpop.f32.mrb[165].mxu1  ;;  %v4889_v9 = vpop.f32.mrb[166].mxu0 }
 0x43c   : > { %v4976_v37 = vadd.f32 %v8417_v38, %v4951_v44  ;;  %v4711_v6 = vpop.f32.mrb[166].mxu1  ;;  %v4952_v2 = vadd.f32 %v4889_v9, %v4766_v7  ;;  %v6652_v13 = vpop.f32.mrb[167].mxu0 }
 0x43d   : > { %v4768_v63 = vadd.f32 %v4711_v6, %v8375_v57  ;;  %v6618_v24 = vpop.f32.mrb[167].mxu1 }
 0x43e   : > { %vm4994_vm5 = vcmp.gt.f32.partialorder %v4976_v37, 0.0  ;;  %v5012_v55 = vmul.f32 0.1, %v4976_v37  ;;  %v4977_v8 = vadd.f32 %v8417_v38, %v4952_v2 }
 0x440   : > { %v5030_v4 = vsel %vm4994_vm5, %v4976_v37, %v5012_v55  ;;  %vm4995_vm6 = vcmp.gt.f32.partialorder %v4977_v8, 0.0  ;;  %v5013_v10 = vmul.f32 0.1, %v4977_v8 }
 0x441   : > { %5049 = vst.msk [vmem:[%s8426_s13 + $0x10] sm:$0xff] %vm5046_vm3, %v5030_v4  ;;  %v4894_v14 = vpop.f32.mrb[168].mxu0 }
 0x442   : > { %v5031_v26 = vsel %vm4995_vm6, %v4977_v8, %v5013_v10  ;;  %v4716_v17 = vpop.f32.mrb[168].mxu1  ;;  %v4953_v60 = vadd.f32 %v4894_v14, %v4767_v59  ;;  %v6655_v47 = vpop.f32.mrb[169].mxu0 }
 0x443   : > { %5050 = vst.msk [vmem:[%s8426_s13 + $0x18] sm:$0xff] %vm5046_vm3, %v5031_v26  ;;  %v4769_v57 = vadd.f32 %v4716_v17, %v8378_v0  ;;  %v6621_v31 = vpop.f32.mrb[169].mxu1  ;;  %v4897_v32 = vpop.f32.mrb[170].mxu0 }
 0x444   : > { %v4978_v36 = vadd.f32 %v8417_v38, %v4953_v60  ;;  %v4719_v5 = vpop.f32.mrb[170].mxu1  ;;  %v4954_v61 = vadd.f32 %v4897_v32, %v4768_v63  ;;  %v6656_v18 = vpop.f32.mrb[171].mxu0 }
 0x445   : > { %v4770_v22 = vadd.f32 %v4719_v5, %v8381_v30  ;;  %v6622_v27 = vpop.f32.mrb[171].mxu1 }
 0x446   : > { %vm4996_vm7 = vcmp.gt.f32.partialorder %v4978_v36, 0.0  ;;  %v5014_v49 = vmul.f32 0.1, %v4978_v36  ;;  %v4979_v25 = vadd.f32 %v8417_v38, %v4954_v61 }
 0x448   : > { %v5032_v1 = vsel %vm4996_vm7, %v4978_v36, %v5014_v49  ;;  %vm4997_vm8 = vcmp.gt.f32.partialorder %v4979_v25, 0.0  ;;  %v5015_v45 = vmul.f32 0.1, %v4979_v25 }
 0x449   : > { %5051 = vst.msk [vmem:[%s8426_s13 + $0x20] sm:$0xff] %vm5046_vm3, %v5032_v1  ;;  %v4902_v0 = vpop.f32.mrb[172].mxu0 }
 0x44a   : > { %v5033_v41 = vsel %vm4997_vm8, %v4979_v25, %v5015_v45  ;;  %v4724_v29 = vpop.f32.mrb[172].mxu1  ;;  %v4955_v12 = vadd.f32 %v4902_v0, %v4769_v57  ;;  %v6659_v54 = vpop.f32.mrb[173].mxu0 }
 0x44b   : > { %5052 = vst.msk [vmem:[%s8426_s13 + $0x28] sm:$0xff] %vm5046_vm3, %v5033_v41  ;;  %v4771_v30 = vadd.f32 %v4724_v29, %v8384_v40  ;;  %v6625_v43 = vpop.f32.mrb[173].mxu1  ;;  %v4905_v20 = vpop.f32.mrb[174].mxu0 }
 0x44c   : > { %v4980_v23 = vadd.f32 %v8417_v38, %v4955_v12  ;;  %v4727_v46 = vpop.f32.mrb[174].mxu1  ;;  %v4956_v50 = vadd.f32 %v4905_v20, %v4770_v22  ;;  %v6660_v7 = vpop.f32.mrb[175].mxu0 }
 0x44d   : > { %v4772_v62 = vadd.f32 %v4727_v46, %v8387_v35  ;;  %v6626_v21 = vpop.f32.mrb[175].mxu1 }
 0x44e   : > { %vm4998_vm9 = vcmp.gt.f32.partialorder %v4980_v23, 0.0  ;;  %v5016_v56 = vmul.f32 0.1, %v4980_v23  ;;  %v4981_v58 = vadd.f32 %v8417_v38, %v4956_v50 }
 0x450   : > { %v5034_v52 = vsel %vm4998_vm9, %v4980_v23, %v5016_v56  ;;  %vm4999_vm10 = vcmp.gt.f32.partialorder %v4981_v58, 0.0  ;;  %v5017_v34 = vmul.f32 0.1, %v4981_v58 }
 0x451   : > { %5053 = vst.msk [vmem:[%s8426_s13 + $0x30] sm:$0xff] %vm5046_vm3, %v5034_v52  ;;  %v4910_v40 = vpop.f32.mrb[176].mxu0 }
 0x452   : > { %v5035_v53 = vsel %vm4999_vm10, %v4981_v58, %v5017_v34  ;;  %v4732_v16 = vpop.f32.mrb[176].mxu1  ;;  %v4957_v44 = vadd.f32 %v4910_v40, %v4771_v30  ;;  %v6663_v33 = vpop.f32.mrb[177].mxu0 }
 0x453   : > { %5054 = vst.msk [vmem:[%s8426_s13 + $0x38] sm:$0xff] %vm5046_vm3, %v5035_v53  ;;  %v4773_v35 = vadd.f32 %v4732_v16, %v8390_v3  ;;  %v6629_v59 = vpop.f32.mrb[177].mxu1  ;;  %v4913_v39 = vpop.f32.mrb[178].mxu0 }
 0x454   : > { %v4982_v9 = vadd.f32 %v8417_v38, %v4957_v44  ;;  %v4735_v37 = vpop.f32.mrb[178].mxu1  ;;  %v4958_v6 = vadd.f32 %v4913_v39, %v4772_v62  ;;  %v6664_v2 = vpop.f32.mrb[179].mxu0 }
 0x455   : > { %v4774_v13 = vadd.f32 %v4735_v37, %v8393_v15  ;;  %v6630_v63 = vpop.f32.mrb[179].mxu1 }
 0x456   : > { %vm5000_vm11 = vcmp.gt.f32.partialorder %v4982_v9, 0.0  ;;  %v5018_v24 = vmul.f32 0.1, %v4982_v9  ;;  %v4983_v55 = vadd.f32 %v8417_v38, %v4958_v6 }
 0x458   : > { %v5036_v8 = vsel %vm5000_vm11, %v4982_v9, %v5018_v24  ;;  %vm5001_vm12 = vcmp.gt.f32.partialorder %v4983_v55, 0.0  ;;  %v5019_v4 = vmul.f32 0.1, %v4983_v55 }
 0x459   : > { %5055 = vst.msk [vmem:[%s8426_s13 + $0x40] sm:$0xff] %vm5046_vm3, %v5036_v8  ;;  %v4918_v3 = vpop.f32.mrb[180].mxu0 }
 0x45a   : > { %v5037_v10 = vsel %vm5001_vm12, %v4983_v55, %v5019_v4  ;;  %v4740_v14 = vpop.f32.mrb[180].mxu1  ;;  %v4959_v26 = vadd.f32 %v4918_v3, %v4773_v35  ;;  %v6667_v17 = vpop.f32.mrb[181].mxu0 }
 0x45b   : > { %5056 = vst.msk [vmem:[%s8426_s13 + $0x48] sm:$0xff] %vm5046_vm3, %v5037_v10  ;;  %v4775_v15 = vadd.f32 %v4740_v14, %v8396_v42  ;;  %v6633_v60 = vpop.f32.mrb[181].mxu1  ;;  %v4921_v47 = vpop.f32.mrb[182].mxu0 }
 0x45c   : > { %v4984_v57 = vadd.f32 %v8417_v38, %v4959_v26  ;;  %v4743_v31 = vpop.f32.mrb[182].mxu1  ;;  %v4960_v32 = vadd.f32 %v4921_v47, %v4774_v13  ;;  %v6668_v36 = vpop.f32.mrb[183].mxu0 }
 0x45d   : > { %v4776_v5 = vadd.f32 %v4743_v31, %v8399_v48  ;;  %v6634_v61 = vpop.f32.mrb[183].mxu1 }
 0x45e   : > { %vm5002_vm13 = vcmp.gt.f32.partialorder %v4984_v57, 0.0  ;;  %v5020_v18 = vmul.f32 0.1, %v4984_v57  ;;  %v4985_v22 = vadd.f32 %v8417_v38, %v4960_v32 }
 0x460   : > { %v5038_v27 = vsel %vm5002_vm13, %v4984_v57, %v5020_v18  ;;  %vm5003_vm14 = vcmp.gt.f32.partialorder %v4985_v22, 0.0  ;;  %v5021_v49 = vmul.f32 0.1, %v4985_v22 }
 0x461   : > { %5057 = vst.msk [vmem:[%s8426_s13 + $0x50] sm:$0xff] %vm5046_vm3, %v5038_v27  ;;  %v4926_v42 = vpop.f32.mrb[184].mxu0 }
 0x462   : > { %v5039_v25 = vsel %vm5003_vm14, %v4985_v22, %v5021_v49  ;;  %v4748_v1 = vpop.f32.mrb[184].mxu1  ;;  %v4961_v45 = vadd.f32 %v4926_v42, %v4775_v15  ;;  %v6671_v0 = vpop.f32.mrb[185].mxu0 }
 0x463   : > { %5058 = vst.msk [vmem:[%s8426_s13 + $0x58] sm:$0xff] %vm5046_vm3, %v5039_v25  ;;  %v4777_v48 = vadd.f32 %v4748_v1, %v8402_v11  ;;  %v6637_v41 = vpop.f32.mrb[185].mxu1  ;;  %v4929_v29 = vpop.f32.mrb[186].mxu0 }
 0x464   : > { %v4986_v12 = vadd.f32 %v8417_v38, %v4961_v45  ;;  %v4751_v54 = vpop.f32.mrb[186].mxu1  ;;  %v4962_v30 = vadd.f32 %v4929_v29, %v4776_v5  ;;  %v6672_v43 = vpop.f32.mrb[187].mxu0 }
 0x465   : > { %v4778_v20 = vadd.f32 %v4751_v54, %v8405_v51  ;;  %v6638_v23 = vpop.f32.mrb[187].mxu1 }
 0x466   : > { %vm5004_vm15 = vcmp.gt.f32.partialorder %v4986_v12, 0.0  ;;  %v5022_v46 = vmul.f32 0.1, %v4986_v12  ;;  %v4987_v50 = vadd.f32 %v8417_v38, %v4962_v30 }
 0x468   : > { %v5040_v7 = vsel %vm5004_vm15, %v4986_v12, %v5022_v46  ;;  %vm5005_vm0 = vcmp.gt.f32.partialorder %v4987_v50, 0.0  ;;  %v5023_v62 = vmul.f32 0.1, %v4987_v50 }
 0x469   : > { %5059 = vst.msk [vmem:[%s8426_s13 + $0x60] sm:$0xff] %vm5046_vm3, %v5040_v7  ;;  %v4934_v11 = vpop.f32.mrb[188].mxu0 }
 0x46a   : > { %v5041_v21 = vsel %vm5005_vm0, %v4987_v50, %v5023_v62  ;;  %v4756_v56 = vpop.f32.mrb[188].mxu1  ;;  %v4963_v58 = vadd.f32 %v4934_v11, %v4777_v48  ;;  %v6675_v52 = vpop.f32.mrb[189].mxu0 }
 0x46b   : > { %5060 = vst.msk [vmem:[%s8426_s13 + $0x68] sm:$0xff] %vm5046_vm3, %v5041_v21  ;;  %v4779_v51 = vadd.f32 %v4756_v56, %v8408_v19  ;;  %v6641_v34 = vpop.f32.mrb[189].mxu1  ;;  %v4937_v40 = vpop.f32.mrb[190].mxu0 }
 0x46c   : > { %v4988_v53 = vadd.f32 %v8417_v38, %v4963_v58  ;;  %v4759_v16 = vpop.f32.mrb[190].mxu1  ;;  %v4964_v44 = vadd.f32 %v4937_v40, %v4778_v20  ;;  %v6676_v33 = vpop.f32.mrb[191].mxu0 }
 0x46d   : > { %v4780_v35 = vadd.f32 %v4759_v16, %v8411_v28  ;;  %v6642_v59 = vpop.f32.mrb[191].mxu1 }
 0x46e   : > { %vm5006_vm1 = vcmp.gt.f32.partialorder %v4988_v53, 0.0  ;;  %v5024_v39 = vmul.f32 0.1, %v4988_v53  ;;  %v4989_v9 = vadd.f32 %v8417_v38, %v4964_v44 }
 0x470   : > { %v5042_v37 = vsel %vm5006_vm1, %v4988_v53, %v5024_v39  ;;  %vm5007_vm2 = vcmp.gt.f32.partialorder %v4989_v9, 0.0  ;;  %v5025_v6 = vmul.f32 0.1, %v4989_v9 }
 0x471   : > { %5061 = vst.msk [vmem:[%s8426_s13 + $0x70] sm:$0xff] %vm5046_vm3, %v5042_v37  ;;  %v4942_v19 = vpop.f32.mrb[192].mxu0 }
 0x472   : > { %v5043_v2 = vsel %vm5007_vm2, %v4989_v9, %v5025_v6  ;;  %v4965_v13 = vadd.f32 %v4942_v19, %v4779_v51  ;;  %v6679_v63 = vpop.f32.mrb[193].mxu0 }
 0x473   : > { %5062 = vst.msk [vmem:[%s8426_s13 + $0x78] sm:$0xff] %vm5046_vm3, %v5043_v2  ;;  %v4945_v24 = vpop.f32.mrb[194].mxu0 }
 0x474   : > { %v4990_v28 = vadd.f32 %v8417_v38, %v4965_v13  ;;  %v4966_v55 = vadd.f32 %v4945_v24, %v4780_v35  ;;  %v6680_v8 = vpop.f32.mrb[195].mxu0 }
 0x476   : > { %vm5008_vm4 = vcmp.gt.f32.partialorder %v4990_v28, 0.0  ;;  %v5026_v4 = vmul.f32 0.1, %v4990_v28  ;;  %v4991_v3 = vadd.f32 %v8417_v38, %v4966_v55 }
 0x478   : > { %v5044_v10 = vsel %vm5008_vm4, %v4990_v28, %v5026_v4  ;;  %vm5009_vm5 = vcmp.gt.f32.partialorder %v4991_v3, 0.0  ;;  %v5027_v14 = vmul.f32 0.1, %v4991_v3 }
 0x479   : > { %5063 = vst.msk [vmem:[%s8426_s13 + $0x80] sm:$0xff] %vm5046_vm3, %v5044_v10 }
 0x47a   : > { %v5045_v26 = vsel %vm5009_vm5, %v4991_v3, %v5027_v14 }
 0x47b   : > { %5064 = vst.msk [vmem:[%s8426_s13 + $0x88] sm:$0xff] %vm5046_vm3, %v5045_v26 }
 0x47c PF: > { %s14_s17 = sadd.s32 1, %s6760_s17   ;;  %s8509_s15 = smov %s6756_s16 }
 0x47d   : > { %p11_p5 = scmp.ge.s32.totalorder %s14_s17, 4   ;;  %s8510_s16 = smov %s8512_s18 }
 0x47f   :  { %13 = sbr.rel (!%p11_p5) target bundleno = 2 (0x2), region = 93 }

</bundles_post_ra>
